<compile_context>
chip_gen: v6e
topology: v6e:2x2x1
jax: 0.10.0
libtpu: 0.0.40
codegen_flags: <defaults>
</compile_context>

<pallas_src>
import functools

import jax
import jax.numpy as jnp
from jax.experimental import pallas as pl
from jax.experimental.pallas import tpu as pltpu


def _round_up(x, m):
    return ((x + m - 1) // m) * m


# --------------------------------------------------------------------------- #
# Kernel: one grid step = Gb graphs x 2 views
# --------------------------------------------------------------------------- #
def _encoder_atten4_kernel(
    x_ref, adj_ref, params_ref, out_ref,
    *, offsets, GbN, H3,
):
    def P(name):
        off, r, c = offsets[name]            # static python ints, off is 8-aligned
        return params_ref[pl.ds(off, r), pl.ds(0, c)]

    # features: exec rows then file rows (sublane-stacked, split is free)
    x_all = x_ref[0]                         # [2*GbN, F]
    x_e = x_all[:GbN]                        # [GbN, F]
    x_f = x_all[GbN:]                        # [GbN, F]

    # block-diagonal adjacencies, lane-packed (128-aligned lane split)
    adj_e = adj_ref[0, :, 0:GbN]             # [GbN, GbN]
    adj_f = adj_ref[0, :, GbN:2 * GbN]       # [GbN, GbN]

    def gcn(x, adj, w, b):
        sup = jnp.dot(x, w, preferred_element_type=jnp.float32)
        return jnp.dot(adj, sup, preferred_element_type=jnp.float32) + b

    def gcn_stack(x, adj, tag):
        h = jnp.maximum(gcn(x, adj, P("w1" + tag), P("b1" + tag)), 0.0)
        h = jnp.maximum(gcn(h, adj, P("w2" + tag), P("b2" + tag)), 0.0)
        h = jnp.maximum(gcn(h, adj, P("w3" + tag), P("b3" + tag)), 0.0)
        return gcn(h, adj, P("w4" + tag), P("b4" + tag))

    z_e = gcn_stack(x_e, adj_e, "e")         # [GbN, H3]
    z_f = gcn_stack(x_f, adj_f, "f")         # [GbN, H3]

    # ---- attention over the two views, batched through shared 2*GbN-row matmuls
    # lane-axis concat([z, x]) replaced by split weights wa_z / wa_x.
    z_both = jnp.concatenate([z_e, z_f], axis=0)          # [2*GbN, H3]

    h = jnp.tanh(
        jnp.dot(z_both, P("wa_z"), preferred_element_type=jnp.float32)
        + jnp.dot(x_all, P("wa_x"), preferred_element_type=jnp.float32)
        + P("ba"))                                         # [2*GbN, H3+F]

    # per-node scalar score <h, q> + bq
    s = jnp.sum(h * P("q"), axis=1, keepdims=True) + P("bq")   # [2*GbN, 1]
    s_e = s[:GbN]
    s_f = s[GbN:]

    # numerically stable softmax over the 2 views (exact divide: tiny tensor,
    # approx reciprocal buys nothing and loosens numerics)
    m = jnp.maximum(s_e, s_f)
    e_e = jnp.exp(s_e - m)
    e_f = jnp.exp(s_f - m)
    den = e_e + e_f
    beta_e = e_e / den
    beta_f = e_f / den

    z = beta_e * z_e + beta_f * z_f                        # [GbN, H3]

    # ---- direct static-lane-slice stores (no lane concat, no zero-pad block) ----
    out_ref[0, :, 0:H3] = z
    out_ref[0, :, H3:2 * H3] = z_e
    out_ref[0, :, 2 * H3:3 * H3] = z_f
    out_ref[0, :, 3 * H3:3 * H3 + 1] = beta_e
    out_ref[0, :, 3 * H3 + 1:3 * H3 + 2] = beta_f
    # lanes [3*H3+2 : out_w) are never read by the wrapper and stay unwritten.


# --------------------------------------------------------------------------- #
# Parameter packing: all weights + biases + q + bq into one VMEM slab (one DMA),
# every block (including 1-row biases) 8-row aligned -> no sublane rotates.
# --------------------------------------------------------------------------- #
def _pack_params(p, F, H1, H2, H3):
    A = H3 + F
    LW = max(F, H1, H2, H3, A)               # lane width of the slab

    entries = [
        ("w1e", p["w1e"]), ("w2e", p["w2e"]), ("w3e", p["w3e"]), ("w4e", p["w4e"]),
        ("w1f", p["w1f"]), ("w2f", p["w2f"]), ("w3f", p["w3f"]), ("w4f", p["w4f"]),
        ("wa_z", p["wa"][:H3, :]),            # applied to z_v
        ("wa_x", p["wa"][H3:, :]),            # applied to x_v
        ("b1e", p["b1e"]), ("b2e", p["b2e"]), ("b3e", p["b3e"]), ("b4e", p["b4e"]),
        ("b1f", p["b1f"]), ("b2f", p["b2f"]), ("b3f", p["b3f"]), ("b4f", p["b4f"]),
        ("ba", p["ba"]), ("q", p["q"]), ("bq", p["bq"]),
    ]

    blocks = []
    offsets = {}
    cur = 0
    for name, w in entries:
        r, c = w.shape
        rpad = _round_up(r, 8)                # 8-align every block (biases too)
        blk = jnp.zeros((rpad, LW), jnp.float32).at[:r, :c].set(w)
        offsets[name] = (cur, r, c)
        blocks.append(blk)
        cur += rpad
    slab = jnp.concatenate(blocks, axis=0)    # rows already a multiple of 8
    return slab, offsets


# --------------------------------------------------------------------------- #
# Wrapper
# --------------------------------------------------------------------------- #
def encoder_atten_4layer(exec_x, exec_adj, file_x, file_adj, params,
                         *, graphs_per_step=8):
    """exec_x/file_x: [G, N, F]; exec_adj/file_adj: [G, N, N] (row-normalized).

    graphs_per_step (Gb): graphs fused per grid step. With N=16, Gb=8 gives
    128-row GCN matmuls (v5e MXU tile); use Gb=16 for 256 rows on v6e/v7x.
    Keep G/Gb >= 2 so both v7x TensorCores get a grid step.
    """
    G, N, F = exec_x.shape
    H1 = params["w1e"].shape[1]
    H2 = params["w2e"].shape[1]
    H3 = params["w4e"].shape[1]
    out_w = _round_up(3 * H3 + 2, 128)        # lane-dense output slab width

    Gb = min(graphs_per_step, G)
    S = -(-G // Gb)                           # grid steps
    Gpad = S * Gb
    if Gpad != G:                             # pad with empty graphs (sliced off later)
        pad = Gpad - G
        pad3 = lambda a: jnp.pad(a, ((0, pad), (0, 0), (0, 0)))
        exec_x, file_x = pad3(exec_x), pad3(file_x)
        exec_adj, file_adj = pad3(exec_adj), pad3(file_adj)
    GbN = Gb * N

    # features: both views stacked on the sublane axis -> one DMA, free split
    x_slab = jnp.concatenate(
        [exec_x.reshape(S, GbN, F), file_x.reshape(S, GbN, F)], axis=1)   # [S, 2*GbN, F]

    # block-diagonal adjacency per step/view, lane-packed into one slab
    def block_diag(adj):                      # [Gpad, N, N] -> [S, GbN, GbN]
        a = adj.reshape(S, Gb, N, N)
        eye = jnp.eye(Gb, dtype=adj.dtype)
        return jnp.einsum("sgij,gh->sgihj", a, eye).reshape(S, GbN, GbN)

    adj_slab = jnp.concatenate(
        [block_diag(exec_adj), block_diag(file_adj)], axis=2)             # [S, GbN, 2*GbN]

    slab, offsets = _pack_params(params, F, H1, H2, H3)

    kernel = functools.partial(
        _encoder_atten4_kernel, offsets=offsets, GbN=GbN, H3=H3)

    out = pl.pallas_call(
        kernel,
        out_shape=jax.ShapeDtypeStruct((S, GbN, out_w), jnp.float32),
        grid=(S,),
        in_specs=[
            pl.BlockSpec((1, 2 * GbN, F), lambda s: (s, 0, 0)),       # features slab
            pl.BlockSpec((1, GbN, 2 * GbN), lambda s: (s, 0, 0)),     # block-diag adj slab
            pl.BlockSpec(slab.shape, lambda s: (0, 0)),               # packed params
        ],
        out_specs=pl.BlockSpec((1, GbN, out_w), lambda s: (s, 0, 0)),
        compiler_params=pltpu.CompilerParams(
            dimension_semantics=("parallel",)),                       # shards over TCs (v7x)
    )(x_slab, adj_slab, slab)

    # free wrapper-side unpacking of the lane-dense output slab
    out = out.reshape(Gpad, N, out_w)[:G]
    z = out[:, :, 0:H3]
    z_exec = out[:, :, H3:2 * H3]
    z_file = out[:, :, 2 * H3:3 * H3]
    att = out[:, :, 3 * H3:3 * H3 + 2]
    return z, att, z_exec, z_file


# --------------------------------------------------------------------------- #
# Pure-JAX reference (mirrors the PyTorch forward, single graph)
# --------------------------------------------------------------------------- #
def reference(exec_x, exec_adj, file_x, file_adj, p):
    hp = jax.lax.Precision.HIGHEST

    def gc(x, adj, w, b):
        return jnp.dot(adj, jnp.dot(x, w, precision=hp), precision=hp) + b

    h = jax.nn.relu(gc(exec_x, exec_adj, p["w1e"], p["b1e"]))
    h = jax.nn.relu(gc(h, exec_adj, p["w2e"], p["b2e"]))
    h = jax.nn.relu(gc(h, exec_adj, p["w3e"], p["b3e"]))
    z_exec = gc(h, exec_adj, p["w4e"], p["b4e"])

    h = jax.nn.relu(gc(file_x, file_adj, p["w1f"], p["b1f"]))
    h = jax.nn.relu(gc(h, file_adj, p["w2f"], p["b2f"]))
    h = jax.nn.relu(gc(h, file_adj, p["w3f"], p["b3f"]))
    z_file = gc(h, file_adj, p["w4f"], p["b4f"])

    feat_e = jnp.concatenate([z_exec, exec_x], axis=1)
    feat_f = jnp.concatenate([z_file, file_x], axis=1)
    h_e = jnp.tanh(jnp.dot(feat_e, p["wa"], precision=hp) + p["ba"])
    h_f = jnp.tanh(jnp.dot(feat_f, p["wa"], precision=hp) + p["ba"])
    s_e = jnp.sum(h_e * p["q"], axis=1, keepdims=True) + p["bq"]
    s_f = jnp.sum(h_f * p["q"], axis=1, keepdims=True) + p["bq"]
    beta = jax.nn.softmax(jnp.concatenate([s_e, s_f], axis=1), axis=1)
    z = beta[:, 0:1] * z_exec + beta[:, 1:2] * z_file
    return z, beta, z_exec, z_file


def init_params(key, gcn_feature, gcn_hid1, gcn_hid2, gcn_hid3):
    F, H1, H2, H3 = gcn_feature, gcn_hid1, gcn_hid2, gcn_hid3
    A = H3 + F
    ks = jax.random.split(key, 20)

    def u(k, shape, fan_in):
        s = 1.0 / jnp.sqrt(fan_in)
        return jax.random.uniform(k, shape, jnp.float32, -s, s)

    return {
        "w1e": u(ks[0], (F, H1), F),   "b1e": u(ks[1], (1, H1), F),
        "w2e": u(ks[2], (H1, H2), H1), "b2e": u(ks[3], (1, H2), H1),
        "w3e": u(ks[4], (H2, H3), H2), "b3e": u(ks[5], (1, H3), H2),
        "w4e": u(ks[6], (H3, H3), H3), "b4e": u(ks[7], (1, H3), H3),
        "w1f": u(ks[8], (F, H1), F),   "b1f": u(ks[9], (1, H1), F),
        "w2f": u(ks[10], (H1, H2), H1), "b2f": u(ks[11], (1, H2), H1),
        "w3f": u(ks[12], (H2, H3), H2), "b3f": u(ks[13], (1, H3), H2),
        "w4f": u(ks[14], (H3, H3), H3), "b4f": u(ks[15], (1, H3), H3),
        "wa": u(ks[16], (A, A), A), "ba": u(ks[17], (1, A), A),
        "q": u(ks[18], (1, A), A),  "bq": u(ks[19], (1, 1), A),
    }


if __name__ == "__main__":
    # small, module-consistent shapes
    G = 32             # graphs total (batched Gb=8 per grid step -> 4 parallel steps)
    N = 16             # nodes per graph (same for exec / file views)
    gcn_feature = 32
    gcn_hid1, gcn_hid2, gcn_hid3 = 64, 48, 16

    key = jax.random.PRNGKey(0)
    k_ex, k_ea, k_fx, k_fa, k_p = jax.random.split(key, 5)

    exec_x = jax.random.normal(k_ex, (G, N, gcn_feature), jnp.float32)
    file_x = jax.random.normal(k_fx, (G, N, gcn_feature), jnp.float32)

    def make_adj(k):
        a = (jax.random.uniform(k, (G, N, N)) > 0.7).astype(jnp.float32)
        a = jnp.maximum(a, jnp.swapaxes(a, -1, -2)) + jnp.eye(N, dtype=jnp.float32)
        deg = jnp.sum(a, axis=-1, keepdims=True)
        return a / deg                                   # row-normalized

    exec_adj = make_adj(k_ea)
    file_adj = make_adj(k_fa)

    params = init_params(k_p, gcn_feature, gcn_hid1, gcn_hid2, gcn_hid3)

    outs = encoder_atten_4layer(exec_x, exec_adj, file_x, file_adj, params,
                                graphs_per_step=8)
    outs = jax.block_until_ready(outs)

    refs = jax.vmap(reference, in_axes=(0, 0, 0, 0, None))(
        exec_x, exec_adj, file_x, file_adj, params)

    for o, r in zip(outs, refs):
        assert o.shape == r.shape and o.dtype == r.dtype
        # f32 accumulation-order differences only (split Wa, block-diag adj, MXU order)
        assert jnp.allclose(o, r, atol=1e-3, rtol=1e-3), "mismatch vs reference"

    print("KERNEL_OK")
</pallas_src>

<mosaic_0001>
module attributes {stable_mosaic.version = 11 : i64} {
  func.func @_encoder_atten4_kernel(%arg0: i32, %arg1: memref<1x256x32xf32, #tpu.memory_space<vmem>>, %arg2: memref<1x128x256xf32, #tpu.memory_space<vmem>>, %arg3: memref<456x64xf32, #tpu.memory_space<vmem>>, %arg4: memref<1x128x128xf32, #tpu.memory_space<vmem>>) attributes {dimension_semantics = [#tpu.dimension_semantics<parallel>], iteration_bounds = array<i64: 4>, scalar_prefetch = 0 : i64, scratch_operands = 0 : i64, tpu.core_type = #tpu.core_type<tc>, window_params = [{transform_indices = @transform_0, window_bounds = array<i64: 1, 256, 32>}, {transform_indices = @transform_1, window_bounds = array<i64: 1, 128, 256>}, {pipeline_mode = #tpu.pipeline_mode<synchronous>, transform_indices = @transform_2, window_bounds = array<i64: 456, 64>}, {transform_indices = @transform_3, window_bounds = array<i64: 1, 128, 128>}]} {
    %c0 = arith.constant 0 : index
    %c0_0 = arith.constant 0 : index
    %c0_1 = arith.constant 0 : index
    %0 = vector.load %arg1[%c0, %c0_0, %c0_1] : memref<1x256x32xf32, #tpu.memory_space<vmem>>, vector<1x256x32xf32>
    %1 = vector.shape_cast %0 : vector<1x256x32xf32> to vector<256x32xf32>
    %2 = vector.extract_strided_slice %1 {offsets = [0, 0], sizes = [128, 32], strides = [1, 1]} : vector<256x32xf32> to vector<128x32xf32>
    %3 = vector.extract_strided_slice %1 {offsets = [128, 0], sizes = [128, 32], strides = [1, 1]} : vector<256x32xf32> to vector<128x32xf32>
    %c0_2 = arith.constant 0 : index
    %c0_3 = arith.constant 0 : index
    %c0_4 = arith.constant 0 : index
    %4 = vector.load %arg2[%c0_2, %c0_3, %c0_4] : memref<1x128x256xf32, #tpu.memory_space<vmem>>, vector<1x128x128xf32>
    %5 = vector.shape_cast %4 : vector<1x128x128xf32> to vector<128x128xf32>
    %c0_5 = arith.constant 0 : index
    %c0_6 = arith.constant 0 : index
    %c128 = arith.constant 128 : index
    %6 = vector.load %arg2[%c0_5, %c0_6, %c128] : memref<1x128x256xf32, #tpu.memory_space<vmem>>, vector<1x128x128xf32>
    %7 = vector.shape_cast %6 : vector<1x128x128xf32> to vector<128x128xf32>
    %c0_7 = arith.constant 0 : index
    %c0_8 = arith.constant 0 : index
    %8 = vector.load %arg3[%c0_7, %c0_8] : memref<456x64xf32, #tpu.memory_space<vmem>>, vector<32x64xf32>
    %c368 = arith.constant 368 : index
    %c0_9 = arith.constant 0 : index
    %9 = vector.load %arg3[%c368, %c0_9] : memref<456x64xf32, #tpu.memory_space<vmem>>, vector<1x64xf32>
    %cst = arith.constant dense<0.000000e+00> : vector<128x64xf32>
    %10 = tpu.matmul %2, %8, %cst {dimension_numbers = #tpu.dot_dimension_numbers<[1], [0], [0], [1], [0, 0, 1, 1], [], []>} : vector<128x32xf32>, vector<32x64xf32>, vector<128x64xf32> -> vector<128x64xf32>
    %cst_10 = arith.constant dense<0.000000e+00> : vector<128x64xf32>
    %11 = tpu.matmul %5, %10, %cst_10 {dimension_numbers = #tpu.dot_dimension_numbers<[1], [0], [0], [1], [0, 0, 1, 1], [], []>} : vector<128x128xf32>, vector<128x64xf32>, vector<128x64xf32> -> vector<128x64xf32>
    %12 = vector.broadcast %9 : vector<1x64xf32> to vector<128x64xf32>
    %13 = arith.addf %11, %12 : vector<128x64xf32>
    %cst_11 = arith.constant 0.000000e+00 : f32
    %14 = vector.broadcast %cst_11 : f32 to vector<128x64xf32>
    %15 = arith.maximumf %13, %14 : vector<128x64xf32>
    %c32 = arith.constant 32 : index
    %c0_12 = arith.constant 0 : index
    %16 = vector.load %arg3[%c32, %c0_12] : memref<456x64xf32, #tpu.memory_space<vmem>>, vector<64x48xf32>
    %c376 = arith.constant 376 : index
    %c0_13 = arith.constant 0 : index
    %17 = vector.load %arg3[%c376, %c0_13] : memref<456x64xf32, #tpu.memory_space<vmem>>, vector<1x48xf32>
    %cst_14 = arith.constant dense<0.000000e+00> : vector<128x48xf32>
    %18 = tpu.matmul %15, %16, %cst_14 {dimension_numbers = #tpu.dot_dimension_numbers<[1], [0], [0], [1], [0, 0, 1, 1], [], []>} : vector<128x64xf32>, vector<64x48xf32>, vector<128x48xf32> -> vector<128x48xf32>
    %cst_15 = arith.constant dense<0.000000e+00> : vector<128x48xf32>
    %19 = tpu.matmul %5, %18, %cst_15 {dimension_numbers = #tpu.dot_dimension_numbers<[1], [0], [0], [1], [0, 0, 1, 1], [], []>} : vector<128x128xf32>, vector<128x48xf32>, vector<128x48xf32> -> vector<128x48xf32>
    %20 = vector.broadcast %17 : vector<1x48xf32> to vector<128x48xf32>
    %21 = arith.addf %19, %20 : vector<128x48xf32>
    %cst_16 = arith.constant 0.000000e+00 : f32
    %22 = vector.broadcast %cst_16 : f32 to vector<128x48xf32>
    %23 = arith.maximumf %21, %22 : vector<128x48xf32>
    %c96 = arith.constant 96 : index
    %c0_17 = arith.constant 0 : index
    %24 = vector.load %arg3[%c96, %c0_17] : memref<456x64xf32, #tpu.memory_space<vmem>>, vector<48x16xf32>
    %c384 = arith.constant 384 : index
    %c0_18 = arith.constant 0 : index
    %25 = vector.load %arg3[%c384, %c0_18] : memref<456x64xf32, #tpu.memory_space<vmem>>, vector<1x16xf32>
    %cst_19 = arith.constant dense<0.000000e+00> : vector<128x16xf32>
    %26 = tpu.matmul %23, %24, %cst_19 {dimension_numbers = #tpu.dot_dimension_numbers<[1], [0], [0], [1], [0, 0, 1, 1], [], []>} : vector<128x48xf32>, vector<48x16xf32>, vector<128x16xf32> -> vector<128x16xf32>
    %cst_20 = arith.constant dense<0.000000e+00> : vector<128x16xf32>
    %27 = tpu.matmul %5, %26, %cst_20 {dimension_numbers = #tpu.dot_dimension_numbers<[1], [0], [0], [1], [0, 0, 1, 1], [], []>} : vector<128x128xf32>, vector<128x16xf32>, vector<128x16xf32> -> vector<128x16xf32>
    %28 = vector.broadcast %25 : vector<1x16xf32> to vector<128x16xf32>
    %29 = arith.addf %27, %28 : vector<128x16xf32>
    %cst_21 = arith.constant 0.000000e+00 : f32
    %30 = vector.broadcast %cst_21 : f32 to vector<128x16xf32>
    %31 = arith.maximumf %29, %30 : vector<128x16xf32>
    %c144 = arith.constant 144 : index
    %c0_22 = arith.constant 0 : index
    %32 = vector.load %arg3[%c144, %c0_22] : memref<456x64xf32, #tpu.memory_space<vmem>>, vector<16x16xf32>
    %c392 = arith.constant 392 : index
    %c0_23 = arith.constant 0 : index
    %33 = vector.load %arg3[%c392, %c0_23] : memref<456x64xf32, #tpu.memory_space<vmem>>, vector<1x16xf32>
    %cst_24 = arith.constant dense<0.000000e+00> : vector<128x16xf32>
    %34 = tpu.matmul %31, %32, %cst_24 {dimension_numbers = #tpu.dot_dimension_numbers<[1], [0], [0], [1], [0, 0, 1, 1], [], []>} : vector<128x16xf32>, vector<16x16xf32>, vector<128x16xf32> -> vector<128x16xf32>
    %cst_25 = arith.constant dense<0.000000e+00> : vector<128x16xf32>
    %35 = tpu.matmul %5, %34, %cst_25 {dimension_numbers = #tpu.dot_dimension_numbers<[1], [0], [0], [1], [0, 0, 1, 1], [], []>} : vector<128x128xf32>, vector<128x16xf32>, vector<128x16xf32> -> vector<128x16xf32>
    %36 = vector.broadcast %33 : vector<1x16xf32> to vector<128x16xf32>
    %37 = arith.addf %35, %36 : vector<128x16xf32>
    %c160 = arith.constant 160 : index
    %c0_26 = arith.constant 0 : index
    %38 = vector.load %arg3[%c160, %c0_26] : memref<456x64xf32, #tpu.memory_space<vmem>>, vector<32x64xf32>
    %c400 = arith.constant 400 : index
    %c0_27 = arith.constant 0 : index
    %39 = vector.load %arg3[%c400, %c0_27] : memref<456x64xf32, #tpu.memory_space<vmem>>, vector<1x64xf32>
    %cst_28 = arith.constant dense<0.000000e+00> : vector<128x64xf32>
    %40 = tpu.matmul %3, %38, %cst_28 {dimension_numbers = #tpu.dot_dimension_numbers<[1], [0], [0], [1], [0, 0, 1, 1], [], []>} : vector<128x32xf32>, vector<32x64xf32>, vector<128x64xf32> -> vector<128x64xf32>
    %cst_29 = arith.constant dense<0.000000e+00> : vector<128x64xf32>
    %41 = tpu.matmul %7, %40, %cst_29 {dimension_numbers = #tpu.dot_dimension_numbers<[1], [0], [0], [1], [0, 0, 1, 1], [], []>} : vector<128x128xf32>, vector<128x64xf32>, vector<128x64xf32> -> vector<128x64xf32>
    %42 = vector.broadcast %39 : vector<1x64xf32> to vector<128x64xf32>
    %43 = arith.addf %41, %42 : vector<128x64xf32>
    %cst_30 = arith.constant 0.000000e+00 : f32
    %44 = vector.broadcast %cst_30 : f32 to vector<128x64xf32>
    %45 = arith.maximumf %43, %44 : vector<128x64xf32>
    %c192 = arith.constant 192 : index
    %c0_31 = arith.constant 0 : index
    %46 = vector.load %arg3[%c192, %c0_31] : memref<456x64xf32, #tpu.memory_space<vmem>>, vector<64x48xf32>
    %c408 = arith.constant 408 : index
    %c0_32 = arith.constant 0 : index
    %47 = vector.load %arg3[%c408, %c0_32] : memref<456x64xf32, #tpu.memory_space<vmem>>, vector<1x48xf32>
    %cst_33 = arith.constant dense<0.000000e+00> : vector<128x48xf32>
    %48 = tpu.matmul %45, %46, %cst_33 {dimension_numbers = #tpu.dot_dimension_numbers<[1], [0], [0], [1], [0, 0, 1, 1], [], []>} : vector<128x64xf32>, vector<64x48xf32>, vector<128x48xf32> -> vector<128x48xf32>
    %cst_34 = arith.constant dense<0.000000e+00> : vector<128x48xf32>
    %49 = tpu.matmul %7, %48, %cst_34 {dimension_numbers = #tpu.dot_dimension_numbers<[1], [0], [0], [1], [0, 0, 1, 1], [], []>} : vector<128x128xf32>, vector<128x48xf32>, vector<128x48xf32> -> vector<128x48xf32>
    %50 = vector.broadcast %47 : vector<1x48xf32> to vector<128x48xf32>
    %51 = arith.addf %49, %50 : vector<128x48xf32>
    %cst_35 = arith.constant 0.000000e+00 : f32
    %52 = vector.broadcast %cst_35 : f32 to vector<128x48xf32>
    %53 = arith.maximumf %51, %52 : vector<128x48xf32>
    %c256 = arith.constant 256 : index
    %c0_36 = arith.constant 0 : index
    %54 = vector.load %arg3[%c256, %c0_36] : memref<456x64xf32, #tpu.memory_space<vmem>>, vector<48x16xf32>
    %c416 = arith.constant 416 : index
    %c0_37 = arith.constant 0 : index
    %55 = vector.load %arg3[%c416, %c0_37] : memref<456x64xf32, #tpu.memory_space<vmem>>, vector<1x16xf32>
    %cst_38 = arith.constant dense<0.000000e+00> : vector<128x16xf32>
    %56 = tpu.matmul %53, %54, %cst_38 {dimension_numbers = #tpu.dot_dimension_numbers<[1], [0], [0], [1], [0, 0, 1, 1], [], []>} : vector<128x48xf32>, vector<48x16xf32>, vector<128x16xf32> -> vector<128x16xf32>
    %cst_39 = arith.constant dense<0.000000e+00> : vector<128x16xf32>
    %57 = tpu.matmul %7, %56, %cst_39 {dimension_numbers = #tpu.dot_dimension_numbers<[1], [0], [0], [1], [0, 0, 1, 1], [], []>} : vector<128x128xf32>, vector<128x16xf32>, vector<128x16xf32> -> vector<128x16xf32>
    %58 = vector.broadcast %55 : vector<1x16xf32> to vector<128x16xf32>
    %59 = arith.addf %57, %58 : vector<128x16xf32>
    %cst_40 = arith.constant 0.000000e+00 : f32
    %60 = vector.broadcast %cst_40 : f32 to vector<128x16xf32>
    %61 = arith.maximumf %59, %60 : vector<128x16xf32>
    %c304 = arith.constant 304 : index
    %c0_41 = arith.constant 0 : index
    %62 = vector.load %arg3[%c304, %c0_41] : memref<456x64xf32, #tpu.memory_space<vmem>>, vector<16x16xf32>
    %c424 = arith.constant 424 : index
    %c0_42 = arith.constant 0 : index
    %63 = vector.load %arg3[%c424, %c0_42] : memref<456x64xf32, #tpu.memory_space<vmem>>, vector<1x16xf32>
    %cst_43 = arith.constant dense<0.000000e+00> : vector<128x16xf32>
    %64 = tpu.matmul %61, %62, %cst_43 {dimension_numbers = #tpu.dot_dimension_numbers<[1], [0], [0], [1], [0, 0, 1, 1], [], []>} : vector<128x16xf32>, vector<16x16xf32>, vector<128x16xf32> -> vector<128x16xf32>
    %cst_44 = arith.constant dense<0.000000e+00> : vector<128x16xf32>
    %65 = tpu.matmul %7, %64, %cst_44 {dimension_numbers = #tpu.dot_dimension_numbers<[1], [0], [0], [1], [0, 0, 1, 1], [], []>} : vector<128x128xf32>, vector<128x16xf32>, vector<128x16xf32> -> vector<128x16xf32>
    %66 = vector.broadcast %63 : vector<1x16xf32> to vector<128x16xf32>
    %67 = arith.addf %65, %66 : vector<128x16xf32>
    %68 = tpu.concatenate %37, %67 in 0 : vector<128x16xf32>, vector<128x16xf32> -> vector<256x16xf32>
    %c320 = arith.constant 320 : index
    %c0_45 = arith.constant 0 : index
    %69 = vector.load %arg3[%c320, %c0_45] : memref<456x64xf32, #tpu.memory_space<vmem>>, vector<16x48xf32>
    %cst_46 = arith.constant dense<0.000000e+00> : vector<256x48xf32>
    %70 = tpu.matmul %68, %69, %cst_46 {dimension_numbers = #tpu.dot_dimension_numbers<[1], [0], [0], [1], [0, 0, 1, 1], [], []>} : vector<256x16xf32>, vector<16x48xf32>, vector<256x48xf32> -> vector<256x48xf32>
    %c336 = arith.constant 336 : index
    %c0_47 = arith.constant 0 : index
    %71 = vector.load %arg3[%c336, %c0_47] : memref<456x64xf32, #tpu.memory_space<vmem>>, vector<32x48xf32>
    %cst_48 = arith.constant dense<0.000000e+00> : vector<256x48xf32>
    %72 = tpu.matmul %1, %71, %cst_48 {dimension_numbers = #tpu.dot_dimension_numbers<[1], [0], [0], [1], [0, 0, 1, 1], [], []>} : vector<256x32xf32>, vector<32x48xf32>, vector<256x48xf32> -> vector<256x48xf32>
    %73 = arith.addf %70, %72 : vector<256x48xf32>
    %c432 = arith.constant 432 : index
    %c0_49 = arith.constant 0 : index
    %74 = vector.load %arg3[%c432, %c0_49] : memref<456x64xf32, #tpu.memory_space<vmem>>, vector<1x48xf32>
    %75 = vector.broadcast %74 : vector<1x48xf32> to vector<256x48xf32>
    %76 = arith.addf %73, %75 : vector<256x48xf32>
    %77 = math.tanh %76 : vector<256x48xf32>
    %c440 = arith.constant 440 : index
    %c0_50 = arith.constant 0 : index
    %78 = vector.load %arg3[%c440, %c0_50] : memref<456x64xf32, #tpu.memory_space<vmem>>, vector<1x48xf32>
    %79 = vector.broadcast %78 : vector<1x48xf32> to vector<256x48xf32>
    %80 = arith.mulf %77, %79 : vector<256x48xf32>
    %cst_51 = arith.constant dense<0.000000e+00> : vector<256xf32>
    %81 = vector.multi_reduction <add>, %80, %cst_51 [1] : vector<256x48xf32> to vector<256xf32>
    %82 = vector.shape_cast %81 : vector<256xf32> to vector<256x1xf32>
    %c448 = arith.constant 448 : index
    %c0_52 = arith.constant 0 : index
    %83 = vector.load %arg3[%c448, %c0_52] : memref<456x64xf32, #tpu.memory_space<vmem>>, vector<1x1xf32>
    %84 = vector.broadcast %83 : vector<1x1xf32> to vector<256x1xf32>
    %85 = arith.addf %82, %84 : vector<256x1xf32>
    %86 = vector.extract_strided_slice %85 {offsets = [0, 0], sizes = [128, 1], strides = [1, 1]} : vector<256x1xf32> to vector<128x1xf32>
    %87 = vector.extract_strided_slice %85 {offsets = [128, 0], sizes = [128, 1], strides = [1, 1]} : vector<256x1xf32> to vector<128x1xf32>
    %88 = arith.maximumf %86, %87 : vector<128x1xf32>
    %89 = arith.subf %86, %88 : vector<128x1xf32>
    %90 = math.exp %89 : vector<128x1xf32>
    %91 = arith.subf %87, %88 : vector<128x1xf32>
    %92 = math.exp %91 : vector<128x1xf32>
    %93 = arith.addf %90, %92 : vector<128x1xf32>
    %94 = arith.divf %90, %93 : vector<128x1xf32>
    %95 = arith.divf %92, %93 : vector<128x1xf32>
    %96 = vector.broadcast %94 : vector<128x1xf32> to vector<128x16xf32>
    %97 = arith.mulf %96, %37 : vector<128x16xf32>
    %98 = vector.broadcast %95 : vector<128x1xf32> to vector<128x16xf32>
    %99 = arith.mulf %98, %67 : vector<128x16xf32>
    %100 = arith.addf %97, %99 : vector<128x16xf32>
    %c0_53 = arith.constant 0 : index
    %c0_54 = arith.constant 0 : index
    %c0_55 = arith.constant 0 : index
    %101 = vector.load %arg4[%c0_53, %c0_54, %c0_55] : memref<1x128x128xf32, #tpu.memory_space<vmem>>, vector<1x128x16xf32>
    %102 = vector.shape_cast %101 : vector<1x128x16xf32> to vector<128x16xf32>
    %103 = vector.shape_cast %100 : vector<128x16xf32> to vector<1x128x16xf32>
    tpu.vector_store %arg4[%c0_53, %c0_54, %c0_55], %103 {strides = array<i32>} : memref<1x128x128xf32, #tpu.memory_space<vmem>>, vector<1x128x16xf32>,
    %c0_56 = arith.constant 0 : index
    %c0_57 = arith.constant 0 : index
    %c16 = arith.constant 16 : index
    %104 = vector.load %arg4[%c0_56, %c0_57, %c16] : memref<1x128x128xf32, #tpu.memory_space<vmem>>, vector<1x128x16xf32>
    %105 = vector.shape_cast %104 : vector<1x128x16xf32> to vector<128x16xf32>
    %106 = vector.shape_cast %37 : vector<128x16xf32> to vector<1x128x16xf32>
    tpu.vector_store %arg4[%c0_56, %c0_57, %c16], %106 {strides = array<i32>} : memref<1x128x128xf32, #tpu.memory_space<vmem>>, vector<1x128x16xf32>,
    %c0_58 = arith.constant 0 : index
    %c0_59 = arith.constant 0 : index
    %c32_60 = arith.constant 32 : index
    %107 = vector.load %arg4[%c0_58, %c0_59, %c32_60] : memref<1x128x128xf32, #tpu.memory_space<vmem>>, vector<1x128x16xf32>
    %108 = vector.shape_cast %107 : vector<1x128x16xf32> to vector<128x16xf32>
    %109 = vector.shape_cast %67 : vector<128x16xf32> to vector<1x128x16xf32>
    tpu.vector_store %arg4[%c0_58, %c0_59, %c32_60], %109 {strides = array<i32>} : memref<1x128x128xf32, #tpu.memory_space<vmem>>, vector<1x128x16xf32>,
    %c0_61 = arith.constant 0 : index
    %c0_62 = arith.constant 0 : index
    %c48 = arith.constant 48 : index
    %110 = vector.load %arg4[%c0_61, %c0_62, %c48] : memref<1x128x128xf32, #tpu.memory_space<vmem>>, vector<1x128x1xf32>
    %111 = vector.shape_cast %110 : vector<1x128x1xf32> to vector<128x1xf32>
    %112 = vector.shape_cast %94 : vector<128x1xf32> to vector<1x128x1xf32>
    tpu.vector_store %arg4[%c0_61, %c0_62, %c48], %112 {strides = array<i32>} : memref<1x128x128xf32, #tpu.memory_space<vmem>>, vector<1x128x1xf32>,
    %c0_63 = arith.constant 0 : index
    %c0_64 = arith.constant 0 : index
    %c49 = arith.constant 49 : index
    %113 = vector.load %arg4[%c0_63, %c0_64, %c49] : memref<1x128x128xf32, #tpu.memory_space<vmem>>, vector<1x128x1xf32>
    %114 = vector.shape_cast %113 : vector<1x128x1xf32> to vector<128x1xf32>
    %115 = vector.shape_cast %95 : vector<128x1xf32> to vector<1x128x1xf32>
    tpu.vector_store %arg4[%c0_63, %c0_64, %c49], %115 {strides = array<i32>} : memref<1x128x128xf32, #tpu.memory_space<vmem>>, vector<1x128x1xf32>,
    return
  }
  func.func @transform_0(%arg0: i32) -> (i32, i32, i32) {
    %c0_i32 = arith.constant 0 : i32
    %c0_i32_0 = arith.constant 0 : i32
    %c0_i32_1 = arith.constant 0 : i32
    return %arg0, %c0_i32, %c0_i32_0 : i32, i32, i32
  }
  func.func @transform_1(%arg0: i32) -> (i32, i32, i32) {
    %c0_i32 = arith.constant 0 : i32
    %c0_i32_0 = arith.constant 0 : i32
    %c0_i32_1 = arith.constant 0 : i32
    return %arg0, %c0_i32, %c0_i32_0 : i32, i32, i32
  }
  func.func @transform_2(%arg0: i32) -> (i32, i32) {
    %c0_i32 = arith.constant 0 : i32
    %c0_i32_0 = arith.constant 0 : i32
    %c0_i32_1 = arith.constant 0 : i32
    return %c0_i32, %c0_i32_0 : i32, i32
  }
  func.func @transform_3(%arg0: i32) -> (i32, i32, i32) {
    %c0_i32 = arith.constant 0 : i32
    %c0_i32_0 = arith.constant 0 : i32
    %c0_i32_1 = arith.constant 0 : i32
    return %arg0, %c0_i32, %c0_i32_0 : i32, i32, i32
  }
}

</mosaic_0001>

<bundles_post_ra>
// kernel: tpu_custom_call.1
= control target key start
LH: loop header
LB: loop body
LE: loop exit
PB: predicated region body
PF: predicated region fallthrough
CT: control target
= control target key end

     0   :  { %8 = vsyncpa [#allocation3], 0  ;;  %s8159_s0 = inlined_call_operand.vmem [shape: f32[4,256,32], index: 0, kind: input, shape index: {}]   ;;  %s8160_s1 = inlined_call_operand.vmem [shape: f32[4,128,256], index: 1, kind: input, shape index: {}]   ;;  %s8161_s2 = inlined_call_operand.vmem [shape: f32[456,64], index: 2, kind: input, shape index: {}]   ;;  %s8162_s3 = inlined_call_operand.hbm [shape: f32[4,128,128], index: 3, kind: output, shape index: {}]  }
   0x1   :  { %10 = vsyncpa [#allocation3 + $0x1], 0  ;;  %s6594_s12 = smov 0   ;;  %s6596_s13 = smov 0  }
   0x2   :  { %s6598_s14 = smov 0   ;;  %s6600_s15 = smov 0  }
   0x3 LB: > { %s6615_s16 = sadd.s32 4294967295, %s6564_s15   ;;  %s4676_s17 = sadd.s32 4294967294, %s6564_s15   ;;  %s6564_s15 = sphi %s6600_s15, %s8259_s15   ;;  %s6560_s14 = sphi %s6598_s14, %s8258_s14   ;;  %s6556_s13 = sphi %s6596_s13, %s8257_s13   ;;  %s6552_s12 = sphi %s6594_s12, %s8256_s12  }
   0x4   : > { %s6619_s18 = sadd.s32 1, %s6564_s15   ;;  %s96_s19 = sadd.s32 1, %s6560_s14 }
   0x5   : > { %s93_s20 = ssub.s32 %s6564_s15, %s6619_s18  ;;  %p106_p0 = scmp.ne.s32.totalorder %s6560_s14, %s6556_s13 }
   0x6   : > { %p94_p1 = scmp.eq.s32.totalorder %s93_s20, 0  ;;  %p107_p2 = scmp.eq.s32.totalorder %s6615_s16, 3 }
   0x7   : > { %p112_p3 = scmp.ne.s32.totalorder %s6556_s13, %s6552_s12  ;;  %p113_p4 = scmp.eq.s32.totalorder %s4676_s17, 3 }
   0x8   : > { %s6630_s21 = scalar_select %p94_p1, %s6560_s14, %s96_s19  }
   0x9   : > { %p6632_p5 = por %p107_p2, %p106_p0  ;;  %p6636_p6 = por %p113_p4, %p112_p3 }
   0xa   : > { %p4679_p7 = scmp.ge.s32.totalorder %s6564_s15, 1  ;;  %p150_p8 = scmp.lt.s32.totalorder %s6564_s15, 5 }
   0xc   : > { %p151_p9 = pnand %p4679_p7, %p150_p8 }
   0xe   : > { %154 = sbr.rel (%p151_p9) target bundleno = 3896 (0xf38), region = 32 }
  0x13   : > { %v256_v0 = vld [vmem:[%s8161_s2 + $0x18] sm:$0xff]  ;;  %v255_v1 = vld [vmem:[%s8161_s2 + $0x10] sm:$0xff]  ;;  %p179_p10 = scmp.lt.s32.totalorder %s6615_s16, 3  ;;  %v254_v2 = vld [vmem:[%s8161_s2 + $0x8] sm:$0xff]  ;;  %vm258_vm0 = vcmask 261120   ;;  %vm626_vm1 = vcmask 523264  }
  0x14   : > { %5390 = vmatprep.subr.mxu0 %v256_v0  ;;  %v253_v3 = vld [vmem:[%s8161_s2] sm:$0xff]  ;;  %v624_v21 = vld [vmem:[%s8161_s2 + $0x58] sm:$0xff]  ;;  %v623_v22 = vld [vmem:[%s8161_s2 + $0x50] sm:$0xff]  ;;  %vm992_vm2 = vcmask 392192   ;;  %vm1354_vm3 = vcmask 130048   ;;  %s6566_s19 = smov 16  }
  0x15   : > { %5391 = vmatpush3.msra.mxu0 %v256_v0  ;;  %s6653_s30 = scalar_select %p179_p10, %s6615_s16, 3  ;;  %v622_v23 = vld [vmem:[%s8161_s2 + $0x48] sm:$0xff]  ;;  %v621_v24 = vld [vmem:[%s8161_s2 + $0x40] sm:$0xff]  ;;  %v620_v25 = vld [vmem:[%s8161_s2 + $0x38] sm:$0xff]  ;;  %vm4376_vm4 = vcmask 261248   ;;  %vm4441_vm5 = vcmask 392448  }
  0x16   : > { %5392 = vmatprep.subr.mxu0 %v255_v1  ;;  %v619_v26 = vld [vmem:[%s8161_s2 + $0x30] sm:$0xff]  ;;  %v618_v58 = vld [vmem:[%s8161_s2 + $0x28] sm:$0xff]  ;;  %v617_v59 = vld [vmem:[%s8161_s2 + $0x20] sm:$0xff]  ;;  %s6569_s5 = smov 48   ;;  %s176_s7 = sand.u32 1, %s6556_s13   ;;  %vm4506_vm6 = vcmask 400768  }
  0x17   : > { %5393 = vmatpush3.msra.mxu0 %v255_v1  ;;  %s4893_s6 = sshll.u32 %s6653_s30, 8  ;;  %v4701_v60 = vld [vmem:[%s8161_s2 + $0x170] ss:$0 sm:$0xff]  ;;  %s4680_s8 = sshll.u32 %s176_s7, 7  ;;  %vm4571_vm7 = vcmask 408968  }
  0x18   : > { %5394 = vmatprep.subr.mxu0 %v254_v2  ;;  %s6664_s9 = scalar_lea.vmem %s8159_s0, %s4893_s6  ;;  %s6703_s17 = scalar_lea.vmem %s8160_s1, %s4893_s6 }
  0x19   : > { %5395 = vmatpush3.msra.mxu0 %v254_v2  ;;  %v189_v4 = vld [vmem:[%s6664_s9] sm:$0xff]  ;;  %v190_v5 = vld [vmem:[%s6664_s9 + $0x8] sm:$0xff]  ;;  %v191_v6 = vld [vmem:[%s6664_s9 + $0x10] sm:$0xff]  ;;  %s6570_s6 = smov 49   ;;  %s7881_s10 = scalar_lea.vmem [#allocation2], %s4680_s8 }
  0x1a   : > { %5396 = vmatprep.subr.mxu0 %v253_v3  ;;  %5398 = vmatprep.mubr.msk.f32.mxu0 %vm258_vm0, %v189_v4  ;;  %v192_v7 = vld [vmem:[%s6664_s9 + $0x18] sm:$0xff]  ;;  %v193_v8 = vld [vmem:[%s6664_s9 + $0x20] sm:$0xff]  ;;  %v194_v9 = vld [vmem:[%s6664_s9 + $0x28] sm:$0xff]  ;;  %s4895_s11 = sshll.u32 %s6615_s16, 11  ;;  %s8119_s25 = scalar_lea.sflag [#allocation3], %s176_s7 }
  0x1b   : > { %5397 = vmatpush3.msra.mxu0 %v253_v3  ;;  %v195_v10 = vld [vmem:[%s6664_s9 + $0x30] sm:$0xff]  ;;  %v196_v11 = vld [vmem:[%s6664_s9 + $0x38] sm:$0xff]  ;;  %v197_v12 = vld [vmem:[%s6664_s9 + $0x40] sm:$0xff] }
  0x1c   : > { %5399 = vmatmul.mubr.msk.f32.vlgmr.msra.gmra.mxu0 %vm258_vm0, %v190_v5  ;;  %v198_v13 = vld [vmem:[%s6664_s9 + $0x48] sm:$0xff]  ;;  %v199_v14 = vld [vmem:[%s6664_s9 + $0x50] sm:$0xff]  ;;  %v200_v15 = vld [vmem:[%s6664_s9 + $0x58] sm:$0xff]  ;;  %5478 = vmatprep.subr.mxu0 %v624_v21 }
  0x1d   : > { %5401 = vmatprep.mubr.msk.f32.mxu0 %vm258_vm0, %v191_v6  ;;  %v201_v16 = vld [vmem:[%s6664_s9 + $0x60] sm:$0xff]  ;;  %v202_v17 = vld [vmem:[%s6664_s9 + $0x68] sm:$0xff]  ;;  %v203_v18 = vld [vmem:[%s6664_s9 + $0x70] sm:$0xff]  ;;  %5479 = vmatpush3.msra.mxu0 %v624_v21 }
  0x1e   : > { %v204_v19 = vld [vmem:[%s6664_s9 + $0x78] sm:$0xff]  ;;  %v6706_v20 = vld [vmem:[%s6703_s17] sm:$0xff]  ;;  %5480 = vmatprep.subr.mxu0 %v623_v22  ;;  %v6728_v43 = vld [vmem:[%s6703_s17 + $0x10] sm:$0xff] }
  0x1f   : > { %5454 = vmatprep.mubr.f32.mxu1 %v6706_v20  ;;  %5481 = vmatpush3.msra.mxu0 %v623_v22  ;;  %v6731_v44 = vld [vmem:[%s6703_s17 + $0x20] sm:$0xff]  ;;  %v6736_v45 = vld [vmem:[%s6703_s17 + $0x30] sm:$0xff] }
  0x20   : > { %5402 = vmatmul.mubr.msk.f32.gmra.mxu0 %vm258_vm0, %v192_v7  ;;  %5482 = vmatprep.subr.mxu0 %v622_v23  ;;  %v6739_v46 = vld [vmem:[%s6703_s17 + $0x40] sm:$0xff]  ;;  %v6744_v47 = vld [vmem:[%s6703_s17 + $0x50] sm:$0xff] }
  0x21   : > { %5404 = vmatprep.mubr.msk.f32.mxu0 %vm258_vm0, %v193_v8  ;;  %5483 = vmatpush3.msra.mxu0 %v622_v23  ;;  %v6747_v48 = vld [vmem:[%s6703_s17 + $0x60] sm:$0xff]  ;;  %v6752_v49 = vld [vmem:[%s6703_s17 + $0x70] sm:$0xff] }
  0x22   : > { %5484 = vmatprep.subr.mxu0 %v621_v24  ;;  %v6755_v50 = vld [vmem:[%s6703_s17 + $0x80] sm:$0xff]  ;;  %v6760_v51 = vld [vmem:[%s6703_s17 + $0x90] sm:$0xff] }
  0x23   : > { %5485 = vmatpush3.msra.mxu0 %v621_v24  ;;  %v6763_v52 = vld [vmem:[%s6703_s17 + $0xa0] sm:$0xff]  ;;  %v6768_v53 = vld [vmem:[%s6703_s17 + $0xb0] sm:$0xff] }
  0x24   : > { %5405 = vmatmul.mubr.msk.f32.gmra.mxu0 %vm258_vm0, %v194_v9  ;;  %5486 = vmatprep.subr.mxu0 %v620_v25  ;;  %v6771_v54 = vld [vmem:[%s6703_s17 + $0xc0] sm:$0xff]  ;;  %v6776_v55 = vld [vmem:[%s6703_s17 + $0xd0] sm:$0xff] }
  0x25   : > { %5407 = vmatprep.mubr.msk.f32.mxu0 %vm258_vm0, %v195_v10  ;;  %5487 = vmatpush3.msra.mxu0 %v620_v25  ;;  %v6779_v56 = vld [vmem:[%s6703_s17 + $0xe0] sm:$0xff]  ;;  %v6784_v57 = vld [vmem:[%s6703_s17 + $0xf0] sm:$0xff] }
  0x26   : > { %5488 = vmatprep.subr.mxu0 %v619_v26 }
  0x27   : > { %5489 = vmatpush3.msra.mxu0 %v619_v26 }
  0x28   : > { %5408 = vmatmul.mubr.msk.f32.gmra.mxu0 %vm258_vm0, %v196_v11  ;;  %5490 = vmatprep.subr.mxu0 %v618_v58 }
  0x29   : > { %5410 = vmatprep.mubr.msk.f32.mxu0 %vm258_vm0, %v197_v12  ;;  %5491 = vmatpush3.msra.mxu0 %v618_v58 }
  0x2a   : > { %5492 = vmatprep.subr.mxu0 %v617_v59 }
  0x2b   : > { %5493 = vmatpush3.msra.mxu0 %v617_v59 }
  0x2c   : > { %5411 = vmatmul.mubr.msk.f32.gmra.mxu0 %vm258_vm0, %v198_v13 }
  0x2d   : > { %5413 = vmatprep.mubr.msk.f32.mxu0 %vm258_vm0, %v199_v14 }
  0x30   : > { %5414 = vmatmul.mubr.msk.f32.gmra.mxu0 %vm258_vm0, %v200_v15 }
  0x31   : > { %5416 = vmatprep.mubr.msk.f32.mxu0 %vm258_vm0, %v201_v16 }
  0x34   : > { %5417 = vmatmul.mubr.msk.f32.gmra.mxu0 %vm258_vm0, %v202_v17 }
  0x35   : > { %5419 = vmatprep.mubr.msk.f32.mxu0 %vm258_vm0, %v203_v18 }
  0x38   : > { %5420 = vmatmul.mubr.msk.f32.gmra.mxu0 %vm258_vm0, %v204_v19 }
  0xdc   : > { %v5400_v27 = vpop.f32.mrf.mxu0 }
  0xde   : > { %v373_v28 = vpop.f32.mrf.mxu0 }
  0xe0   : > { %v5403_v29 = vpop.f32.mrf.mxu0 }
  0xe2   : > { %v383_v30 = vpop.f32.mrf.mxu0 }
  0xe4   : > { %v5406_v31 = vpop.f32.mrf.mxu0 }
  0xe6   : > { %v393_v32 = vpop.f32.mrf.mxu0 }
  0xe8   : > { %v5409_v33 = vpop.f32.mrf.mxu0 }
  0xea   : > { %v403_v34 = vpop.f32.mrf.mxu0 }
  0xec   : > { %v5412_v35 = vpop.f32.mrf.mxu0 }
  0xee   : > { %v413_v36 = vpop.f32.mrf.mxu0 }
  0xf0   : > { %v5415_v37 = vpop.f32.mrf.mxu0 }
  0xf2   : > { %v423_v38 = vpop.f32.mrf.mxu0 }
  0xf4   : > { %v5418_v39 = vpop.f32.mrf.mxu0 }
  0xf6   : > { %v433_v40 = vpop.f32.mrf.mxu0 }
  0xf8   : > { %v5421_v41 = vpop.f32.mrf.mxu0 }
  0xf9   : > { %5422 = vmatprep.subr.mxu1 %v5421_v41 }
  0xfa   : > { %v443_v42 = vpop.f32.mrf.mxu0  ;;  %5423 = vmatpush3.msra.mxu1 %v5421_v41 }
  0xfb   : > { %5424 = vmatprep.subr.mxu1 %v443_v42 }
  0xfc   : > { %5425 = vmatpush3.msra.mxu1 %v443_v42 }
  0xfd   : > { %5426 = vmatprep.subr.mxu1 %v5418_v39 }
  0xfe   : > { %5427 = vmatpush3.msra.mxu1 %v5418_v39 }
  0xff   : > { %5428 = vmatprep.subr.mxu1 %v433_v40 }
 0x100   : > { %5429 = vmatpush3.msra.mxu1 %v433_v40 }
 0x101   : > { %5430 = vmatprep.subr.mxu1 %v5415_v37 }
 0x102   : > { %5431 = vmatpush3.msra.mxu1 %v5415_v37 }
 0x103   : > { %5432 = vmatprep.subr.mxu1 %v423_v38 }
 0x104   : > { %5433 = vmatpush3.msra.mxu1 %v423_v38 }
 0x105   : > { %5434 = vmatprep.subr.mxu1 %v5412_v35 }
 0x106   : > { %5435 = vmatpush3.msra.mxu1 %v5412_v35 }
 0x107   : > { %5436 = vmatprep.subr.mxu1 %v413_v36 }
 0x108   : > { %5437 = vmatpush3.msra.mxu1 %v413_v36 }
 0x109   : > { %5438 = vmatprep.subr.mxu1 %v5409_v33 }
 0x10a   : > { %5439 = vmatpush3.msra.mxu1 %v5409_v33 }
 0x10b   : > { %5440 = vmatprep.subr.mxu1 %v403_v34 }
 0x10c   : > { %5441 = vmatpush3.msra.mxu1 %v403_v34 }
 0x10d   : > { %5442 = vmatprep.subr.mxu1 %v5406_v31 }
 0x10e   : > { %5443 = vmatpush3.msra.mxu1 %v5406_v31 }
 0x10f   : > { %5444 = vmatprep.subr.mxu1 %v393_v32 }
 0x110   : > { %5445 = vmatpush3.msra.mxu1 %v393_v32 }
 0x111   : > { %5446 = vmatprep.subr.mxu1 %v5403_v29 }
 0x112   : > { %5447 = vmatpush3.msra.mxu1 %v5403_v29 }
 0x113   : > { %5448 = vmatprep.subr.mxu1 %v383_v30 }
 0x114   : > { %5449 = vmatpush3.msra.mxu1 %v383_v30 }
 0x115   : > { %5450 = vmatprep.subr.mxu1 %v5400_v27 }
 0x116   : > { %5451 = vmatpush3.msra.mxu1 %v5400_v27 }
 0x117   : > { %5452 = vmatprep.subr.mxu1 %v373_v28 }
 0x118   : > { %5453 = vmatpush3.msra.mxu1 %v373_v28 }
 0x119   : > { %5455 = vmatmul.mubr.f32.vlgmr.msra.gmra.mxu1 %v6728_v43 }
 0x11a   : > { %5457 = vmatprep.mubr.f32.mxu1 %v6731_v44 }
 0x11d   : > { %5458 = vmatmul.mubr.f32.gmra.mxu1 %v6736_v45 }
 0x11e   : > { %5460 = vmatprep.mubr.f32.mxu1 %v6739_v46 }
 0x121   : > { %5461 = vmatmul.mubr.f32.gmra.mxu1 %v6744_v47 }
 0x122   : > { %5463 = vmatprep.mubr.f32.mxu1 %v6747_v48 }
 0x125   : > { %5464 = vmatmul.mubr.f32.gmra.mxu1 %v6752_v49 }
 0x126   : > { %5466 = vmatprep.mubr.f32.mxu1 %v6755_v50 }
 0x129   : > { %5467 = vmatmul.mubr.f32.gmra.mxu1 %v6760_v51 }
 0x12a   : > { %5469 = vmatprep.mubr.f32.mxu1 %v6763_v52 }
 0x12d   : > { %5470 = vmatmul.mubr.f32.gmra.mxu1 %v6768_v53 }
 0x12e   : > { %5472 = vmatprep.mubr.f32.mxu1 %v6771_v54 }
 0x131   : > { %5473 = vmatmul.mubr.f32.gmra.mxu1 %v6776_v55 }
 0x132   : > { %5475 = vmatprep.mubr.f32.mxu1 %v6779_v56 }
 0x135   : > { %5476 = vmatmul.mubr.f32.gmra.mxu1 %v6784_v57 }
 0x136   : > { %5550 = vmatprep.mubr.f32.mxu1 %v6706_v20 }
 0x1d9   : > { %v5456_v61 = vpop.f32.mrf.mxu1 }
 0x1da   : > { %v528_v62 = vadd.f32 %v5456_v61, %v4701_v60 }
 0x1db   : > { %v522_v63 = vpop.f32.mrf.mxu1 }
 0x1dc   : > { %v523_v0 = vadd.f32 %v4701_v60, %v522_v63  ;;  %v602_v3 = vmax.f32 %v528_v62, 0.0  ;;  %v990_v62 = vld [vmem:[%s8161_s2 + $0x88] sm:$0xff]  ;;  %v989_v63 = vld [vmem:[%s8161_s2 + $0x80] sm:$0xff] }
 0x1dd   : > { %v5459_v1 = vpop.f32.mrf.mxu1  ;;  %5574 = vmatprep.subr.mxu0 %v990_v62 }
 0x1de   : > { %v601_v2 = vmax.f32 %v523_v0, 0.0  ;;  %v538_v4 = vadd.f32 %v5459_v1, %v4701_v60  ;;  %v987_v0 = vld [vmem:[%s8161_s2 + $0x70] sm:$0xff]  ;;  %v986_v1 = vld [vmem:[%s8161_s2 + $0x68] sm:$0xff] }
 0x1df   : > { %v532_v5 = vpop.f32.mrf.mxu1 }
 0x1e0   : > { %v533_v6 = vadd.f32 %v4701_v60, %v532_v5  ;;  %5494 = vmatprep.mubr.msk.f32.mxu0 %vm626_vm1, %v601_v2  ;;  %v604_v9 = vmax.f32 %v538_v4, 0.0 }
 0x1e1   : > { %v5462_v7 = vpop.f32.mrf.mxu1  ;;  %5495 = vmatmul.mubr.msk.f32.vlgmr.msra.gmra.mxu0 %vm626_vm1, %v602_v3 }
 0x1e2   : > { %v603_v8 = vmax.f32 %v533_v6, 0.0  ;;  %v548_v10 = vadd.f32 %v5462_v7, %v4701_v60  ;;  %5575 = vmatpush3.msra.mxu0 %v990_v62 }
 0x1e3   : > { %v542_v11 = vpop.f32.mrf.mxu1  ;;  %5576 = vmatprep.subr.mxu0 %v989_v63 }
 0x1e4   : > { %v543_v12 = vadd.f32 %v4701_v60, %v542_v11  ;;  %5497 = vmatprep.mubr.msk.f32.mxu0 %vm626_vm1, %v603_v8  ;;  %v606_v15 = vmax.f32 %v548_v10, 0.0  ;;  %5577 = vmatpush3.msra.mxu0 %v989_v63 }
 0x1e5   : > { %v5465_v13 = vpop.f32.mrf.mxu1  ;;  %5498 = vmatmul.mubr.msk.f32.gmra.mxu0 %vm626_vm1, %v604_v9 }
 0x1e6   : > { %v605_v14 = vmax.f32 %v543_v12, 0.0  ;;  %v558_v16 = vadd.f32 %v5465_v13, %v4701_v60 }
 0x1e7   : > { %v552_v17 = vpop.f32.mrf.mxu1 }
 0x1e8   : > { %v553_v18 = vadd.f32 %v4701_v60, %v552_v17  ;;  %5500 = vmatprep.mubr.msk.f32.mxu0 %vm626_vm1, %v605_v14  ;;  %v608_v22 = vmax.f32 %v558_v16, 0.0 }
 0x1e9   : > { %v5468_v19 = vpop.f32.mrf.mxu1  ;;  %5501 = vmatmul.mubr.msk.f32.gmra.mxu0 %vm626_vm1, %v606_v15 }
 0x1ea   : > { %v607_v21 = vmax.f32 %v553_v18, 0.0  ;;  %v568_v23 = vadd.f32 %v5468_v19, %v4701_v60  ;;  %v985_v18 = vld [vmem:[%s8161_s2 + $0x60] sm:$0xff]  ;;  %v4718_v19 = vld [vmem:[%s8161_s2 + $0x178] ss:$0 sm:$0xff] }
 0x1eb   : > { %v562_v24 = vpop.f32.mrf.mxu1 }
 0x1ec   : > { %v563_v25 = vadd.f32 %v4701_v60, %v562_v24  ;;  %5503 = vmatprep.mubr.msk.f32.mxu0 %vm626_vm1, %v607_v21  ;;  %v610_v28 = vmax.f32 %v568_v23, 0.0 }
 0x1ed   : > { %v5471_v26 = vpop.f32.mrf.mxu1  ;;  %5504 = vmatmul.mubr.msk.f32.gmra.mxu0 %vm626_vm1, %v608_v22 }
 0x1ee   : > { %v609_v27 = vmax.f32 %v563_v25, 0.0  ;;  %v578_v29 = vadd.f32 %v5471_v26, %v4701_v60 }
 0x1ef   : > { %v572_v30 = vpop.f32.mrf.mxu1 }
 0x1f0   : > { %v573_v31 = vadd.f32 %v4701_v60, %v572_v30  ;;  %5506 = vmatprep.mubr.msk.f32.mxu0 %vm626_vm1, %v609_v27  ;;  %v612_v34 = vmax.f32 %v578_v29, 0.0 }
 0x1f1   : > { %v5474_v32 = vpop.f32.mrf.mxu1  ;;  %5507 = vmatmul.mubr.msk.f32.gmra.mxu0 %vm626_vm1, %v610_v28 }
 0x1f2   : > { %v611_v33 = vmax.f32 %v573_v31, 0.0  ;;  %v588_v35 = vadd.f32 %v5474_v32, %v4701_v60 }
 0x1f3   : > { %v582_v36 = vpop.f32.mrf.mxu1 }
 0x1f4   : > { %v583_v37 = vadd.f32 %v4701_v60, %v582_v36  ;;  %5509 = vmatprep.mubr.msk.f32.mxu0 %vm626_vm1, %v611_v33  ;;  %v614_v40 = vmax.f32 %v588_v35, 0.0 }
 0x1f5   : > { %v5477_v38 = vpop.f32.mrf.mxu1  ;;  %5510 = vmatmul.mubr.msk.f32.gmra.mxu0 %vm626_vm1, %v612_v34 }
 0x1f6   : > { %v613_v39 = vmax.f32 %v583_v37, 0.0  ;;  %v598_v41 = vadd.f32 %v5477_v38, %v4701_v60 }
 0x1f7   : > { %v592_v42 = vpop.f32.mrf.mxu1 }
 0x1f8   : > { %v593_v58 = vadd.f32 %v4701_v60, %v592_v42  ;;  %5512 = vmatprep.mubr.msk.f32.mxu0 %vm626_vm1, %v613_v39  ;;  %v616_v61 = vmax.f32 %v598_v41, 0.0  ;;  %v988_v60 = vld [vmem:[%s8161_s2 + $0x78] sm:$0xff] }
 0x1f9   : > { %5513 = vmatmul.mubr.msk.f32.gmra.mxu0 %vm626_vm1, %v614_v40  ;;  %5578 = vmatprep.subr.mxu0 %v988_v60 }
 0x1fa   : > { %v615_v59 = vmax.f32 %v593_v58, 0.0  ;;  %5579 = vmatpush3.msra.mxu0 %v988_v60 }
 0x1fb   : > { %5580 = vmatprep.subr.mxu0 %v987_v0 }
 0x1fc   : > { %5515 = vmatprep.mubr.msk.f32.mxu0 %vm626_vm1, %v615_v59  ;;  %5581 = vmatpush3.msra.mxu0 %v987_v0 }
 0x1fd   : > { %5516 = vmatmul.mubr.msk.f32.gmra.mxu0 %vm626_vm1, %v616_v61  ;;  %5582 = vmatprep.subr.mxu0 %v986_v1 }
 0x1fe   : > { %5583 = vmatpush3.msra.mxu0 %v986_v1 }
 0x1ff   : > { %5584 = vmatprep.subr.mxu0 %v985_v18 }
 0x200   : > { %5585 = vmatpush3.msra.mxu0 %v985_v18 }
 0x2a1   : > { %v5496_v2 = vpop.f32.mrf.mxu0 }
 0x2a3   : > { %v741_v3 = vpop.f32.mrf.mxu0 }
 0x2a5   : > { %v5499_v4 = vpop.f32.mrf.mxu0 }
 0x2a7   : > { %v751_v5 = vpop.f32.mrf.mxu0 }
 0x2a9   : > { %v5502_v6 = vpop.f32.mrf.mxu0 }
 0x2ab   : > { %v761_v7 = vpop.f32.mrf.mxu0 }
 0x2ad   : > { %v5505_v8 = vpop.f32.mrf.mxu0 }
 0x2af   : > { %v771_v9 = vpop.f32.mrf.mxu0 }
 0x2b1   : > { %v5508_v10 = vpop.f32.mrf.mxu0 }
 0x2b3   : > { %v781_v11 = vpop.f32.mrf.mxu0 }
 0x2b5   : > { %v5511_v12 = vpop.f32.mrf.mxu0 }
 0x2b7   : > { %v791_v13 = vpop.f32.mrf.mxu0 }
 0x2b9   : > { %v5514_v14 = vpop.f32.mrf.mxu0 }
 0x2bb   : > { %v801_v15 = vpop.f32.mrf.mxu0 }
 0x2bd   : > { %v5517_v16 = vpop.f32.mrf.mxu0 }
 0x2be   : > { %5518 = vmatprep.subr.mxu1 %v5517_v16 }
 0x2bf   : > { %v811_v17 = vpop.f32.mrf.mxu0  ;;  %5519 = vmatpush3.msra.mxu1 %v5517_v16 }
 0x2c0   : > { %5520 = vmatprep.subr.mxu1 %v811_v17 }
 0x2c1   : > { %5521 = vmatpush3.msra.mxu1 %v811_v17 }
 0x2c2   : > { %5522 = vmatprep.subr.mxu1 %v5514_v14 }
 0x2c3   : > { %5523 = vmatpush3.msra.mxu1 %v5514_v14 }
 0x2c4   : > { %5524 = vmatprep.subr.mxu1 %v801_v15 }
 0x2c5   : > { %5525 = vmatpush3.msra.mxu1 %v801_v15 }
 0x2c6   : > { %5526 = vmatprep.subr.mxu1 %v5511_v12 }
 0x2c7   : > { %5527 = vmatpush3.msra.mxu1 %v5511_v12 }
 0x2c8   : > { %5528 = vmatprep.subr.mxu1 %v791_v13 }
 0x2c9   : > { %5529 = vmatpush3.msra.mxu1 %v791_v13 }
 0x2ca   : > { %5530 = vmatprep.subr.mxu1 %v5508_v10 }
 0x2cb   : > { %5531 = vmatpush3.msra.mxu1 %v5508_v10 }
 0x2cc   : > { %5532 = vmatprep.subr.mxu1 %v781_v11 }
 0x2cd   : > { %5533 = vmatpush3.msra.mxu1 %v781_v11 }
 0x2ce   : > { %5534 = vmatprep.subr.mxu1 %v5505_v8 }
 0x2cf   : > { %5535 = vmatpush3.msra.mxu1 %v5505_v8 }
 0x2d0   : > { %5536 = vmatprep.subr.mxu1 %v771_v9 }
 0x2d1   : > { %5537 = vmatpush3.msra.mxu1 %v771_v9 }
 0x2d2   : > { %5538 = vmatprep.subr.mxu1 %v5502_v6 }
 0x2d3   : > { %5539 = vmatpush3.msra.mxu1 %v5502_v6 }
 0x2d4   : > { %5540 = vmatprep.subr.mxu1 %v761_v7 }
 0x2d5   : > { %5541 = vmatpush3.msra.mxu1 %v761_v7 }
 0x2d6   : > { %5542 = vmatprep.subr.mxu1 %v5499_v4 }
 0x2d7   : > { %5543 = vmatpush3.msra.mxu1 %v5499_v4 }
 0x2d8   : > { %5544 = vmatprep.subr.mxu1 %v751_v5 }
 0x2d9   : > { %5545 = vmatpush3.msra.mxu1 %v751_v5 }
 0x2da   : > { %5546 = vmatprep.subr.mxu1 %v5496_v2 }
 0x2db   : > { %5547 = vmatpush3.msra.mxu1 %v5496_v2 }
 0x2dc   : > { %5548 = vmatprep.subr.mxu1 %v741_v3 }
 0x2dd   : > { %5549 = vmatpush3.msra.mxu1 %v741_v3 }
 0x2de   : > { %5551 = vmatmul.mubr.f32.vlgmr.msra.gmra.mxu1 %v6728_v43 }
 0x2df   : > { %5553 = vmatprep.mubr.f32.mxu1 %v6731_v44 }
 0x2e2   : > { %5554 = vmatmul.mubr.f32.gmra.mxu1 %v6736_v45 }
 0x2e3   : > { %5556 = vmatprep.mubr.f32.mxu1 %v6739_v46 }
 0x2e6   : > { %5557 = vmatmul.mubr.f32.gmra.mxu1 %v6744_v47 }
 0x2e7   : > { %5559 = vmatprep.mubr.f32.mxu1 %v6747_v48 }
 0x2ea   : > { %5560 = vmatmul.mubr.f32.gmra.mxu1 %v6752_v49 }
 0x2eb   : > { %5562 = vmatprep.mubr.f32.mxu1 %v6755_v50 }
 0x2ee   : > { %5563 = vmatmul.mubr.f32.gmra.mxu1 %v6760_v51 }
 0x2ef   : > { %5565 = vmatprep.mubr.f32.mxu1 %v6763_v52 }
 0x2f2   : > { %5566 = vmatmul.mubr.f32.gmra.mxu1 %v6768_v53 }
 0x2f3   : > { %5568 = vmatprep.mubr.f32.mxu1 %v6771_v54 }
 0x2f6   : > { %5569 = vmatmul.mubr.f32.gmra.mxu1 %v6776_v55 }
 0x2f7   : > { %5571 = vmatprep.mubr.f32.mxu1 %v6779_v56 }
 0x2fa   : > { %5572 = vmatmul.mubr.f32.gmra.mxu1 %v6784_v57 }
 0x2fb   : > { %5642 = vmatprep.mubr.f32.mxu1 %v6706_v20 }
 0x39e   : > { %v5552_v21 = vpop.f32.mrf.mxu1 }
 0x39f   : > { %v896_v22 = vadd.f32 %v5552_v21, %v4718_v19 }
 0x3a0   : > { %v890_v23 = vpop.f32.mrf.mxu1 }
 0x3a1   : > { %v891_v24 = vadd.f32 %v4718_v19, %v890_v23  ;;  %v970_v27 = vmax.f32 %v896_v22, 0.0  ;;  %v1352_v22 = vld [vmem:[%s8161_s2 + $0x98] sm:$0xff]  ;;  %v1351_v23 = vld [vmem:[%s8161_s2 + $0x90] sm:$0xff] }
 0x3a2   : > { %v5555_v25 = vpop.f32.mrf.mxu1  ;;  %5666 = vmatprep.subr.mxu0 %v1352_v22 }
 0x3a3   : > { %v969_v26 = vmax.f32 %v891_v24, 0.0  ;;  %v906_v28 = vadd.f32 %v5555_v25, %v4718_v19 }
 0x3a4   : > { %v900_v29 = vpop.f32.mrf.mxu1 }
 0x3a5   : > { %v901_v30 = vadd.f32 %v4718_v19, %v900_v29  ;;  %5586 = vmatprep.mubr.msk.f32.mxu0 %vm992_vm2, %v969_v26  ;;  %v972_v33 = vmax.f32 %v906_v28, 0.0 }
 0x3a6   : > { %v5558_v31 = vpop.f32.mrf.mxu1  ;;  %5587 = vmatmul.mubr.msk.f32.vlgmr.msra.gmra.mxu0 %vm992_vm2, %v970_v27 }
 0x3a7   : > { %v971_v32 = vmax.f32 %v901_v30, 0.0  ;;  %v916_v34 = vadd.f32 %v5558_v31, %v4718_v19  ;;  %5667 = vmatpush3.msra.mxu0 %v1352_v22 }
 0x3a8   : > { %v910_v35 = vpop.f32.mrf.mxu1  ;;  %5668 = vmatprep.subr.mxu0 %v1351_v23 }
 0x3a9   : > { %v911_v36 = vadd.f32 %v4718_v19, %v910_v35  ;;  %5589 = vmatprep.mubr.msk.f32.mxu0 %vm992_vm2, %v971_v32  ;;  %v974_v39 = vmax.f32 %v916_v34, 0.0  ;;  %5669 = vmatpush3.msra.mxu0 %v1351_v23 }
 0x3aa   : > { %v5561_v37 = vpop.f32.mrf.mxu1  ;;  %5590 = vmatmul.mubr.msk.f32.gmra.mxu0 %vm992_vm2, %v972_v33 }
 0x3ab   : > { %v973_v38 = vmax.f32 %v911_v36, 0.0  ;;  %v926_v40 = vadd.f32 %v5561_v37, %v4718_v19 }
 0x3ac   : > { %v920_v41 = vpop.f32.mrf.mxu1 }
 0x3ad   : > { %v921_v42 = vadd.f32 %v4718_v19, %v920_v41  ;;  %5592 = vmatprep.mubr.msk.f32.mxu0 %vm992_vm2, %v973_v38  ;;  %v976_v61 = vmax.f32 %v926_v40, 0.0  ;;  %v6894_v40 = vld [vmem:[%s8161_s2 + $0x180] ss:$0 sm:$0xff] }
 0x3ae   : > { %v5564_v58 = vpop.f32.mrf.mxu1  ;;  %5593 = vmatmul.mubr.msk.f32.gmra.mxu0 %vm992_vm2, %v974_v39  ;;  %v1700_v39 = vld [vmem:[%s8161_s2 + $0xb8] sm:$0xff] }
 0x3af   : > { %v975_v59 = vmax.f32 %v921_v42, 0.0  ;;  %v936_v62 = vadd.f32 %v5564_v58, %v4718_v19  ;;  %5750 = vmatprep.subr.mxu0 %v1700_v39 }
 0x3b0   : > { %v930_v63 = vpop.f32.mrf.mxu1 }
 0x3b1   : > { %v931_v60 = vadd.f32 %v4718_v19, %v930_v63  ;;  %5595 = vmatprep.mubr.msk.f32.mxu0 %vm992_vm2, %v975_v59  ;;  %v978_v2 = vmax.f32 %v936_v62, 0.0 }
 0x3b2   : > { %v5567_v0 = vpop.f32.mrf.mxu1  ;;  %5596 = vmatmul.mubr.msk.f32.gmra.mxu0 %vm992_vm2, %v976_v61 }
 0x3b3   : > { %v977_v1 = vmax.f32 %v931_v60, 0.0  ;;  %v946_v3 = vadd.f32 %v5567_v0, %v4718_v19 }
 0x3b4   : > { %v940_v4 = vpop.f32.mrf.mxu1 }
 0x3b5   : > { %v941_v5 = vadd.f32 %v4718_v19, %v940_v4  ;;  %5598 = vmatprep.mubr.msk.f32.mxu0 %vm992_vm2, %v977_v1  ;;  %v980_v8 = vmax.f32 %v946_v3, 0.0  ;;  %v1699_v1 = vld [vmem:[%s8161_s2 + $0xb0] sm:$0xff]  ;;  %v1698_v4 = vld [vmem:[%s8161_s2 + $0xa8] sm:$0xff] }
 0x3b6   : > { %v5570_v6 = vpop.f32.mrf.mxu1  ;;  %5599 = vmatmul.mubr.msk.f32.gmra.mxu0 %vm992_vm2, %v978_v2 }
 0x3b7   : > { %v979_v7 = vmax.f32 %v941_v5, 0.0  ;;  %v956_v9 = vadd.f32 %v5570_v6, %v4718_v19 }
 0x3b8   : > { %v950_v10 = vpop.f32.mrf.mxu1 }
 0x3b9   : > { %v951_v11 = vadd.f32 %v4718_v19, %v950_v10  ;;  %5601 = vmatprep.mubr.msk.f32.mxu0 %vm992_vm2, %v979_v7  ;;  %v982_v14 = vmax.f32 %v956_v9, 0.0  ;;  %v1697_v9 = vld [vmem:[%s8161_s2 + $0xa0] sm:$0xff] }
 0x3ba   : > { %v5573_v12 = vpop.f32.mrf.mxu1  ;;  %5602 = vmatmul.mubr.msk.f32.gmra.mxu0 %vm992_vm2, %v980_v8 }
 0x3bb   : > { %v981_v13 = vmax.f32 %v951_v11, 0.0  ;;  %v966_v15 = vadd.f32 %v5573_v12, %v4718_v19 }
 0x3bc   : > { %v960_v16 = vpop.f32.mrf.mxu1 }
 0x3bd   : > { %v961_v17 = vadd.f32 %v4718_v19, %v960_v16  ;;  %5604 = vmatprep.mubr.msk.f32.mxu0 %vm992_vm2, %v981_v13  ;;  %v984_v21 = vmax.f32 %v966_v15, 0.0 }
 0x3be   : > { %5605 = vmatmul.mubr.msk.f32.gmra.mxu0 %vm992_vm2, %v982_v14 }
 0x3bf   : > { %v983_v18 = vmax.f32 %v961_v17, 0.0 }
 0x3c1   : > { %5607 = vmatprep.mubr.msk.f32.mxu0 %vm992_vm2, %v983_v18 }
 0x3c2   : > { %5608 = vmatmul.mubr.msk.f32.gmra.mxu0 %vm992_vm2, %v984_v21 }
 0x466   : > { %v5588_v19 = vpop.f32.mrf.mxu0 }
 0x468   : > { %v1107_v24 = vpop.f32.mrf.mxu0 }
 0x46a   : > { %v5591_v25 = vpop.f32.mrf.mxu0 }
 0x46c   : > { %v1117_v26 = vpop.f32.mrf.mxu0 }
 0x46e   : > { %v5594_v27 = vpop.f32.mrf.mxu0 }
 0x470   : > { %v1127_v28 = vpop.f32.mrf.mxu0 }
 0x472   : > { %v5597_v29 = vpop.f32.mrf.mxu0 }
 0x474   : > { %v1137_v30 = vpop.f32.mrf.mxu0 }
 0x476   : > { %v5600_v31 = vpop.f32.mrf.mxu0 }
 0x478   : > { %v1147_v32 = vpop.f32.mrf.mxu0 }
 0x47a   : > { %v5603_v33 = vpop.f32.mrf.mxu0 }
 0x47c   : > { %v1157_v34 = vpop.f32.mrf.mxu0 }
 0x47e   : > { %v5606_v35 = vpop.f32.mrf.mxu0 }
 0x480   : > { %v1167_v36 = vpop.f32.mrf.mxu0 }
 0x482   : > { %v5609_v37 = vpop.f32.mrf.mxu0 }
 0x483   : > { %5610 = vmatprep.subr.mxu1 %v5609_v37 }
 0x484   : > { %v1177_v38 = vpop.f32.mrf.mxu0  ;;  %5611 = vmatpush3.msra.mxu1 %v5609_v37 }
 0x485   : > { %5612 = vmatprep.subr.mxu1 %v1177_v38 }
 0x486   : > { %5613 = vmatpush3.msra.mxu1 %v1177_v38 }
 0x487   : > { %5614 = vmatprep.subr.mxu1 %v5606_v35 }
 0x488   : > { %5615 = vmatpush3.msra.mxu1 %v5606_v35 }
 0x489   : > { %5616 = vmatprep.subr.mxu1 %v1167_v36 }
 0x48a   : > { %5617 = vmatpush3.msra.mxu1 %v1167_v36 }
 0x48b   : > { %5618 = vmatprep.subr.mxu1 %v5603_v33 }
 0x48c   : > { %5619 = vmatpush3.msra.mxu1 %v5603_v33 }
 0x48d   : > { %5620 = vmatprep.subr.mxu1 %v1157_v34 }
 0x48e   : > { %5621 = vmatpush3.msra.mxu1 %v1157_v34 }
 0x48f   : > { %5622 = vmatprep.subr.mxu1 %v5600_v31 }
 0x490   : > { %5623 = vmatpush3.msra.mxu1 %v5600_v31 }
 0x491   : > { %5624 = vmatprep.subr.mxu1 %v1147_v32 }
 0x492   : > { %5625 = vmatpush3.msra.mxu1 %v1147_v32 }
 0x493   : > { %5626 = vmatprep.subr.mxu1 %v5597_v29 }
 0x494   : > { %5627 = vmatpush3.msra.mxu1 %v5597_v29 }
 0x495   : > { %5628 = vmatprep.subr.mxu1 %v1137_v30 }
 0x496   : > { %5629 = vmatpush3.msra.mxu1 %v1137_v30 }
 0x497   : > { %5630 = vmatprep.subr.mxu1 %v5594_v27 }
 0x498   : > { %5631 = vmatpush3.msra.mxu1 %v5594_v27 }
 0x499   : > { %5632 = vmatprep.subr.mxu1 %v1127_v28 }
 0x49a   : > { %5633 = vmatpush3.msra.mxu1 %v1127_v28 }
 0x49b   : > { %5634 = vmatprep.subr.mxu1 %v5591_v25 }
 0x49c   : > { %5635 = vmatpush3.msra.mxu1 %v5591_v25 }
 0x49d   : > { %5636 = vmatprep.subr.mxu1 %v1117_v26 }
 0x49e   : > { %5637 = vmatpush3.msra.mxu1 %v1117_v26 }
 0x49f   : > { %5638 = vmatprep.subr.mxu1 %v5588_v19 }
 0x4a0   : > { %5639 = vmatpush3.msra.mxu1 %v5588_v19 }
 0x4a1   : > { %5640 = vmatprep.subr.mxu1 %v1107_v24 }
 0x4a2   : > { %5641 = vmatpush3.msra.mxu1 %v1107_v24 }
 0x4a3   : > { %5643 = vmatmul.mubr.f32.vlgmr.msra.gmra.mxu1 %v6728_v43 }
 0x4a4   : > { %5645 = vmatprep.mubr.f32.mxu1 %v6731_v44 }
 0x4a7   : > { %5646 = vmatmul.mubr.f32.gmra.mxu1 %v6736_v45 }
 0x4a8   : > { %5648 = vmatprep.mubr.f32.mxu1 %v6739_v46 }
 0x4ab   : > { %5649 = vmatmul.mubr.f32.gmra.mxu1 %v6744_v47 }
 0x4ac   : > { %5651 = vmatprep.mubr.f32.mxu1 %v6747_v48 }
 0x4af   : > { %5652 = vmatmul.mubr.f32.gmra.mxu1 %v6752_v49 }
 0x4b0   : > { %5654 = vmatprep.mubr.f32.mxu1 %v6755_v50 }
 0x4b3   : > { %5655 = vmatmul.mubr.f32.gmra.mxu1 %v6760_v51 }
 0x4b4   : > { %5657 = vmatprep.mubr.f32.mxu1 %v6763_v52 }
 0x4b7   : > { %5658 = vmatmul.mubr.f32.gmra.mxu1 %v6768_v53 }
 0x4b8   : > { %5660 = vmatprep.mubr.f32.mxu1 %v6771_v54 }
 0x4bb   : > { %5661 = vmatmul.mubr.f32.gmra.mxu1 %v6776_v55 }
 0x4bc   : > { %5663 = vmatprep.mubr.f32.mxu1 %v6779_v56 }
 0x4bf   : > { %5664 = vmatmul.mubr.f32.gmra.mxu1 %v6784_v57 }
 0x4c0   : > { %5726 = vmatprep.mubr.f32.mxu1 %v6706_v20 }
 0x563   : > { %v5644_v41 = vpop.f32.mrf.mxu1 }
 0x564   : > { %v1262_v42 = vadd.f32 %v5644_v41, %v6894_v40 }
 0x565   : > { %v1256_v58 = vpop.f32.mrf.mxu1 }
 0x566   : > { %v1257_v59 = vadd.f32 %v6894_v40, %v1256_v58  ;;  %v1336_v20 = vmax.f32 %v1262_v42, 0.0 }
 0x567   : > { %v5647_v61 = vpop.f32.mrf.mxu1 }
 0x568   : > { %v1335_v62 = vmax.f32 %v1257_v59, 0.0  ;;  %v1272_v63 = vadd.f32 %v5647_v61, %v6894_v40  ;;  %v205_v59 = vld [vmem:[%s6664_s9 + $0x80] sm:$0xff]  ;;  %v206_v61 = vld [vmem:[%s6664_s9 + $0x88] sm:$0xff] }
 0x569   : > { %v1266_v60 = vpop.f32.mrf.mxu1 }
 0x56a   : > { %v1267_v0 = vadd.f32 %v6894_v40, %v1266_v60  ;;  %5670 = vmatprep.mubr.msk.f32.mxu0 %vm1354_vm3, %v1335_v62  ;;  %v1338_v5 = vmax.f32 %v1272_v63, 0.0  ;;  %v208_v62 = vld [vmem:[%s6664_s9 + $0x98] sm:$0xff]  ;;  %v210_v63 = vld [vmem:[%s6664_s9 + $0xa8] sm:$0xff]  ;;  %v211_v60 = vld [vmem:[%s6664_s9 + $0xb0] sm:$0xff] }
 0x56b   : > { %v5650_v2 = vpop.f32.mrf.mxu1  ;;  %5671 = vmatmul.mubr.msk.f32.vlgmr.msra.gmra.mxu0 %vm1354_vm3, %v1336_v20  ;;  %v209_v20 = vld [vmem:[%s6664_s9 + $0xa0] sm:$0xff] }
 0x56c   : > { %v1337_v3 = vmax.f32 %v1267_v0, 0.0  ;;  %5751 = vmatpush3.msra.mxu0 %v1700_v39  ;;  %v1282_v6 = vadd.f32 %v5650_v2, %v6894_v40  ;;  %v212_v0 = vld [vmem:[%s6664_s9 + $0xb8] sm:$0xff]  ;;  %v214_v2 = vld [vmem:[%s6664_s9 + $0xc8] sm:$0xff] }
 0x56d   : > { %v1276_v7 = vpop.f32.mrf.mxu1  ;;  %5752 = vmatprep.subr.mxu0 %v1699_v1 }
 0x56e   : > { %v1277_v8 = vadd.f32 %v6894_v40, %v1276_v7  ;;  %5673 = vmatprep.mubr.msk.f32.mxu0 %vm1354_vm3, %v1337_v3  ;;  %5753 = vmatpush3.msra.mxu0 %v1699_v1  ;;  %v1340_v12 = vmax.f32 %v1282_v6, 0.0  ;;  %v213_v1 = vld [vmem:[%s6664_s9 + $0xc0] sm:$0xff]  ;;  %v215_v3 = vld [vmem:[%s6664_s9 + $0xd0] sm:$0xff]  ;;  %v218_v6 = vld [vmem:[%s6664_s9 + $0xe8] sm:$0xff] }
 0x56f   : > { %v5653_v10 = vpop.f32.mrf.mxu1  ;;  %5674 = vmatmul.mubr.msk.f32.gmra.mxu0 %vm1354_vm3, %v1338_v5  ;;  %5754 = vmatprep.subr.mxu0 %v1698_v4  ;;  %v217_v5 = vld [vmem:[%s6664_s9 + $0xe0] sm:$0xff]  ;;  %v219_v7 = vld [vmem:[%s6664_s9 + $0xf0] sm:$0xff] }
 0x570   : > { %v1339_v11 = vmax.f32 %v1277_v8, 0.0  ;;  %5755 = vmatpush3.msra.mxu0 %v1698_v4  ;;  %v1292_v13 = vadd.f32 %v5653_v10, %v6894_v40  ;;  %v216_v4 = vld [vmem:[%s6664_s9 + $0xd8] sm:$0xff] }
 0x571   : > { %v1286_v14 = vpop.f32.mrf.mxu1  ;;  %5756 = vmatprep.subr.mxu0 %v1697_v9  ;;  %v220_v8 = vld [vmem:[%s6664_s9 + $0xf8] sm:$0xff] }
 0x572   : > { %v1287_v15 = vadd.f32 %v6894_v40, %v1286_v14  ;;  %5676 = vmatprep.mubr.msk.f32.mxu0 %vm1354_vm3, %v1339_v11  ;;  %5757 = vmatpush3.msra.mxu0 %v1697_v9  ;;  %v1342_v18 = vmax.f32 %v1292_v13, 0.0 }
 0x573   : > { %v5656_v16 = vpop.f32.mrf.mxu1  ;;  %5677 = vmatmul.mubr.msk.f32.gmra.mxu0 %vm1354_vm3, %v1340_v12 }
 0x574   : > { %v1341_v17 = vmax.f32 %v1287_v15, 0.0  ;;  %v1302_v21 = vadd.f32 %v5656_v16, %v6894_v40 }
 0x575   : > { %v1296_v22 = vpop.f32.mrf.mxu1 }
 0x576   : > { %v1297_v23 = vadd.f32 %v6894_v40, %v1296_v22  ;;  %5679 = vmatprep.mubr.msk.f32.mxu0 %vm1354_vm3, %v1341_v17  ;;  %v1344_v25 = vmax.f32 %v1302_v21, 0.0 }
 0x577   : > { %v5659_v19 = vpop.f32.mrf.mxu1  ;;  %5680 = vmatmul.mubr.msk.f32.gmra.mxu0 %vm1354_vm3, %v1342_v18 }
 0x578   : > { %v1343_v24 = vmax.f32 %v1297_v23, 0.0  ;;  %v1312_v26 = vadd.f32 %v5659_v19, %v6894_v40 }
 0x579   : > { %v1306_v27 = vpop.f32.mrf.mxu1 }
 0x57a   : > { %v1307_v28 = vadd.f32 %v6894_v40, %v1306_v27  ;;  %5682 = vmatprep.mubr.msk.f32.mxu0 %vm1354_vm3, %v1343_v24  ;;  %v1346_v31 = vmax.f32 %v1312_v26, 0.0 }
 0x57b   : > { %v5662_v29 = vpop.f32.mrf.mxu1  ;;  %5683 = vmatmul.mubr.msk.f32.gmra.mxu0 %vm1354_vm3, %v1344_v25 }
 0x57c   : > { %v1345_v30 = vmax.f32 %v1307_v28, 0.0  ;;  %v1322_v32 = vadd.f32 %v5662_v29, %v6894_v40 }
 0x57d   : > { %v1316_v33 = vpop.f32.mrf.mxu1 }
 0x57e   : > { %v1317_v34 = vadd.f32 %v6894_v40, %v1316_v33  ;;  %5685 = vmatprep.mubr.msk.f32.mxu0 %vm1354_vm3, %v1345_v30  ;;  %v1348_v37 = vmax.f32 %v1322_v32, 0.0 }
 0x57f   : > { %v5665_v35 = vpop.f32.mrf.mxu1  ;;  %5686 = vmatmul.mubr.msk.f32.gmra.mxu0 %vm1354_vm3, %v1346_v31 }
 0x580   : > { %v1347_v36 = vmax.f32 %v1317_v34, 0.0  ;;  %v1332_v38 = vadd.f32 %v5665_v35, %v6894_v40 }
 0x581   : > { %v1326_v39 = vpop.f32.mrf.mxu1 }
 0x582   : > { %v1327_v41 = vadd.f32 %v6894_v40, %v1326_v39  ;;  %5688 = vmatprep.mubr.msk.f32.mxu0 %vm1354_vm3, %v1347_v36  ;;  %v1350_v58 = vmax.f32 %v1332_v38, 0.0  ;;  %v207_v40 = vld [vmem:[%s6664_s9 + $0x90] sm:$0xff] }
 0x583   : > { %5689 = vmatmul.mubr.msk.f32.gmra.mxu0 %vm1354_vm3, %v1348_v37 }
 0x584   : > { %v1349_v42 = vmax.f32 %v1327_v41, 0.0 }
 0x586   : > { %5691 = vmatprep.mubr.msk.f32.mxu0 %vm1354_vm3, %v1349_v42 }
 0x587   : > { %5692 = vmatmul.mubr.msk.f32.gmra.mxu0 %vm1354_vm3, %v1350_v58  ;;  %v7069_v58 = vld [vmem:[%s6703_s17 + $0xf8] sm:$0xff] }
 0x588   : > { %5758 = vmatprep.mubr.msk.f32.mxu0 %vm258_vm0, %v205_v59  ;;  %v2067_v59 = vld [vmem:[%s8161_s2 + $0xf8] sm:$0xff] }
 0x589   : > { %5838 = vmatprep.subr.mxu0 %v2067_v59 }
 0x58b   : > { %5759 = vmatmul.mubr.msk.f32.vlgmr.msra.gmra.mxu0 %vm258_vm0, %v206_v61  ;;  %v2066_v61 = vld [vmem:[%s8161_s2 + $0xf0] sm:$0xff] }
 0x58c   : > { %5761 = vmatprep.mubr.msk.f32.mxu0 %vm258_vm0, %v207_v40  ;;  %5839 = vmatpush3.msra.mxu0 %v2067_v59  ;;  %v2065_v40 = vld [vmem:[%s8161_s2 + $0xe8] sm:$0xff] }
 0x58d   : > { %5840 = vmatprep.subr.mxu0 %v2066_v61 }
 0x58e   : > { %5841 = vmatpush3.msra.mxu0 %v2066_v61 }
 0x58f   : > { %5762 = vmatmul.mubr.msk.f32.gmra.mxu0 %vm258_vm0, %v208_v62  ;;  %5842 = vmatprep.subr.mxu0 %v2065_v40  ;;  %v2064_v62 = vld [vmem:[%s8161_s2 + $0xe0] sm:$0xff] }
 0x590   : > { %5764 = vmatprep.mubr.msk.f32.mxu0 %vm258_vm0, %v209_v20  ;;  %5843 = vmatpush3.msra.mxu0 %v2065_v40  ;;  %v2063_v20 = vld [vmem:[%s8161_s2 + $0xd8] sm:$0xff] }
 0x591   : > { %5844 = vmatprep.subr.mxu0 %v2064_v62 }
 0x592   : > { %5845 = vmatpush3.msra.mxu0 %v2064_v62 }
 0x593   : > { %5765 = vmatmul.mubr.msk.f32.gmra.mxu0 %vm258_vm0, %v210_v63  ;;  %5846 = vmatprep.subr.mxu0 %v2063_v20  ;;  %v2062_v63 = vld [vmem:[%s8161_s2 + $0xd0] sm:$0xff] }
 0x594   : > { %5767 = vmatprep.mubr.msk.f32.mxu0 %vm258_vm0, %v211_v60  ;;  %5847 = vmatpush3.msra.mxu0 %v2063_v20  ;;  %v2061_v60 = vld [vmem:[%s8161_s2 + $0xc8] sm:$0xff] }
 0x595   : > { %5848 = vmatprep.subr.mxu0 %v2062_v63 }
 0x596   : > { %5849 = vmatpush3.msra.mxu0 %v2062_v63 }
 0x597   : > { %5768 = vmatmul.mubr.msk.f32.gmra.mxu0 %vm258_vm0, %v212_v0  ;;  %5850 = vmatprep.subr.mxu0 %v2061_v60  ;;  %v2060_v0 = vld [vmem:[%s8161_s2 + $0xc0] sm:$0xff] }
 0x598   : > { %5770 = vmatprep.mubr.msk.f32.mxu0 %vm258_vm0, %v213_v1  ;;  %5851 = vmatpush3.msra.mxu0 %v2061_v60  ;;  %v4752_v1 = vld [vmem:[%s8161_s2 + $0x188] ss:$0 sm:$0xff] }
 0x599   : > { %5852 = vmatprep.subr.mxu0 %v2060_v0 }
 0x59a   : > { %5853 = vmatpush3.msra.mxu0 %v2060_v0 }
 0x59b   : > { %5771 = vmatmul.mubr.msk.f32.gmra.mxu0 %vm258_vm0, %v214_v2 }
 0x59c   : > { %5773 = vmatprep.mubr.msk.f32.mxu0 %vm258_vm0, %v215_v3 }
 0x59f   : > { %5774 = vmatmul.mubr.msk.f32.gmra.mxu0 %vm258_vm0, %v216_v4 }
 0x5a0   : > { %5776 = vmatprep.mubr.msk.f32.mxu0 %vm258_vm0, %v217_v5 }
 0x5a3   : > { %5777 = vmatmul.mubr.msk.f32.gmra.mxu0 %vm258_vm0, %v218_v6 }
 0x5a4   : > { %5779 = vmatprep.mubr.msk.f32.mxu0 %vm258_vm0, %v219_v7 }
 0x5a7   : > { %5780 = vmatmul.mubr.msk.f32.gmra.mxu0 %vm258_vm0, %v220_v8 }
 0x62b   : > { %v5672_v9 = vpop.f32.mrf.mxu0 }
 0x62d   : > { %v1469_v10 = vpop.f32.mrf.mxu0 }
 0x62f   : > { %v5675_v11 = vpop.f32.mrf.mxu0 }
 0x631   : > { %v1479_v12 = vpop.f32.mrf.mxu0 }
 0x633   : > { %v5678_v13 = vpop.f32.mrf.mxu0 }
 0x635   : > { %v1489_v14 = vpop.f32.mrf.mxu0 }
 0x637   : > { %v5681_v15 = vpop.f32.mrf.mxu0 }
 0x639   : > { %v1499_v16 = vpop.f32.mrf.mxu0 }
 0x63b   : > { %v5684_v17 = vpop.f32.mrf.mxu0 }
 0x63d   : > { %v1509_v18 = vpop.f32.mrf.mxu0 }
 0x63f   : > { %v5687_v21 = vpop.f32.mrf.mxu0 }
 0x641   : > { %v1519_v22 = vpop.f32.mrf.mxu0 }
 0x643   : > { %v5690_v23 = vpop.f32.mrf.mxu0 }
 0x645   : > { %v1529_v19 = vpop.f32.mrf.mxu0 }
 0x647   : > { %v5693_v24 = vpop.f32.mrf.mxu0 }
 0x648   : > { %5694 = vmatprep.subr.mxu1 %v5693_v24 }
 0x649   : > { %v1539_v25 = vpop.f32.mrf.mxu0  ;;  %5695 = vmatpush3.msra.mxu1 %v5693_v24 }
 0x64a   : > { %5696 = vmatprep.subr.mxu1 %v1539_v25 }
 0x64b   : > { %5697 = vmatpush3.msra.mxu1 %v1539_v25  ;;  %v6969_v26 = vpop.f32.mrf.mxu0 }
 0x64c   : > { %5698 = vmatprep.subr.mxu1 %v5690_v23 }
 0x64d   : > { %5699 = vmatpush3.msra.mxu1 %v5690_v23  ;;  %v6971_v27 = vpop.f32.mrf.mxu0 }
 0x64e   : > { %5700 = vmatprep.subr.mxu1 %v1529_v19 }
 0x64f   : > { %5701 = vmatpush3.msra.mxu1 %v1529_v19  ;;  %v6973_v28 = vpop.f32.mrf.mxu0 }
 0x650   : > { %5702 = vmatprep.subr.mxu1 %v5687_v21 }
 0x651   : > { %5703 = vmatpush3.msra.mxu1 %v5687_v21  ;;  %v6975_v29 = vpop.f32.mrf.mxu0 }
 0x652   : > { %5704 = vmatprep.subr.mxu1 %v1519_v22 }
 0x653   : > { %5705 = vmatpush3.msra.mxu1 %v1519_v22  ;;  %v6977_v30 = vpop.f32.mrf.mxu0 }
 0x654   : > { %5706 = vmatprep.subr.mxu1 %v5684_v17 }
 0x655   : > { %5707 = vmatpush3.msra.mxu1 %v5684_v17  ;;  %v6979_v31 = vpop.f32.mrf.mxu0 }
 0x656   : > { %5708 = vmatprep.subr.mxu1 %v1509_v18 }
 0x657   : > { %5709 = vmatpush3.msra.mxu1 %v1509_v18  ;;  %v5769_v32 = vpop.f32.mrf.mxu0 }
 0x658   : > { %5710 = vmatprep.subr.mxu1 %v5681_v15 }
 0x659   : > { %5711 = vmatpush3.msra.mxu1 %v5681_v15  ;;  %v1846_v33 = vpop.f32.mrf.mxu0 }
 0x65a   : > { %5712 = vmatprep.subr.mxu1 %v1499_v16 }
 0x65b   : > { %5713 = vmatpush3.msra.mxu1 %v1499_v16  ;;  %v5772_v34 = vpop.f32.mrf.mxu0 }
 0x65c   : > { %5714 = vmatprep.subr.mxu1 %v5678_v13 }
 0x65d   : > { %5715 = vmatpush3.msra.mxu1 %v5678_v13  ;;  %v1856_v35 = vpop.f32.mrf.mxu0 }
 0x65e   : > { %5716 = vmatprep.subr.mxu1 %v1489_v14 }
 0x65f   : > { %5717 = vmatpush3.msra.mxu1 %v1489_v14  ;;  %v5775_v36 = vpop.f32.mrf.mxu0 }
 0x660   : > { %5718 = vmatprep.subr.mxu1 %v5675_v11 }
 0x661   : > { %5719 = vmatpush3.msra.mxu1 %v5675_v11  ;;  %v1866_v37 = vpop.f32.mrf.mxu0 }
 0x662   : > { %5720 = vmatprep.subr.mxu1 %v1479_v12 }
 0x663   : > { %5721 = vmatpush3.msra.mxu1 %v1479_v12  ;;  %v5778_v38 = vpop.f32.mrf.mxu0 }
 0x664   : > { %5722 = vmatprep.subr.mxu1 %v5672_v9 }
 0x665   : > { %5723 = vmatpush3.msra.mxu1 %v5672_v9  ;;  %v1876_v39 = vpop.f32.mrf.mxu0 }
 0x666   : > { %5724 = vmatprep.subr.mxu1 %v1469_v10 }
 0x667   : > { %5725 = vmatpush3.msra.mxu1 %v1469_v10  ;;  %v5781_v41 = vpop.f32.mrf.mxu0 }
 0x668   : > { %5727 = vmatmul.mubr.f32.vlgmr.msra.gmra.mxu1 %v6728_v43  ;;  %5782 = vmatprep.subr.mxu1 %v5781_v41  ;;  %v7003_v43 = vld [vmem:[%s6703_s17 + $0x8] sm:$0xff] }
 0x669   : > { %v1886_v42 = vpop.f32.mrf.mxu0  ;;  %5783 = vmatpush3.msra.mxu1 %v5781_v41  ;;  %5729 = vmatprep.mubr.f32.mxu1 %v6731_v44  ;;  %v7011_v44 = vld [vmem:[%s6703_s17 + $0x18] sm:$0xff] }
 0x66a   : > { %5784 = vmatprep.subr.mxu1 %v1886_v42 }
 0x66b   : > { %5785 = vmatpush3.msra.mxu1 %v1886_v42 }
 0x66c   : > { %5730 = vmatmul.mubr.f32.gmra.mxu1 %v6736_v45  ;;  %5786 = vmatprep.subr.mxu1 %v5778_v38  ;;  %v7015_v45 = vld [vmem:[%s6703_s17 + $0x28] sm:$0xff] }
 0x66d   : > { %5787 = vmatpush3.msra.mxu1 %v5778_v38  ;;  %5732 = vmatprep.mubr.f32.mxu1 %v6739_v46  ;;  %v7021_v46 = vld [vmem:[%s6703_s17 + $0x38] sm:$0xff] }
 0x66e   : > { %5788 = vmatprep.subr.mxu1 %v1876_v39 }
 0x66f   : > { %5789 = vmatpush3.msra.mxu1 %v1876_v39 }
 0x670   : > { %5733 = vmatmul.mubr.f32.gmra.mxu1 %v6744_v47  ;;  %5790 = vmatprep.subr.mxu1 %v5775_v36  ;;  %v7024_v47 = vld [vmem:[%s6703_s17 + $0x48] sm:$0xff] }
 0x671   : > { %5791 = vmatpush3.msra.mxu1 %v5775_v36  ;;  %5735 = vmatprep.mubr.f32.mxu1 %v6747_v48  ;;  %v7029_v48 = vld [vmem:[%s6703_s17 + $0x58] sm:$0xff] }
 0x672   : > { %5792 = vmatprep.subr.mxu1 %v1866_v37 }
 0x673   : > { %5793 = vmatpush3.msra.mxu1 %v1866_v37 }
 0x674   : > { %5736 = vmatmul.mubr.f32.gmra.mxu1 %v6752_v49  ;;  %5794 = vmatprep.subr.mxu1 %v5772_v34  ;;  %v7032_v49 = vld [vmem:[%s6703_s17 + $0x68] sm:$0xff] }
 0x675   : > { %5795 = vmatpush3.msra.mxu1 %v5772_v34  ;;  %5738 = vmatprep.mubr.f32.mxu1 %v6755_v50  ;;  %v7037_v50 = vld [vmem:[%s6703_s17 + $0x78] sm:$0xff] }
 0x676   : > { %5796 = vmatprep.subr.mxu1 %v1856_v35 }
 0x677   : > { %5797 = vmatpush3.msra.mxu1 %v1856_v35  ;;  %v4769_v35 = vld [vmem:[%s8161_s2 + $0x190] ss:$0 sm:$0xff] }
 0x678   : > { %5739 = vmatmul.mubr.f32.gmra.mxu1 %v6760_v51  ;;  %5798 = vmatprep.subr.mxu1 %v5769_v32  ;;  %v7040_v51 = vld [vmem:[%s6703_s17 + $0x88] sm:$0xff] }
 0x679   : > { %5799 = vmatpush3.msra.mxu1 %v5769_v32  ;;  %5741 = vmatprep.mubr.f32.mxu1 %v6763_v52  ;;  %v7045_v52 = vld [vmem:[%s6703_s17 + $0x98] sm:$0xff] }
 0x67a   : > { %5800 = vmatprep.subr.mxu1 %v1846_v33 }
 0x67b   : > { %5801 = vmatpush3.msra.mxu1 %v1846_v33 }
 0x67c   : > { %5742 = vmatmul.mubr.f32.gmra.mxu1 %v6768_v53  ;;  %5802 = vmatprep.subr.mxu1 %v6977_v30  ;;  %v7048_v53 = vld [vmem:[%s6703_s17 + $0xa8] sm:$0xff] }
 0x67d   : > { %5803 = vmatpush3.msra.mxu1 %v6977_v30  ;;  %5744 = vmatprep.mubr.f32.mxu1 %v6771_v54  ;;  %v7053_v54 = vld [vmem:[%s6703_s17 + $0xb8] sm:$0xff] }
 0x67e   : > { %5804 = vmatprep.subr.mxu1 %v6979_v31 }
 0x67f   : > { %5805 = vmatpush3.msra.mxu1 %v6979_v31 }
 0x680   : > { %5745 = vmatmul.mubr.f32.gmra.mxu1 %v6776_v55  ;;  %5806 = vmatprep.subr.mxu1 %v6973_v28  ;;  %v7056_v55 = vld [vmem:[%s6703_s17 + $0xc8] sm:$0xff] }
 0x681   : > { %5807 = vmatpush3.msra.mxu1 %v6973_v28  ;;  %5747 = vmatprep.mubr.f32.mxu1 %v6779_v56  ;;  %v7061_v56 = vld [vmem:[%s6703_s17 + $0xd8] sm:$0xff] }
 0x682   : > { %5808 = vmatprep.subr.mxu1 %v6975_v29 }
 0x683   : > { %5809 = vmatpush3.msra.mxu1 %v6975_v29 }
 0x684   : > { %5748 = vmatmul.mubr.f32.gmra.mxu1 %v6784_v57  ;;  %5810 = vmatprep.subr.mxu1 %v6969_v26  ;;  %v7064_v57 = vld [vmem:[%s6703_s17 + $0xe8] sm:$0xff] }
 0x685   : > { %5811 = vmatpush3.msra.mxu1 %v6969_v26  ;;  %5814 = vmatprep.mubr.f32.mxu1 %v7003_v43 }
 0x686   : > { %5812 = vmatprep.subr.mxu1 %v6971_v27 }
 0x687   : > { %5813 = vmatpush3.msra.mxu1 %v6971_v27 }
 0x688   : > { %5815 = vmatmul.mubr.f32.vlgmr.msra.gmra.mxu1 %v7011_v44 }
 0x689   : > { %5817 = vmatprep.mubr.f32.mxu1 %v7015_v45 }
 0x68c   : > { %5818 = vmatmul.mubr.f32.gmra.mxu1 %v7021_v46 }
 0x68d   : > { %5820 = vmatprep.mubr.f32.mxu1 %v7024_v47 }
 0x690   : > { %5821 = vmatmul.mubr.f32.gmra.mxu1 %v7029_v48 }
 0x691   : > { %5823 = vmatprep.mubr.f32.mxu1 %v7032_v49 }
 0x694   : > { %5824 = vmatmul.mubr.f32.gmra.mxu1 %v7037_v50 }
 0x695   : > { %5826 = vmatprep.mubr.f32.mxu1 %v7040_v51 }
 0x698   : > { %5827 = vmatmul.mubr.f32.gmra.mxu1 %v7045_v52 }
 0x699   : > { %5829 = vmatprep.mubr.f32.mxu1 %v7048_v53 }
 0x69c   : > { %5830 = vmatmul.mubr.f32.gmra.mxu1 %v7053_v54 }
 0x69d   : > { %5832 = vmatprep.mubr.f32.mxu1 %v7056_v55 }
 0x6a0   : > { %5833 = vmatmul.mubr.f32.gmra.mxu1 %v7061_v56 }
 0x6a1   : > { %5835 = vmatprep.mubr.f32.mxu1 %v7064_v57 }
 0x6a4   : > { %5836 = vmatmul.mubr.f32.gmra.mxu1 %v7069_v58 }
 0x6a5   : > { %5910 = vmatprep.mubr.f32.mxu1 %v7003_v43 }
 0x728   : > { %v5728_v2 = vpop.f32.mrf.mxu1 }
 0x729   : > { %v7100_v3 = vadd.f32 %v5728_v2, %v4752_v1 }
 0x72a   : > { %v1618_v4 = vpop.f32.mrf.mxu1 }
 0x72b   : > { %v7102_v5 = vadd.f32 %v4752_v1, %v1618_v4  ;;  %4330 = vrot.lane.b32.xlu0 %v7100_v3, %s6566_s19 }
 0x72c   : > { %v5731_v6 = vpop.f32.mrf.mxu1 }
 0x72d   : > { %v7106_v7 = vadd.f32 %v5731_v6, %v4752_v1  ;;  %4328 = vrot.lane.b32.xlu1 %v7102_v5, %s6566_s19 }
 0x72e   : > { %v1628_v8 = vpop.f32.mrf.mxu1 }
 0x72f   : > { %v7110_v9 = vadd.f32 %v4752_v1, %v1628_v8  ;;  %4334 = vrot.lane.b32.xlu0 %v7106_v7, %s6566_s19 }
 0x730   : > { %v5734_v10 = vpop.f32.mrf.mxu1 }
 0x731   : > { %v7114_v11 = vadd.f32 %v5734_v10, %v4752_v1  ;;  %4332 = vrot.lane.b32.xlu1 %v7110_v9, %s6566_s19 }
 0x732   : > { %v1638_v12 = vpop.f32.mrf.mxu1 }
 0x733   : > { %v7118_v13 = vadd.f32 %v4752_v1, %v1638_v12  ;;  %4338 = vrot.lane.b32.xlu0 %v7114_v11, %s6566_s19 }
 0x734   : > { %v5737_v14 = vpop.f32.mrf.mxu1 }
 0x735   : > { %v7122_v15 = vadd.f32 %v5737_v14, %v4752_v1  ;;  %4336 = vrot.lane.b32.xlu1 %v7118_v13, %s6566_s19 }
 0x736   : > { %v1648_v16 = vpop.f32.mrf.mxu1 }
 0x737   : > { %8182 = vst [vmem:[#allocation5_spill] sm:$0xff] %v7122_v15  ;;  %v7126_v17 = vadd.f32 %v4752_v1, %v1648_v16  ;;  %4342 = vrot.lane.b32.xlu0 %v7122_v15, %s6566_s19 }
 0x738   : > { %v5740_v18 = vpop.f32.mrf.mxu1 }
 0x739   : > { %8183 = vst [vmem:[#allocation6_spill] sm:$0xff] %v7126_v17  ;;  %v7130_v21 = vadd.f32 %v5740_v18, %v4752_v1  ;;  %4340 = vrot.lane.b32.xlu1 %v7126_v17, %s6566_s19 }
 0x73a   : > { %v1658_v22 = vpop.f32.mrf.mxu1 }
 0x73b   : > { %v7134_v23 = vadd.f32 %v4752_v1, %v1658_v22  ;;  %4346 = vrot.lane.b32.xlu0 %v7130_v21, %s6566_s19 }
 0x73c   : > { %v5743_v19 = vpop.f32.mrf.mxu1 }
 0x73d   : > { %8184 = vst [vmem:[#allocation7_spill] sm:$0xff] %v7134_v23  ;;  %v7138_v24 = vadd.f32 %v5743_v19, %v4752_v1  ;;  %4344 = vrot.lane.b32.xlu1 %v7134_v23, %s6566_s19 }
 0x73e   : > { %v1668_v25 = vpop.f32.mrf.mxu1 }
 0x73f   : > { %8185 = vst [vmem:[#allocation8_spill] sm:$0xff] %v7138_v24  ;;  %v7142_v26 = vadd.f32 %v4752_v1, %v1668_v25  ;;  %4350 = vrot.lane.b32.xlu0 %v7138_v24, %s6566_s19 }
 0x740   : > { %v5746_v27 = vpop.f32.mrf.mxu1 }
 0x741   : > { %8186 = vst [vmem:[#allocation9_spill] sm:$0xff] %v7142_v26  ;;  %v7146_v28 = vadd.f32 %v5746_v27, %v4752_v1  ;;  %4348 = vrot.lane.b32.xlu1 %v7142_v26, %s6566_s19 }
 0x742   : > { %v1678_v29 = vpop.f32.mrf.mxu1 }
 0x743   : > { %8187 = vst [vmem:[#allocation10_spill] sm:$0xff] %v7146_v28  ;;  %v7150_v30 = vadd.f32 %v4752_v1, %v1678_v29  ;;  %4354 = vrot.lane.b32.xlu0 %v7146_v28, %s6566_s19 }
 0x744   : > { %v5749_v31 = vpop.f32.mrf.mxu1 }
 0x745   : > { %8188 = vst [vmem:[#allocation11_spill] sm:$0xff] %v7150_v30  ;;  %v7154_v32 = vadd.f32 %v5749_v31, %v4752_v1  ;;  %4352 = vrot.lane.b32.xlu1 %v7150_v30, %s6566_s19 }
 0x746   : > { %v1688_v33 = vpop.f32.mrf.mxu1 }
 0x747   : > { %8189 = vst [vmem:[#allocation12_spill] sm:$0xff] %v7154_v32  ;;  %v7158_v34 = vadd.f32 %v4752_v1, %v1688_v33  ;;  %4358 = vrot.lane.b32.xlu0 %v7154_v32, %s6566_s19 }
 0x748   : > { %v5816_v36 = vpop.f32.mrf.mxu1 }
 0x749   : > { %8190 = vst [vmem:[#allocation13_spill] sm:$0xff] %v7158_v34  ;;  %4356 = vrot.lane.b32.xlu1 %v7158_v34, %s6566_s19  ;;  %v1971_v37 = vadd.f32 %v5816_v36, %v4769_v35  ;;  %s4602_s19 = sshll.u32 %s7881_s10, 4  ;;  %s8113_s19 = int_to_ptr.vmem [resolvable:$true] %s4602_s19 }
 0x74a   : > { %v1965_v38 = vpop.f32.mrf.mxu1  ;;  %s6504_s16 = scalar_lea.vmem %s8113_s19, 2048 }
 0x74b   : > { %v1966_v39 = vadd.f32 %v4769_v35, %v1965_v38  ;;  %v2045_v59 = vmax.f32 %v1971_v37, 0.0  ;;  %p6505_p11 = scmp.ne.s32.totalorder %s8113_s19, %s6504_s16 }
 0x74c   : > { %v5819_v41 = vpop.f32.mrf.mxu1 }
 0x74d   : > { %v2044_v42 = vmax.f32 %v1966_v39, 0.0  ;;  %v1981_v61 = vadd.f32 %v5819_v41, %v4769_v35  ;;  %p6506_p12 = pnand %p6505_p11, %p6632_p5 }
 0x74e   : > { %v1975_v40 = vpop.f32.mrf.mxu1 }
 0x74f   : > { %v1976_v62 = vadd.f32 %v4769_v35, %v1975_v40  ;;  %5854 = vmatprep.mubr.msk.f32.mxu0 %vm626_vm1, %v2044_v42  ;;  %v2047_v60 = vmax.f32 %v1981_v61, 0.0  ;;  %p6507_p13 = pneg %p6506_p12 }
 0x750   : > { %v5822_v20 = vpop.f32.mrf.mxu1  ;;  %5855 = vmatmul.mubr.msk.f32.vlgmr.msra.gmra.mxu0 %vm626_vm1, %v2045_v59 }
 0x751   : > { %v2046_v63 = vmax.f32 %v1976_v62, 0.0  ;;  %v1991_v0 = vadd.f32 %v5822_v20, %v4769_v35 }
 0x752   : > { %v1985_v1 = vpop.f32.mrf.mxu1 }
 0x753   : > { %v1986_v2 = vadd.f32 %v4769_v35, %v1985_v1  ;;  %5857 = vmatprep.mubr.msk.f32.mxu0 %vm626_vm1, %v2046_v63  ;;  %v2049_v8 = vmax.f32 %v1991_v0, 0.0 }
 0x754   : > { %v5825_v4 = vpop.f32.mrf.mxu1  ;;  %5858 = vmatmul.mubr.msk.f32.gmra.mxu0 %vm626_vm1, %v2047_v60 }
 0x755   : > { %v2048_v6 = vmax.f32 %v1986_v2, 0.0  ;;  %v2001_v10 = vadd.f32 %v5825_v4, %v4769_v35 }
 0x756   : > { %v1995_v12 = vpop.f32.mrf.mxu1 }
 0x757   : > { %v1996_v14 = vadd.f32 %v4769_v35, %v1995_v12  ;;  %5860 = vmatprep.mubr.msk.f32.mxu0 %vm626_vm1, %v2048_v6  ;;  %v2051_v22 = vmax.f32 %v2001_v10, 0.0  ;;  %v2432_v6 = vld [vmem:[%s8161_s2 + $0x128] sm:$0xff]  ;;  %v2429_v10 = vld [vmem:[%s8161_s2 + $0x110] sm:$0xff] }
 0x758   : > { %v5828_v16 = vpop.f32.mrf.mxu1  ;;  %5861 = vmatmul.mubr.msk.f32.gmra.mxu0 %vm626_vm1, %v2049_v8  ;;  %v2431_v8 = vld [vmem:[%s8161_s2 + $0x120] sm:$0xff]  ;;  %5934 = vmatprep.subr.mxu0 %v2432_v6  ;;  %v2428_v12 = vld [vmem:[%s8161_s2 + $0x108] sm:$0xff] }
 0x759   : > { %v2050_v18 = vmax.f32 %v1996_v14, 0.0  ;;  %v2011_v19 = vadd.f32 %v5828_v16, %v4769_v35  ;;  %5935 = vmatpush3.msra.mxu0 %v2432_v6 }
 0x75a   : > { %v2005_v25 = vpop.f32.mrf.mxu1  ;;  %5936 = vmatprep.subr.mxu0 %v2431_v8 }
 0x75b   : > { %v2006_v27 = vadd.f32 %v4769_v35, %v2005_v25  ;;  %5863 = vmatprep.mubr.msk.f32.mxu0 %vm626_vm1, %v2050_v18  ;;  %v2053_v33 = vmax.f32 %v2011_v19, 0.0  ;;  %5937 = vmatpush3.msra.mxu0 %v2431_v8 }
 0x75c   : > { %v5831_v29 = vpop.f32.mrf.mxu1  ;;  %5864 = vmatmul.mubr.msk.f32.gmra.mxu0 %vm626_vm1, %v2051_v22 }
 0x75d   : > { %v2052_v31 = vmax.f32 %v2006_v27, 0.0  ;;  %v2021_v36 = vadd.f32 %v5831_v29, %v4769_v35 }
 0x75e   : > { %v2015_v37 = vpop.f32.mrf.mxu1 }
 0x75f   : > { %v2016_v38 = vadd.f32 %v4769_v35, %v2015_v37  ;;  %5866 = vmatprep.mubr.msk.f32.mxu0 %vm626_vm1, %v2052_v31  ;;  %v2055_v42 = vmax.f32 %v2021_v36, 0.0 }
 0x760   : > { %v5834_v39 = vpop.f32.mrf.mxu1  ;;  %5867 = vmatmul.mubr.msk.f32.gmra.mxu0 %vm626_vm1, %v2053_v33 }
 0x761   : > { %v2054_v41 = vmax.f32 %v2016_v38, 0.0  ;;  %v2031_v59 = vadd.f32 %v5834_v39, %v4769_v35 }
 0x762   : > { %v2025_v61 = vpop.f32.mrf.mxu1 }
 0x763   : > { %v2026_v40 = vadd.f32 %v4769_v35, %v2025_v61  ;;  %5869 = vmatprep.mubr.msk.f32.mxu0 %vm626_vm1, %v2054_v41  ;;  %v2057_v63 = vmax.f32 %v2031_v59, 0.0  ;;  %v2427_v59 = vld [vmem:[%s8161_s2 + $0x100] sm:$0xff]  ;;  %v4786_v61 = vld [vmem:[%s8161_s2 + $0x198] ss:$0 sm:$0xff] }
 0x764   : > { %v5837_v62 = vpop.f32.mrf.mxu1  ;;  %5870 = vmatmul.mubr.msk.f32.gmra.mxu0 %vm626_vm1, %v2055_v42 }
 0x765   : > { %v2056_v20 = vmax.f32 %v2026_v40, 0.0  ;;  %v2041_v60 = vadd.f32 %v5837_v62, %v4769_v35 }
 0x766   : > { %v2035_v0 = vpop.f32.mrf.mxu1 }
 0x767   : > { %v2036_v1 = vadd.f32 %v4769_v35, %v2035_v0  ;;  %5872 = vmatprep.mubr.msk.f32.mxu0 %vm626_vm1, %v2056_v20  ;;  %v2059_v4 = vmax.f32 %v2041_v60, 0.0  ;;  %v2430_v35 = vld [vmem:[%s8161_s2 + $0x118] sm:$0xff] }
 0x768   : > { %5873 = vmatmul.mubr.msk.f32.gmra.mxu0 %vm626_vm1, %v2057_v63  ;;  %5938 = vmatprep.subr.mxu0 %v2430_v35 }
 0x769   : > { %v2058_v2 = vmax.f32 %v2036_v1, 0.0  ;;  %5939 = vmatpush3.msra.mxu0 %v2430_v35 }
 0x76a   : > { %5940 = vmatprep.subr.mxu0 %v2429_v10 }
 0x76b   : > { %5875 = vmatprep.mubr.msk.f32.mxu0 %vm626_vm1, %v2058_v2  ;;  %5941 = vmatpush3.msra.mxu0 %v2429_v10 }
 0x76c   : > { %5876 = vmatmul.mubr.msk.f32.gmra.mxu0 %vm626_vm1, %v2059_v4  ;;  %5942 = vmatprep.subr.mxu0 %v2428_v12 }
 0x76d   : > { %5943 = vmatpush3.msra.mxu0 %v2428_v12 }
 0x76e   : > { %5944 = vmatprep.subr.mxu0 %v2427_v59 }
 0x76f   : > { %5945 = vmatpush3.msra.mxu0 %v2427_v59 }
 0x810   : > { %v5856_v14 = vpop.f32.mrf.mxu0 }
 0x812   : > { %v2183_v16 = vpop.f32.mrf.mxu0 }
 0x814   : > { %v5859_v18 = vpop.f32.mrf.mxu0 }
 0x816   : > { %v2193_v22 = vpop.f32.mrf.mxu0 }
 0x818   : > { %v5862_v19 = vpop.f32.mrf.mxu0 }
 0x81a   : > { %v2203_v25 = vpop.f32.mrf.mxu0 }
 0x81c   : > { %v5865_v27 = vpop.f32.mrf.mxu0 }
 0x81e   : > { %v2213_v29 = vpop.f32.mrf.mxu0 }
 0x820   : > { %v5868_v31 = vpop.f32.mrf.mxu0 }
 0x822   : > { %v2223_v33 = vpop.f32.mrf.mxu0 }
 0x824   : > { %v5871_v36 = vpop.f32.mrf.mxu0 }
 0x826   : > { %v2233_v37 = vpop.f32.mrf.mxu0 }
 0x828   : > { %v5874_v38 = vpop.f32.mrf.mxu0 }
 0x82a   : > { %v2243_v39 = vpop.f32.mrf.mxu0 }
 0x82c   : > { %v5877_v41 = vpop.f32.mrf.mxu0 }
 0x82d   : > { %5878 = vmatprep.subr.mxu1 %v5877_v41 }
 0x82e   : > { %v2253_v42 = vpop.f32.mrf.mxu0  ;;  %5879 = vmatpush3.msra.mxu1 %v5877_v41 }
 0x82f   : > { %5880 = vmatprep.subr.mxu1 %v2253_v42 }
 0x830   : > { %5881 = vmatpush3.msra.mxu1 %v2253_v42 }
 0x831   : > { %5882 = vmatprep.subr.mxu1 %v5874_v38 }
 0x832   : > { %5883 = vmatpush3.msra.mxu1 %v5874_v38 }
 0x833   : > { %5884 = vmatprep.subr.mxu1 %v2243_v39 }
 0x834   : > { %5885 = vmatpush3.msra.mxu1 %v2243_v39 }
 0x835   : > { %5886 = vmatprep.subr.mxu1 %v5871_v36 }
 0x836   : > { %5887 = vmatpush3.msra.mxu1 %v5871_v36 }
 0x837   : > { %5888 = vmatprep.subr.mxu1 %v2233_v37 }
 0x838   : > { %5889 = vmatpush3.msra.mxu1 %v2233_v37 }
 0x839   : > { %5890 = vmatprep.subr.mxu1 %v5868_v31 }
 0x83a   : > { %5891 = vmatpush3.msra.mxu1 %v5868_v31 }
 0x83b   : > { %5892 = vmatprep.subr.mxu1 %v2223_v33 }
 0x83c   : > { %5893 = vmatpush3.msra.mxu1 %v2223_v33 }
 0x83d   : > { %5894 = vmatprep.subr.mxu1 %v5865_v27 }
 0x83e   : > { %5895 = vmatpush3.msra.mxu1 %v5865_v27 }
 0x83f   : > { %5896 = vmatprep.subr.mxu1 %v2213_v29 }
 0x840   : > { %5897 = vmatpush3.msra.mxu1 %v2213_v29 }
 0x841   : > { %5898 = vmatprep.subr.mxu1 %v5862_v19 }
 0x842   : > { %5899 = vmatpush3.msra.mxu1 %v5862_v19 }
 0x843   : > { %5900 = vmatprep.subr.mxu1 %v2203_v25 }
 0x844   : > { %5901 = vmatpush3.msra.mxu1 %v2203_v25 }
 0x845   : > { %5902 = vmatprep.subr.mxu1 %v5859_v18 }
 0x846   : > { %5903 = vmatpush3.msra.mxu1 %v5859_v18 }
 0x847   : > { %5904 = vmatprep.subr.mxu1 %v2193_v22 }
 0x848   : > { %5905 = vmatpush3.msra.mxu1 %v2193_v22 }
 0x849   : > { %5906 = vmatprep.subr.mxu1 %v5856_v14 }
 0x84a   : > { %5907 = vmatpush3.msra.mxu1 %v5856_v14 }
 0x84b   : > { %5908 = vmatprep.subr.mxu1 %v2183_v16 }
 0x84c   : > { %5909 = vmatpush3.msra.mxu1 %v2183_v16 }
 0x84d   : > { %5911 = vmatmul.mubr.f32.vlgmr.msra.gmra.mxu1 %v7011_v44 }
 0x84e   : > { %5913 = vmatprep.mubr.f32.mxu1 %v7015_v45 }
 0x851   : > { %5914 = vmatmul.mubr.f32.gmra.mxu1 %v7021_v46 }
 0x852   : > { %5916 = vmatprep.mubr.f32.mxu1 %v7024_v47 }
 0x855   : > { %5917 = vmatmul.mubr.f32.gmra.mxu1 %v7029_v48 }
 0x856   : > { %5919 = vmatprep.mubr.f32.mxu1 %v7032_v49 }
 0x859   : > { %5920 = vmatmul.mubr.f32.gmra.mxu1 %v7037_v50 }
 0x85a   : > { %5922 = vmatprep.mubr.f32.mxu1 %v7040_v51 }
 0x85d   : > { %5923 = vmatmul.mubr.f32.gmra.mxu1 %v7045_v52 }
 0x85e   : > { %5925 = vmatprep.mubr.f32.mxu1 %v7048_v53 }
 0x861   : > { %5926 = vmatmul.mubr.f32.gmra.mxu1 %v7053_v54 }
 0x862   : > { %5928 = vmatprep.mubr.f32.mxu1 %v7056_v55 }
 0x865   : > { %5929 = vmatmul.mubr.f32.gmra.mxu1 %v7061_v56 }
 0x866   : > { %5931 = vmatprep.mubr.f32.mxu1 %v7064_v57 }
 0x869   : > { %5932 = vmatmul.mubr.f32.gmra.mxu1 %v7069_v58 }
 0x86a   : > { %6002 = vmatprep.mubr.f32.mxu1 %v7003_v43 }
 0x90d   : > { %v5912_v40 = vpop.f32.mrf.mxu1 }
 0x90e   : > { %v2338_v62 = vadd.f32 %v5912_v40, %v4786_v61 }
 0x90f   : > { %v2332_v20 = vpop.f32.mrf.mxu1 }
 0x910   : > { %v2333_v63 = vadd.f32 %v4786_v61, %v2332_v20  ;;  %v2412_v1 = vmax.f32 %v2338_v62, 0.0 }
 0x911   : > { %v5915_v60 = vpop.f32.mrf.mxu1 }
 0x912   : > { %v2411_v0 = vmax.f32 %v2333_v63, 0.0  ;;  %v2348_v2 = vadd.f32 %v5915_v60, %v4786_v61 }
 0x913   : > { %v2342_v4 = vpop.f32.mrf.mxu1 }
 0x914   : > { %v2343_v6 = vadd.f32 %v4786_v61, %v2342_v4  ;;  %5946 = vmatprep.mubr.msk.f32.mxu0 %vm992_vm2, %v2411_v0  ;;  %v2414_v10 = vmax.f32 %v2348_v2, 0.0 }
 0x915   : > { %v5918_v8 = vpop.f32.mrf.mxu1  ;;  %5947 = vmatmul.mubr.msk.f32.vlgmr.msra.gmra.mxu0 %vm992_vm2, %v2412_v1 }
 0x916   : > { %v2413_v35 = vmax.f32 %v2343_v6, 0.0  ;;  %v2358_v12 = vadd.f32 %v5918_v8, %v4786_v61 }
 0x917   : > { %v2352_v14 = vpop.f32.mrf.mxu1 }
 0x918   : > { %v2353_v16 = vadd.f32 %v4786_v61, %v2352_v14  ;;  %5949 = vmatprep.mubr.msk.f32.mxu0 %vm992_vm2, %v2413_v35  ;;  %v2416_v19 = vmax.f32 %v2358_v12, 0.0 }
 0x919   : > { %v5921_v18 = vpop.f32.mrf.mxu1  ;;  %5950 = vmatmul.mubr.msk.f32.gmra.mxu0 %vm992_vm2, %v2414_v10 }
 0x91a   : > { %v2415_v22 = vmax.f32 %v2353_v16, 0.0  ;;  %v2368_v25 = vadd.f32 %v5921_v18, %v4786_v61 }
 0x91b   : > { %v2362_v27 = vpop.f32.mrf.mxu1 }
 0x91c   : > { %v2363_v29 = vadd.f32 %v4786_v61, %v2362_v27  ;;  %5952 = vmatprep.mubr.msk.f32.mxu0 %vm992_vm2, %v2415_v22  ;;  %v2418_v36 = vmax.f32 %v2368_v25, 0.0  ;;  %v2793_v22 = vld [vmem:[%s8161_s2 + $0x138] sm:$0xff] }
 0x91d   : > { %v5924_v31 = vpop.f32.mrf.mxu1  ;;  %5953 = vmatmul.mubr.msk.f32.gmra.mxu0 %vm992_vm2, %v2416_v19  ;;  %v2792_v19 = vld [vmem:[%s8161_s2 + $0x130] sm:$0xff]  ;;  %6026 = vmatprep.subr.mxu0 %v2793_v22 }
 0x91e   : > { %v2417_v33 = vmax.f32 %v2363_v29, 0.0  ;;  %v2378_v37 = vadd.f32 %v5924_v31, %v4786_v61  ;;  %6027 = vmatpush3.msra.mxu0 %v2793_v22 }
 0x91f   : > { %v2372_v38 = vpop.f32.mrf.mxu1  ;;  %6028 = vmatprep.subr.mxu0 %v2792_v19 }
 0x920   : > { %v2373_v39 = vadd.f32 %v4786_v61, %v2372_v38  ;;  %5955 = vmatprep.mubr.msk.f32.mxu0 %vm992_vm2, %v2417_v33  ;;  %v2420_v59 = vmax.f32 %v2378_v37, 0.0  ;;  %6029 = vmatpush3.msra.mxu0 %v2792_v19 }
 0x921   : > { %v5927_v41 = vpop.f32.mrf.mxu1  ;;  %5956 = vmatmul.mubr.msk.f32.gmra.mxu0 %vm992_vm2, %v2418_v36 }
 0x922   : > { %v2419_v42 = vmax.f32 %v2373_v39, 0.0  ;;  %v2388_v40 = vadd.f32 %v5927_v41, %v4786_v61 }
 0x923   : > { %v2382_v62 = vpop.f32.mrf.mxu1 }
 0x924   : > { %v2383_v20 = vadd.f32 %v4786_v61, %v2382_v62  ;;  %5958 = vmatprep.mubr.msk.f32.mxu0 %vm992_vm2, %v2419_v42  ;;  %v2422_v0 = vmax.f32 %v2388_v40, 0.0 }
 0x925   : > { %v5930_v63 = vpop.f32.mrf.mxu1  ;;  %5959 = vmatmul.mubr.msk.f32.gmra.mxu0 %vm992_vm2, %v2420_v59 }
 0x926   : > { %v2421_v60 = vmax.f32 %v2383_v20, 0.0  ;;  %v2398_v1 = vadd.f32 %v5930_v63, %v4786_v61 }
 0x927   : > { %v2392_v2 = vpop.f32.mrf.mxu1 }
 0x928   : > { %v2393_v4 = vadd.f32 %v4786_v61, %v2392_v2  ;;  %5961 = vmatprep.mubr.msk.f32.mxu0 %vm992_vm2, %v2421_v60  ;;  %v2424_v35 = vmax.f32 %v2398_v1, 0.0 }
 0x929   : > { %v5933_v6 = vpop.f32.mrf.mxu1  ;;  %5962 = vmatmul.mubr.msk.f32.gmra.mxu0 %vm992_vm2, %v2422_v0 }
 0x92a   : > { %v2423_v8 = vmax.f32 %v2393_v4, 0.0  ;;  %v2408_v10 = vadd.f32 %v5933_v6, %v4786_v61 }
 0x92b   : > { %v2402_v12 = vpop.f32.mrf.mxu1 }
 0x92c   : > { %v2403_v14 = vadd.f32 %v4786_v61, %v2402_v12  ;;  %5964 = vmatprep.mubr.msk.f32.mxu0 %vm992_vm2, %v2423_v8  ;;  %v2426_v18 = vmax.f32 %v2408_v10, 0.0 }
 0x92d   : > { %5965 = vmatmul.mubr.msk.f32.gmra.mxu0 %vm992_vm2, %v2424_v35 }
 0x92e   : > { %v2425_v16 = vmax.f32 %v2403_v14, 0.0 }
 0x930   : > { %5967 = vmatprep.mubr.msk.f32.mxu0 %vm992_vm2, %v2425_v16 }
 0x931   : > { %5968 = vmatmul.mubr.msk.f32.gmra.mxu0 %vm992_vm2, %v2426_v18 }
 0x9d5   : > { %v5948_v61 = vpop.f32.mrf.mxu0 }
 0x9d7   : > { %v2548_v25 = vpop.f32.mrf.mxu0 }
 0x9d9   : > { %v5951_v27 = vpop.f32.mrf.mxu0 }
 0x9db   : > { %v2558_v29 = vpop.f32.mrf.mxu0 }
 0x9dd   : > { %v5954_v31 = vpop.f32.mrf.mxu0 }
 0x9df   : > { %v2568_v33 = vpop.f32.mrf.mxu0 }
 0x9e1   : > { %v5957_v36 = vpop.f32.mrf.mxu0 }
 0x9e3   : > { %v2578_v37 = vpop.f32.mrf.mxu0 }
 0x9e5   : > { %v5960_v38 = vpop.f32.mrf.mxu0 }
 0x9e7   : > { %v2588_v39 = vpop.f32.mrf.mxu0 }
 0x9e9   : > { %v5963_v41 = vpop.f32.mrf.mxu0 }
 0x9eb   : > { %v2598_v42 = vpop.f32.mrf.mxu0 }
 0x9ed   : > { %v5966_v59 = vpop.f32.mrf.mxu0 }
 0x9ef   : > { %v2608_v40 = vpop.f32.mrf.mxu0 }
 0x9f1   : > { %v5969_v62 = vpop.f32.mrf.mxu0 }
 0x9f2   : > { %5970 = vmatprep.subr.mxu1 %v5969_v62 }
 0x9f3   : > { %v2618_v20 = vpop.f32.mrf.mxu0  ;;  %5971 = vmatpush3.msra.mxu1 %v5969_v62 }
 0x9f4   : > { %5972 = vmatprep.subr.mxu1 %v2618_v20 }
 0x9f5   : > { %5973 = vmatpush3.msra.mxu1 %v2618_v20 }
 0x9f6   : > { %5974 = vmatprep.subr.mxu1 %v5966_v59 }
 0x9f7   : > { %5975 = vmatpush3.msra.mxu1 %v5966_v59 }
 0x9f8   : > { %5976 = vmatprep.subr.mxu1 %v2608_v40 }
 0x9f9   : > { %5977 = vmatpush3.msra.mxu1 %v2608_v40 }
 0x9fa   : > { %5978 = vmatprep.subr.mxu1 %v5963_v41 }
 0x9fb   : > { %5979 = vmatpush3.msra.mxu1 %v5963_v41 }
 0x9fc   : > { %5980 = vmatprep.subr.mxu1 %v2598_v42 }
 0x9fd   : > { %5981 = vmatpush3.msra.mxu1 %v2598_v42 }
 0x9fe   : > { %5982 = vmatprep.subr.mxu1 %v5960_v38 }
 0x9ff   : > { %5983 = vmatpush3.msra.mxu1 %v5960_v38 }
 0xa00   : > { %5984 = vmatprep.subr.mxu1 %v2588_v39 }
 0xa01   : > { %5985 = vmatpush3.msra.mxu1 %v2588_v39 }
 0xa02   : > { %5986 = vmatprep.subr.mxu1 %v5957_v36 }
 0xa03   : > { %5987 = vmatpush3.msra.mxu1 %v5957_v36 }
 0xa04   : > { %5988 = vmatprep.subr.mxu1 %v2578_v37 }
 0xa05   : > { %5989 = vmatpush3.msra.mxu1 %v2578_v37 }
 0xa06   : > { %5990 = vmatprep.subr.mxu1 %v5954_v31 }
 0xa07   : > { %5991 = vmatpush3.msra.mxu1 %v5954_v31 }
 0xa08   : > { %5992 = vmatprep.subr.mxu1 %v2568_v33 }
 0xa09   : > { %5993 = vmatpush3.msra.mxu1 %v2568_v33 }
 0xa0a   : > { %5994 = vmatprep.subr.mxu1 %v5951_v27 }
 0xa0b   : > { %5995 = vmatpush3.msra.mxu1 %v5951_v27 }
 0xa0c   : > { %5996 = vmatprep.subr.mxu1 %v2558_v29 }
 0xa0d   : > { %5997 = vmatpush3.msra.mxu1 %v2558_v29 }
 0xa0e   : > { %5998 = vmatprep.subr.mxu1 %v5948_v61 }
 0xa0f   : > { %5999 = vmatpush3.msra.mxu1 %v5948_v61 }
 0xa10   : > { %6000 = vmatprep.subr.mxu1 %v2548_v25 }
 0xa11   : > { %6001 = vmatpush3.msra.mxu1 %v2548_v25 }
 0xa12   : > { %6003 = vmatmul.mubr.f32.vlgmr.msra.gmra.mxu1 %v7011_v44  ;;  %v4803_v44 = vld [vmem:[%s8161_s2 + $0x1a0] ss:$0 sm:$0xff] }
 0xa13   : > { %6005 = vmatprep.mubr.f32.mxu1 %v7015_v45 }
 0xa16   : > { %6006 = vmatmul.mubr.f32.gmra.mxu1 %v7021_v46 }
 0xa17   : > { %6008 = vmatprep.mubr.f32.mxu1 %v7024_v47 }
 0xa1a   : > { %6009 = vmatmul.mubr.f32.gmra.mxu1 %v7029_v48 }
 0xa1b   : > { %6011 = vmatprep.mubr.f32.mxu1 %v7032_v49 }
 0xa1e   : > { %6012 = vmatmul.mubr.f32.gmra.mxu1 %v7037_v50 }
 0xa1f   : > { %6014 = vmatprep.mubr.f32.mxu1 %v7040_v51 }
 0xa22   : > { %6015 = vmatmul.mubr.f32.gmra.mxu1 %v7045_v52 }
 0xa23   : > { %6017 = vmatprep.mubr.f32.mxu1 %v7048_v53 }
 0xa26   : > { %6018 = vmatmul.mubr.f32.gmra.mxu1 %v7053_v54 }
 0xa27   : > { %6020 = vmatprep.mubr.f32.mxu1 %v7056_v55 }
 0xa2a   : > { %6021 = vmatmul.mubr.f32.gmra.mxu1 %v7061_v56 }
 0xa2b   : > { %6023 = vmatprep.mubr.f32.mxu1 %v7064_v57 }
 0xa2e   : > { %6024 = vmatmul.mubr.f32.gmra.mxu1 %v7069_v58 }
 0xa2f   : > { %6095 = vmatprep.mubr.f32.mxu1 %v7032_v49 }
 0xad2   : > { %v6004_v45 = vpop.f32.mrf.mxu1 }
 0xad3   : > { %v2703_v46 = vadd.f32 %v6004_v45, %v4803_v44 }
 0xad4   : > { %v2697_v47 = vpop.f32.mrf.mxu1 }
 0xad5   : > { %v2698_v48 = vadd.f32 %v4803_v44, %v2697_v47  ;;  %v2777_v52 = vmax.f32 %v2703_v46, 0.0 }
 0xad6   : > { %v6007_v50 = vpop.f32.mrf.mxu1 }
 0xad7   : > { %v2776_v51 = vmax.f32 %v2698_v48, 0.0  ;;  %v2713_v53 = vadd.f32 %v6007_v50, %v4803_v44 }
 0xad8   : > { %v2707_v54 = vpop.f32.mrf.mxu1 }
 0xad9   : > { %v2708_v55 = vadd.f32 %v4803_v44, %v2707_v54  ;;  %6030 = vmatprep.mubr.msk.f32.mxu0 %vm1354_vm3, %v2776_v51  ;;  %v2779_v57 = vmax.f32 %v2713_v53, 0.0 }
 0xada   : > { %v6010_v56 = vpop.f32.mrf.mxu1  ;;  %6031 = vmatmul.mubr.msk.f32.vlgmr.msra.gmra.mxu0 %vm1354_vm3, %v2777_v52 }
 0xadb   : > { %v2778_v49 = vmax.f32 %v2708_v55, 0.0  ;;  %v2723_v58 = vadd.f32 %v6010_v56, %v4803_v44 }
 0xadc   : > { %v2717_v63 = vpop.f32.mrf.mxu1 }
 0xadd   : > { %v2718_v60 = vadd.f32 %v4803_v44, %v2717_v63  ;;  %6033 = vmatprep.mubr.msk.f32.mxu0 %vm1354_vm3, %v2778_v49  ;;  %v2781_v2 = vmax.f32 %v2723_v58, 0.0 }
 0xade   : > { %v6013_v0 = vpop.f32.mrf.mxu1  ;;  %6034 = vmatmul.mubr.msk.f32.gmra.mxu0 %vm1354_vm3, %v2779_v57 }
 0xadf   : > { %v2780_v1 = vmax.f32 %v2718_v60, 0.0  ;;  %v2733_v4 = vadd.f32 %v6013_v0, %v4803_v44  ;;  %v3142_v0 = vld [vmem:[%s8161_s2 + $0x168] sm:$0xff] }
 0xae0   : > { %v2727_v6 = vpop.f32.mrf.mxu1 }
 0xae1   : > { %v2728_v8 = vadd.f32 %v4803_v44, %v2727_v6  ;;  %6036 = vmatprep.mubr.msk.f32.mxu0 %vm1354_vm3, %v2780_v1  ;;  %v2783_v12 = vmax.f32 %v2733_v4, 0.0  ;;  %v3138_v1 = vld [vmem:[%s8161_s2 + $0x148] sm:$0xff]  ;;  %v6459_v4 = vld [vmem:[%s6703_s17 + $0x78] sm:$0xff] }
 0xae2   : > { %v6016_v35 = vpop.f32.mrf.mxu1  ;;  %6037 = vmatmul.mubr.msk.f32.gmra.mxu0 %vm1354_vm3, %v2781_v2  ;;  %v6458_v2 = vld [vmem:[%s6703_s17 + $0x18] sm:$0xff]  ;;  %v6460_v6 = vld [vmem:[%s6703_s17 + $0x28] sm:$0xff] }
 0xae3   : > { %v2782_v10 = vmax.f32 %v2728_v8, 0.0  ;;  %v2743_v14 = vadd.f32 %v6016_v35, %v4803_v44  ;;  %v6461_v8 = vld [vmem:[%s6703_s17 + $0x88] sm:$0xff]  ;;  %v3141_v35 = vld [vmem:[%s8161_s2 + $0x160] sm:$0xff] }
 0xae4   : > { %v2737_v16 = vpop.f32.mrf.mxu1 }
 0xae5   : > { %v2738_v18 = vadd.f32 %v4803_v44, %v2737_v16  ;;  %6039 = vmatprep.mubr.msk.f32.mxu0 %vm1354_vm3, %v2782_v10  ;;  %v2785_v61 = vmax.f32 %v2743_v14, 0.0  ;;  %v3137_v10 = vld [vmem:[%s8161_s2 + $0x140] sm:$0xff]  ;;  %v6463_v14 = vld [vmem:[%s6703_s17 + $0x98] sm:$0xff]  ;;  %v6464_v16 = vld [vmem:[%s6703_s17 + $0x48] sm:$0xff] }
 0xae6   : > { %v6019_v22 = vpop.f32.mrf.mxu1  ;;  %6040 = vmatmul.mubr.msk.f32.gmra.mxu0 %vm1354_vm3, %v2783_v12  ;;  %v6462_v12 = vld [vmem:[%s6703_s17 + $0x38] sm:$0xff] }
 0xae7   : > { %v2784_v19 = vmax.f32 %v2738_v18, 0.0  ;;  %v2753_v25 = vadd.f32 %v6019_v22, %v4803_v44  ;;  %v6465_v18 = vld [vmem:[%s6703_s17 + $0xa8] sm:$0xff]  ;;  %v3140_v22 = vld [vmem:[%s8161_s2 + $0x158] sm:$0xff] }
 0xae8   : > { %v2747_v27 = vpop.f32.mrf.mxu1 }
 0xae9   : > { %v2748_v29 = vadd.f32 %v4803_v44, %v2747_v27  ;;  %6042 = vmatprep.mubr.msk.f32.mxu0 %vm1354_vm3, %v2784_v19  ;;  %v2787_v36 = vmax.f32 %v2753_v25, 0.0  ;;  %v6466_v19 = vld [vmem:[%s6703_s17 + $0x58] sm:$0xff]  ;;  %v3139_v25 = vld [vmem:[%s8161_s2 + $0x150] sm:$0xff]  ;;  %v6468_v27 = vld [vmem:[%s6703_s17 + $0xc8] sm:$0xff] }
 0xaea   : > { %v6022_v31 = vpop.f32.mrf.mxu1  ;;  %6043 = vmatmul.mubr.msk.f32.gmra.mxu0 %vm1354_vm3, %v2785_v61  ;;  %v6467_v61 = vld [vmem:[%s6703_s17 + $0xb8] sm:$0xff] }
 0xaeb   : > { %v2786_v33 = vmax.f32 %v2748_v29, 0.0  ;;  %v2763_v37 = vadd.f32 %v6022_v31, %v4803_v44  ;;  %v6469_v29 = vld [vmem:[%s6664_s9] sm:$0xff]  ;;  %v6470_v31 = vld [vmem:[%s6703_s17 + $0xd8] sm:$0xff] }
 0xaec   : > { %v2757_v38 = vpop.f32.mrf.mxu1 }
 0xaed   : > { %v2758_v39 = vadd.f32 %v4803_v44, %v2757_v38  ;;  %6045 = vmatprep.mubr.msk.f32.mxu0 %vm1354_vm3, %v2786_v33  ;;  %v2789_v59 = vmax.f32 %v2763_v37, 0.0  ;;  %v6471_v33 = vld [vmem:[%s6703_s17 + $0xe8] sm:$0xff]  ;;  %v6473_v37 = vld [vmem:[%s6664_s9 + $0x10] sm:$0xff]  ;;  %v6474_v38 = vld [vmem:[%s6703_s17 + $0xf8] sm:$0xff]  ;;  %s8111_s17 = scalar_lea.hbm %s8162_s3, %s4895_s11 }
 0xaee   : > { %v6025_v41 = vpop.f32.mrf.mxu1  ;;  %6046 = vmatmul.mubr.msk.f32.gmra.mxu0 %vm1354_vm3, %v2787_v36  ;;  %v6472_v36 = vld [vmem:[%s6664_s9 + $0x8] sm:$0xff] }
 0xaef   : > { %v2788_v42 = vmax.f32 %v2758_v39, 0.0  ;;  %v2773_v40 = vadd.f32 %v6025_v41, %v4803_v44  ;;  %v6475_v39 = vld [vmem:[%s6664_s9 + $0x18] sm:$0xff]  ;;  %v6476_v41 = vld [vmem:[%s6664_s9 + $0x20] sm:$0xff] }
 0xaf0   : > { %v2767_v62 = vpop.f32.mrf.mxu1 }
 0xaf1   : > { %v2768_v20 = vadd.f32 %v4803_v44, %v2767_v62  ;;  %6048 = vmatprep.mubr.msk.f32.mxu0 %vm1354_vm3, %v2788_v42  ;;  %v2791_v46 = vmax.f32 %v2773_v40, 0.0  ;;  %v6477_v42 = vld [vmem:[%s6664_s9 + $0x28] sm:$0xff]  ;;  %v6479_v40 = vld [vmem:[%s6664_s9 + $0x38] sm:$0xff]  ;;  %v6480_v62 = vld [vmem:[%s6664_s9 + $0x40] sm:$0xff] }
 0xaf2   : > { %6049 = vmatmul.mubr.msk.f32.gmra.mxu0 %vm1354_vm3, %v2789_v59  ;;  %v6478_v59 = vld [vmem:[%s6664_s9 + $0x30] sm:$0xff] }
 0xaf3   : > { %v2790_v45 = vmax.f32 %v2768_v20, 0.0  ;;  %v6481_v20 = vld [vmem:[%s6664_s9 + $0x48] sm:$0xff] }
 0xaf5   : > { %6051 = vmatprep.mubr.msk.f32.mxu0 %vm1354_vm3, %v2790_v45  ;;  %v6482_v45 = vld [vmem:[%s6664_s9 + $0x50] sm:$0xff] }
 0xaf6   : > { %6052 = vmatmul.mubr.msk.f32.gmra.mxu0 %vm1354_vm3, %v2791_v46  ;;  %v6483_v46 = vld [vmem:[%s6664_s9 + $0x58] sm:$0xff] }
 0xaf7   : > { %6086 = vmatprep.mubr.f32.mxu0 %v7003_v43 }
 0xb9a   : > { %v7278_v47 = vpop.f32.mrf.mxu0 }
 0xb9c   : > { %v7280_v48 = vpop.f32.mrf.mxu0 }
 0xb9e   : > { %v7282_v50 = vpop.f32.mrf.mxu0 }
 0xba0   : > { %v7284_v51 = vpop.f32.mrf.mxu0 }
 0xba2   : > { %v6038_v44 = vpop.f32.mrf.mxu0 }
 0xba4   : > { %v2929_v52 = vpop.f32.mrf.mxu0 }
 0xba6   : > { %v6041_v53 = vpop.f32.mrf.mxu0 }
 0xba8   : > { %v2939_v54 = vpop.f32.mrf.mxu0 }
 0xbaa   : > { %v6044_v55 = vpop.f32.mrf.mxu0 }
 0xbac   : > { %v2949_v56 = vpop.f32.mrf.mxu0 }
 0xbae   : > { %v6047_v49 = vpop.f32.mrf.mxu0 }
 0xbb0   : > { %v2959_v57 = vpop.f32.mrf.mxu0 }
 0xbb2   : > { %v6050_v58 = vpop.f32.mrf.mxu0 }
 0xbb4   : > { %v2969_v63 = vpop.f32.mrf.mxu0 }
 0xbb6   : > { %v6053_v60 = vpop.f32.mrf.mxu0 }
 0xbb7   : > { %6054 = vmatprep.subr.mxu0 %v6053_v60  ;;  %6218 = vmatprep.subr.mxu1 %v6053_v60 }
 0xbb8   : > { %v2979_v43 = vpop.f32.mrf.mxu0  ;;  %6055 = vmatpush3.msra.mxu0 %v6053_v60  ;;  %6234 = vmatpush3.msra.mxu1 %v6053_v60  ;;  %v6498_v60 = vld [vmem:[%s6664_s9 + $0xd0] sm:$0xff] }
 0xbb9   : > { %6056 = vmatprep.subr.mxu0 %v2979_v43  ;;  %6219 = vmatprep.subr.mxu1 %v2979_v43 }
 0xbba   : > { %6057 = vmatpush3.msra.mxu0 %v2979_v43  ;;  %6235 = vmatpush3.msra.mxu1 %v2979_v43  ;;  %v6499_v43 = vld [vmem:[%s6664_s9 + $0xd8] sm:$0xff] }
 0xbbb   : > { %6058 = vmatprep.subr.mxu0 %v6050_v58  ;;  %6220 = vmatprep.subr.mxu1 %v6050_v58 }
 0xbbc   : > { %6059 = vmatpush3.msra.mxu0 %v6050_v58  ;;  %6236 = vmatpush3.msra.mxu1 %v6050_v58  ;;  %v6496_v58 = vld [vmem:[%s6664_s9 + $0xc0] sm:$0xff] }
 0xbbd   : > { %6060 = vmatprep.subr.mxu0 %v2969_v63  ;;  %6221 = vmatprep.subr.mxu1 %v2969_v63 }
 0xbbe   : > { %6061 = vmatpush3.msra.mxu0 %v2969_v63  ;;  %6237 = vmatpush3.msra.mxu1 %v2969_v63  ;;  %v6497_v63 = vld [vmem:[%s6664_s9 + $0xc8] sm:$0xff] }
 0xbbf   : > { %6062 = vmatprep.subr.mxu0 %v6047_v49  ;;  %6222 = vmatprep.subr.mxu1 %v6047_v49 }
 0xbc0   : > { %6063 = vmatpush3.msra.mxu0 %v6047_v49  ;;  %6238 = vmatpush3.msra.mxu1 %v6047_v49  ;;  %v6494_v49 = vld [vmem:[%s6664_s9 + $0xb0] sm:$0xff] }
 0xbc1   : > { %6064 = vmatprep.subr.mxu0 %v2959_v57  ;;  %6223 = vmatprep.subr.mxu1 %v2959_v57 }
 0xbc2   : > { %6065 = vmatpush3.msra.mxu0 %v2959_v57  ;;  %6239 = vmatpush3.msra.mxu1 %v2959_v57  ;;  %v6495_v57 = vld [vmem:[%s6664_s9 + $0xb8] sm:$0xff] }
 0xbc3   : > { %6066 = vmatprep.subr.mxu0 %v6044_v55  ;;  %6224 = vmatprep.subr.mxu1 %v6044_v55 }
 0xbc4   : > { %6067 = vmatpush3.msra.mxu0 %v6044_v55  ;;  %6240 = vmatpush3.msra.mxu1 %v6044_v55  ;;  %v6492_v55 = vld [vmem:[%s6664_s9 + $0xa0] sm:$0xff] }
 0xbc5   : > { %6068 = vmatprep.subr.mxu0 %v2949_v56  ;;  %6225 = vmatprep.subr.mxu1 %v2949_v56 }
 0xbc6   : > { %6069 = vmatpush3.msra.mxu0 %v2949_v56  ;;  %6241 = vmatpush3.msra.mxu1 %v2949_v56  ;;  %v6493_v56 = vld [vmem:[%s6664_s9 + $0xa8] sm:$0xff] }
 0xbc7   : > { %6070 = vmatprep.subr.mxu0 %v6041_v53  ;;  %6226 = vmatprep.subr.mxu1 %v6041_v53 }
 0xbc8   : > { %6071 = vmatpush3.msra.mxu0 %v6041_v53  ;;  %6242 = vmatpush3.msra.mxu1 %v6041_v53  ;;  %v6490_v53 = vld [vmem:[%s6664_s9 + $0x90] sm:$0xff] }
 0xbc9   : > { %6072 = vmatprep.subr.mxu0 %v2939_v54  ;;  %6227 = vmatprep.subr.mxu1 %v2939_v54 }
 0xbca   : > { %6073 = vmatpush3.msra.mxu0 %v2939_v54  ;;  %6243 = vmatpush3.msra.mxu1 %v2939_v54  ;;  %v6491_v54 = vld [vmem:[%s6664_s9 + $0x98] sm:$0xff] }
 0xbcb   : > { %6074 = vmatprep.subr.mxu0 %v6038_v44  ;;  %6228 = vmatprep.subr.mxu1 %v6038_v44 }
 0xbcc   : > { %6075 = vmatpush3.msra.mxu0 %v6038_v44  ;;  %6244 = vmatpush3.msra.mxu1 %v6038_v44  ;;  %v6488_v44 = vld [vmem:[%s6664_s9 + $0x80] sm:$0xff] }
 0xbcd   : > { %6076 = vmatprep.subr.mxu0 %v2929_v52  ;;  %6229 = vmatprep.subr.mxu1 %v2929_v52 }
 0xbce   : > { %6077 = vmatpush3.msra.mxu0 %v2929_v52  ;;  %6245 = vmatpush3.msra.mxu1 %v2929_v52  ;;  %v6489_v52 = vld [vmem:[%s6664_s9 + $0x88] sm:$0xff] }
 0xbcf   : > { %6078 = vmatprep.subr.mxu0 %v7282_v50  ;;  %6230 = vmatprep.subr.mxu1 %v7282_v50 }
 0xbd0   : > { %6079 = vmatpush3.msra.mxu0 %v7282_v50  ;;  %6246 = vmatpush3.msra.mxu1 %v7282_v50  ;;  %v6486_v50 = vld [vmem:[%s6664_s9 + $0x70] sm:$0xff] }
 0xbd1   : > { %6080 = vmatprep.subr.mxu0 %v7284_v51  ;;  %6231 = vmatprep.subr.mxu1 %v7284_v51 }
 0xbd2   : > { %6081 = vmatpush3.msra.mxu0 %v7284_v51  ;;  %6247 = vmatpush3.msra.mxu1 %v7284_v51  ;;  %v6487_v51 = vld [vmem:[%s6664_s9 + $0x78] sm:$0xff] }
 0xbd3   : > { %6082 = vmatprep.subr.mxu0 %v7278_v47  ;;  %6232 = vmatprep.subr.mxu1 %v7278_v47 }
 0xbd4   : > { %6083 = vmatpush3.msra.mxu0 %v7278_v47  ;;  %6248 = vmatpush3.msra.mxu1 %v7278_v47  ;;  %v6484_v47 = vld [vmem:[%s6664_s9 + $0x60] sm:$0xff] }
 0xbd5   : > { %6084 = vmatprep.subr.mxu0 %v7280_v48  ;;  %6233 = vmatprep.subr.mxu1 %v7280_v48 }
 0xbd6   : > { %6085 = vmatpush3.msra.mxu0 %v7280_v48  ;;  %6249 = vmatpush3.msra.mxu1 %v7280_v48  ;;  %v6485_v48 = vld [vmem:[%s6664_s9 + $0x68] sm:$0xff] }
 0xbd7   : > { %6087 = vmatmul.mubr.f32.vlgmr.msra.gmra.mxu0 %v6458_v2  ;;  %6096 = vmatmul.mubr.f32.vlgmr.msra.gmra.mxu1 %v6459_v4  ;;  %v6502_v2 = vld [vmem:[%s6664_s9 + $0xf0] sm:$0xff]  ;;  %v6503_v4 = vld [vmem:[%s6664_s9 + $0xf8] sm:$0xff] }
 0xbd8   : > { %6089 = vmatprep.mubr.f32.mxu0 %v6460_v6  ;;  %6098 = vmatprep.mubr.f32.mxu1 %v6461_v8  ;;  %v7433_v6 = vld [vmem:[%s8161_s2 + $0x1a8] ss:$0 sm:$0xff] }
 0xbd9   : > { %6110 = vmatprep.subr.mxu0 %v3142_v0  ;;  %6166 = vmatprep.subr.mxu1 %v3138_v1 }
 0xbda   : > { %6111 = vmatpush3.msra.mxu0 %v3142_v0  ;;  %6167 = vmatpush3.msra.mxu1 %v3138_v1  ;;  %v6500_v0 = vld [vmem:[%s6664_s9 + $0xe0] sm:$0xff]  ;;  %v6501_v1 = vld [vmem:[%s6664_s9 + $0xe8] sm:$0xff]  ;;  %s6567_s9 = smov 32  }
 0xbdb   : > { %6090 = vmatmul.mubr.f32.gmra.mxu0 %v6462_v12  ;;  %6099 = vmatmul.mubr.f32.gmra.mxu1 %v6463_v14 }
 0xbdc   : > { %6092 = vmatprep.mubr.f32.mxu0 %v6464_v16  ;;  %6101 = vmatprep.mubr.f32.mxu1 %v6465_v18 }
 0xbdd   : > { %6112 = vmatprep.subr.mxu0 %v3141_v35  ;;  %6168 = vmatprep.subr.mxu1 %v3137_v10 }
 0xbde   : > { %6113 = vmatpush3.msra.mxu0 %v3141_v35  ;;  %6169 = vmatpush3.msra.mxu1 %v3137_v10 }
 0xbdf   : > { %6093 = vmatmul.mubr.f32.gmra.mxu0 %v6466_v19  ;;  %6102 = vmatmul.mubr.f32.gmra.mxu1 %v6467_v61 }
 0xbe0   : > { %6104 = vmatprep.mubr.f32.mxu1 %v6468_v27  ;;  %6114 = vmatprep.subr.mxu0 %v3140_v22 }
 0xbe1   : > { %6115 = vmatpush3.msra.mxu0 %v3140_v22  ;;  %6118 = vmatprep.mubr.msk.f32.mxu0 %vm258_vm0, %v6469_v29 }
 0xbe2   : > { %6116 = vmatprep.subr.mxu0 %v3139_v25 }
 0xbe3   : > { %6105 = vmatmul.mubr.f32.gmra.mxu1 %v6470_v31  ;;  %6117 = vmatpush3.msra.mxu0 %v3139_v25 }
 0xbe4   : > { %6107 = vmatprep.mubr.f32.mxu1 %v6471_v33  ;;  %6119 = vmatmul.mubr.msk.f32.vlgmr.msra.gmra.mxu0 %vm258_vm0, %v6472_v36 }
 0xbe5   : > { %6121 = vmatprep.mubr.msk.f32.mxu0 %vm258_vm0, %v6473_v37 }
 0xbe7   : > { %6108 = vmatmul.mubr.f32.gmra.mxu1 %v6474_v38 }
 0xbe8   : > { %6170 = vmatprep.mubr.msk.f32.mxu1 %vm1354_vm3, %v7102_v5  ;;  %6122 = vmatmul.mubr.msk.f32.gmra.mxu0 %vm258_vm0, %v6475_v39 }
 0xbe9   : > { %6124 = vmatprep.mubr.msk.f32.mxu0 %vm258_vm0, %v6476_v41 }
 0xbeb   : > { %6171 = vmatmul.mubr.msk.f32.vlgmr.msra.gmra.mxu1 %vm1354_vm3, %v7100_v3 }
 0xbec   : > { %6173 = vmatprep.mubr.msk.f32.mxu1 %vm1354_vm3, %v7110_v9  ;;  %6125 = vmatmul.mubr.msk.f32.gmra.mxu0 %vm258_vm0, %v6477_v42 }
 0xbed   : > { %6127 = vmatprep.mubr.msk.f32.mxu0 %vm258_vm0, %v6478_v59 }
 0xbef   : > { %6174 = vmatmul.mubr.msk.f32.gmra.mxu1 %vm1354_vm3, %v7106_v7 }
 0xbf0   : > { %6176 = vmatprep.mubr.msk.f32.mxu1 %vm1354_vm3, %v7118_v13  ;;  %6128 = vmatmul.mubr.msk.f32.gmra.mxu0 %vm258_vm0, %v6479_v40 }
 0xbf1   : > { %6130 = vmatprep.mubr.msk.f32.mxu0 %vm258_vm0, %v6480_v62 }
 0xbf3   : > { %6177 = vmatmul.mubr.msk.f32.gmra.mxu1 %vm1354_vm3, %v7114_v11 }
 0xbf4   : > { %6179 = vmatprep.mubr.msk.f32.mxu1 %vm1354_vm3, %v7126_v17  ;;  %6131 = vmatmul.mubr.msk.f32.gmra.mxu0 %vm258_vm0, %v6481_v20 }
 0xbf5   : > { %6133 = vmatprep.mubr.msk.f32.mxu0 %vm258_vm0, %v6482_v45 }
 0xbf7   : > { %6180 = vmatmul.mubr.msk.f32.gmra.mxu1 %vm1354_vm3, %v7122_v15 }
 0xbf8   : > { %6182 = vmatprep.mubr.msk.f32.mxu1 %vm1354_vm3, %v7134_v23  ;;  %6134 = vmatmul.mubr.msk.f32.gmra.mxu0 %vm258_vm0, %v6483_v46 }
 0xbf9   : > { %6136 = vmatprep.mubr.msk.f32.mxu0 %vm258_vm0, %v6484_v47 }
 0xbfb   : > { %6183 = vmatmul.mubr.msk.f32.gmra.mxu1 %vm1354_vm3, %v7130_v21 }
 0xbfc   : > { %6185 = vmatprep.mubr.msk.f32.mxu1 %vm1354_vm3, %v7142_v26  ;;  %6137 = vmatmul.mubr.msk.f32.gmra.mxu0 %vm258_vm0, %v6485_v48 }
 0xbfd   : > { %6139 = vmatprep.mubr.msk.f32.mxu0 %vm258_vm0, %v6486_v50 }
 0xbff   : > { %6186 = vmatmul.mubr.msk.f32.gmra.mxu1 %vm1354_vm3, %v7138_v24 }
 0xc00   : > { %6188 = vmatprep.mubr.msk.f32.mxu1 %vm1354_vm3, %v7150_v30  ;;  %6140 = vmatmul.mubr.msk.f32.gmra.mxu0 %vm258_vm0, %v6487_v51 }
 0xc01   : > { %6142 = vmatprep.mubr.msk.f32.mxu0 %vm258_vm0, %v6488_v44 }
 0xc03   : > { %6189 = vmatmul.mubr.msk.f32.gmra.mxu1 %vm1354_vm3, %v7146_v28 }
 0xc04   : > { %6191 = vmatprep.mubr.msk.f32.mxu1 %vm1354_vm3, %v7158_v34  ;;  %6143 = vmatmul.mubr.msk.f32.gmra.mxu0 %vm258_vm0, %v6489_v52 }
 0xc05   : > { %6145 = vmatprep.mubr.msk.f32.mxu0 %vm258_vm0, %v6490_v53 }
 0xc07   : > { %6192 = vmatmul.mubr.msk.f32.gmra.mxu1 %vm1354_vm3, %v7154_v32 }
 0xc08   : > { %6146 = vmatmul.mubr.msk.f32.gmra.mxu0 %vm258_vm0, %v6491_v54 }
 0xc09   : > { %6148 = vmatprep.mubr.msk.f32.mxu0 %vm258_vm0, %v6492_v55 }
 0xc0c   : > { %6149 = vmatmul.mubr.msk.f32.gmra.mxu0 %vm258_vm0, %v6493_v56 }
 0xc0d   : > { %6151 = vmatprep.mubr.msk.f32.mxu0 %vm258_vm0, %v6494_v49 }
 0xc10   : > { %6152 = vmatmul.mubr.msk.f32.gmra.mxu0 %vm258_vm0, %v6495_v57 }
 0xc11   : > { %6154 = vmatprep.mubr.msk.f32.mxu0 %vm258_vm0, %v6496_v58 }
 0xc14   : > { %6155 = vmatmul.mubr.msk.f32.gmra.mxu0 %vm258_vm0, %v6497_v63 }
 0xc15   : > { %6157 = vmatprep.mubr.msk.f32.mxu0 %vm258_vm0, %v6498_v60 }
 0xc18   : > { %6158 = vmatmul.mubr.msk.f32.gmra.mxu0 %vm258_vm0, %v6499_v43 }
 0xc19   : > { %6160 = vmatprep.mubr.msk.f32.mxu0 %vm258_vm0, %v6500_v0 }
 0xc1c   : > { %6161 = vmatmul.mubr.msk.f32.gmra.mxu0 %vm258_vm0, %v6501_v1 }
 0xc1d   : > { %6163 = vmatprep.mubr.msk.f32.mxu0 %vm258_vm0, %v6502_v2 }
 0xc20   : > { %6164 = vmatmul.mubr.msk.f32.gmra.mxu0 %vm258_vm0, %v6503_v4 }
 0xc97   : > { %v6088_v8 = vpop.f32.mrf.mxu0  ;;  %v6097_v35 = vpop.f32.mrf.mxu1 }
 0xc98   : > { %v7436_v10 = vadd.f32 %v6088_v8, %v7433_v6  ;;  %v7439_v16 = vadd.f32 %v6097_v35, %v7433_v6  ;;  %v7546_v35 = vld [vmem:[%s8161_s2 + $0x1b0] ss:$0 sm:$0xff] }
 0xc99   : > { %v3058_v12 = vpop.f32.mrf.mxu0  ;;  %v3088_v14 = vpop.f32.mrf.mxu1 }
 0xc9a   : > { %v7442_v18 = vadd.f32 %v7433_v6, %v3058_v12  ;;  %4395 = vrot.lane.b32.xlu0 %v7436_v10, %s6567_s9  ;;  %v7447_v61 = vadd.f32 %v7433_v6, %v3088_v14 }
 0xc9b   : > { %v6091_v22 = vpop.f32.mrf.mxu0  ;;  %v6100_v19 = vpop.f32.mrf.mxu1 }
 0xc9c   : > { %8191 = vst [vmem:[#allocation14_spill] sm:$0xff] %v7447_v61  ;;  %4393 = vrot.lane.b32.xlu1 %v7442_v18, %s6567_s9  ;;  %6194 = vmatprep.mubr.msk.f32.mxu1 %vm1354_vm3, %v7442_v18  ;;  %v7454_v25 = vadd.f32 %v6091_v22, %v7433_v6  ;;  %v7473_v41 = vadd.f32 %v6100_v19, %v7433_v6 }
 0xc9d   : > { %v3068_v27 = vpop.f32.mrf.mxu0  ;;  %v3098_v29 = vpop.f32.mrf.mxu1  ;;  %6195 = vmatmul.mubr.msk.f32.gmra.mxu1 %vm1354_vm3, %v7436_v10 }
 0xc9e   : > { %v7459_v31 = vadd.f32 %v7433_v6, %v3068_v27  ;;  %4407 = vrot.lane.b32.xlu0 %v7439_v16, %s6567_s9  ;;  %v7481_v40 = vadd.f32 %v7433_v6, %v3098_v29 }
 0xc9f   : > { %v6094_v33 = vpop.f32.mrf.mxu0  ;;  %v6103_v36 = vpop.f32.mrf.mxu1 }
 0xca0   : > { %4405 = vrot.lane.b32.xlu1 %v7447_v61, %s6567_s9  ;;  %6197 = vmatprep.mubr.msk.f32.mxu1 %vm1354_vm3, %v7459_v31  ;;  %v7468_v37 = vadd.f32 %v6094_v33, %v7433_v6  ;;  %8192 = vst [vmem:[#allocation15_spill] sm:$0xff] %v7481_v40  ;;  %v7498_v50 = vadd.f32 %v6103_v36, %v7433_v6 }
 0xca1   : > { %v3078_v38 = vpop.f32.mrf.mxu0  ;;  %v3108_v39 = vpop.f32.mrf.mxu1  ;;  %6198 = vmatmul.mubr.msk.f32.gmra.mxu1 %vm1354_vm3, %v7454_v25 }
 0xca2   : > { %v7476_v42 = vadd.f32 %v7433_v6, %v3078_v38  ;;  %4399 = vrot.lane.b32.xlu0 %v7454_v25, %s6567_s9  ;;  %8193 = vst [vmem:[#allocation16_spill] sm:$0xff] %v7498_v50  ;;  %v7501_v51 = vadd.f32 %v7433_v6, %v3108_v39 }
 0xca3   : > { %v6106_v59 = vpop.f32.mrf.mxu1 }
 0xca4   : > { %4397 = vrot.lane.b32.xlu1 %v7459_v31, %s6567_s9  ;;  %6200 = vmatprep.mubr.msk.f32.mxu1 %vm1354_vm3, %v7476_v42  ;;  %v6120_v62 = vpop.f32.mrf.mxu0  ;;  %8194 = vst [vmem:[#allocation17_spill] sm:$0xff] %v7501_v51  ;;  %v7512_v55 = vadd.f32 %v6106_v59, %v7433_v6 }
 0xca5   : > { %v3118_v20 = vpop.f32.mrf.mxu1  ;;  %6201 = vmatmul.mubr.msk.f32.gmra.mxu1 %vm1354_vm3, %v7468_v37 }
 0xca6   : > { %4411 = vrot.lane.b32.xlu0 %v7473_v41, %s6567_s9  ;;  %6203 = vmatprep.mubr.msk.f32.mxu1 %vm1354_vm3, %v7447_v61  ;;  %v3209_v45 = vpop.f32.mrf.mxu0  ;;  %8195 = vst [vmem:[#allocation18_spill] sm:$0xff] %v7512_v55  ;;  %v7515_v56 = vadd.f32 %v7433_v6, %v3118_v20 }
 0xca7   : > { %v6109_v46 = vpop.f32.mrf.mxu1 }
 0xca8   : > { %4409 = vrot.lane.b32.xlu1 %v7481_v40, %s6567_s9  ;;  %v6123_v47 = vpop.f32.mrf.mxu0  ;;  %8196 = vst [vmem:[#allocation19_spill] sm:$0xff] %v7515_v56  ;;  %v7526_v60 = vadd.f32 %v6109_v46, %v7433_v6 }
 0xca9   : > { %v3128_v48 = vpop.f32.mrf.mxu1  ;;  %6204 = vmatmul.mubr.msk.f32.gmra.mxu1 %vm1354_vm3, %v7439_v16 }
 0xcaa   : > { %4403 = vrot.lane.b32.xlu0 %v7468_v37, %s6567_s9  ;;  %6206 = vmatprep.mubr.msk.f32.mxu1 %vm1354_vm3, %v7481_v40  ;;  %v3219_v44 = vpop.f32.mrf.mxu0  ;;  %8197 = vst [vmem:[#allocation20_spill] sm:$0xff] %v7526_v60  ;;  %v7529_v43 = vadd.f32 %v7433_v6, %v3128_v48 }
 0xcab   : > { %v6172_v52 = vpop.f32.mrf.mxu1 }
 0xcac   : > { %4401 = vrot.lane.b32.xlu1 %v7476_v42, %s6567_s9  ;;  %v6126_v53 = vpop.f32.mrf.mxu0  ;;  %8198 = vst [vmem:[#allocation21_spill] sm:$0xff] %v7529_v43  ;;  %v3536_v6 = vadd.f32 %v6172_v52, %v6120_v62 }
 0xcad   : > { %v3530_v54 = vpop.f32.mrf.mxu1  ;;  %6207 = vmatmul.mubr.msk.f32.gmra.mxu1 %vm1354_vm3, %v7473_v41 }
 0xcae   : > { %4415 = vrot.lane.b32.xlu0 %v7498_v50, %s6567_s9  ;;  %6209 = vmatprep.mubr.msk.f32.mxu1 %vm1354_vm3, %v7501_v51  ;;  %v3229_v49 = vpop.f32.mrf.mxu0  ;;  %v3695_v22 = vadd.f32 %v7546_v35, %v3536_v6  ;;  %v3531_v27 = vadd.f32 %v3530_v54, %v3209_v45 }
 0xcaf   : > { %v6175_v57 = vpop.f32.mrf.mxu1 }
 0xcb0   : > { %4413 = vrot.lane.b32.xlu1 %v7501_v51, %s6567_s9  ;;  %v6129_v58 = vpop.f32.mrf.mxu0  ;;  %6298 = vtanh.f32 %v3695_v22  ;;  %v3546_v36 = vadd.f32 %v6175_v57, %v6123_v47  ;;  %v3694_v39 = vadd.f32 %v7546_v35, %v3531_v27  ;;  %v7563_v27 = vld [vmem:[%s8161_s2 + $0x1b8] ss:$0 sm:$0xff] }
 0xcb1   : > { %v3540_v63 = vpop.f32.mrf.mxu1  ;;  %6210 = vmatmul.mubr.msk.f32.gmra.mxu1 %vm1354_vm3, %v7498_v50 }
 0xcb2   : > { %4419 = vrot.lane.b32.xlu0 %v7512_v55, %s6567_s9  ;;  %6212 = vmatprep.mubr.msk.f32.mxu1 %vm1354_vm3, %v7515_v56  ;;  %v3239_v0 = vpop.f32.mrf.mxu0  ;;  %v3697_v46 = vadd.f32 %v7546_v35, %v3546_v36  ;;  %v3541_v48 = vadd.f32 %v3540_v63, %v3219_v44  ;;  %6300 = vtanh.f32 %v3694_v39 }
 0xcb3   : > { %v6178_v1 = vpop.f32.mrf.mxu1 }
 0xcb4   : > { %4417 = vrot.lane.b32.xlu1 %v7515_v56, %s6567_s9  ;;  %v6132_v4 = vpop.f32.mrf.mxu0  ;;  %6302 = vtanh.f32 %v3697_v46  ;;  %v3696_v45 = vadd.f32 %v7546_v35, %v3541_v48  ;;  %v3556_v54 = vadd.f32 %v6178_v1, %v6126_v53 }
 0xcb5   : > { %v3550_v2 = vpop.f32.mrf.mxu1  ;;  %6213 = vmatmul.mubr.msk.f32.gmra.mxu1 %vm1354_vm3, %v7512_v55 }
 0xcb6   : > { %4423 = vrot.lane.b32.xlu0 %v7526_v60, %s6567_s9  ;;  %6215 = vmatprep.mubr.msk.f32.mxu1 %vm1354_vm3, %v7529_v43  ;;  %v3249_v14 = vpop.f32.mrf.mxu0  ;;  %v3551_v59 = vadd.f32 %v3550_v2, %v3229_v49  ;;  %v3699_v22 = vadd.f32 %v7546_v35, %v3556_v54 }
 0xcb7   : > { %v6181_v8 = vpop.f32.mrf.mxu1 }
 0xcb8   : > { %4421 = vrot.lane.b32.xlu1 %v7529_v43, %s6567_s9  ;;  %v6135_v33 = vpop.f32.mrf.mxu0  ;;  %v3698_v52 = vadd.f32 %v7546_v35, %v3551_v59  ;;  %v3566_v44 = vadd.f32 %v6181_v8, %v6129_v58  ;;  %s6571_s9 = smov [#allocation2]  }
 0xcb9   : > { %v3560_v12 = vpop.f32.mrf.mxu1  ;;  %6216 = vmatmul.mubr.msk.f32.gmra.mxu1 %vm1354_vm3, %v7526_v60  ;;  %s6508_s26 = sshll.u32 %s6571_s9, 4  ;;  %s6509_s26 = int_to_ptr.vmem [resolvable:$false] %s6508_s26 }
 0xcba   : > { %v3259_v62 = vpop.f32.mrf.mxu0  ;;  %v3561_v43 = vadd.f32 %v3560_v12, %v3239_v0  ;;  %6304 = vtanh.f32 %v3698_v52  ;;  %s6510_s27 = scalar_lea.vmem %s6509_s26, 4096  ;;  %p6511_p0 = scmp.lt.s32.totalorder %s8113_s19, %s6509_s26 }
 0xcbb   : > { %v6184_v19 = vpop.f32.mrf.mxu1  ;;  %6306 = vtanh.f32 %v3696_v45  ;;  %p6512_p1 = scmp.lt.s32.totalorder %s6510_s27, %s6504_s16 }
 0xcbc   : > { %v6138_v6 = vpop.f32.mrf.mxu0  ;;  %v3700_v47 = vadd.f32 %v7546_v35, %v3561_v43  ;;  %v3701_v43 = vadd.f32 %v7546_v35, %v3566_v44 }
 0xcbd   : > { %v3570_v29 = vpop.f32.mrf.mxu1  ;;  %v6299_v63 = vpop.eup %6298  ;;  %p6513_p2 = por %p6512_p1, %p6511_p0 }
 0xcbe   : > { %v3571_v57 = vadd.f32 %v3570_v29, %v3249_v14  ;;  %v3269_v49 = vpop.f32.mrf.mxu0  ;;  %6308 = vtanh.f32 %v3700_v47  ;;  %v3576_v14 = vadd.f32 %v6184_v19, %v6132_v4  ;;  %v3764_v29 = vmul.f32 %v6299_v63, %v7563_v27 }
 0xcbf   : > { %v6187_v38 = vpop.f32.mrf.mxu1  ;;  %6310 = vtanh.f32 %v3699_v22  ;;  %v6301_v36 = vpop.eup %6300  ;;  %p6514_p3 = pnand %p6513_p2, %p6507_p13 }
 0xcc0   : > { %v3702_v0 = vadd.f32 %v7546_v35, %v3571_v57  ;;  %v6141_v53 = vpop.f32.mrf.mxu0  ;;  %v3798_v46 = vsel %vm992_vm2, %v3764_v29, 0.0  ;;  %v3763_v19 = vmul.f32 %v6301_v36, %v7563_v27 }
 0xcc1   : > { %v3580_v20 = vpop.f32.mrf.mxu1  ;;  %v6303_v48 = vpop.eup %6302 }
 0xcc2   : > { %v3581_v12 = vadd.f32 %v3580_v20, %v3259_v62  ;;  %6312 = vtanh.f32 %v3702_v0  ;;  %v3279_v39 = vpop.f32.mrf.mxu0  ;;  %v3586_v62 = vadd.f32 %v6187_v38, %v6135_v33  ;;  %v3703_v20 = vadd.f32 %v7546_v35, %v3576_v14 }
 0xcc3   : > { %v6190_v34 = vpop.f32.mrf.mxu1  ;;  %6314 = vtanh.f32 %v3701_v43  ;;  %v3766_v33 = vmul.f32 %v6303_v48, %v7563_v27 }
 0xcc4   : > { %v3704_v58 = vadd.f32 %v7546_v35, %v3581_v12  ;;  %v3705_v54 = vadd.f32 %v7546_v35, %v3586_v62  ;;  %v3596_v47 = vadd.f32 %v6190_v34, %v6138_v6 }
 0xcc5   : > { %v3590_v2 = vpop.f32.mrf.mxu1  ;;  %v3804_v0 = vsel %vm992_vm2, %v3766_v33, 0.0 }
 0xcc6   : > { %v3591_v8 = vadd.f32 %v3590_v2, %v3269_v49  ;;  %6316 = vtanh.f32 %v3704_v58  ;;  %v3795_v49 = vsel %vm992_vm2, %v3763_v19, 0.0  ;;  %v3707_v44 = vadd.f32 %v7546_v35, %v3596_v47 }
 0xcc7   : > { %v6193_v1 = vpop.f32.mrf.mxu1  ;;  %v6305_v45 = vpop.eup %6304  ;;  %6318 = vtanh.f32 %v3703_v20 }
 0xcc8   : > { %v3706_v52 = vadd.f32 %v7546_v35, %v3591_v8  ;;  %v6307_v38 = vpop.eup %6306  ;;  %v3767_v2 = vmul.f32 %v6305_v45, %v7563_v27  ;;  %v3606_v63 = vadd.f32 %v6193_v1, %v6141_v53 }
 0xcc9   : > { %v3600_v59 = vpop.f32.mrf.mxu1  ;;  %v3765_v34 = vmul.f32 %v6307_v38, %v7563_v27 }
 0xcca   : > { %v3601_v4 = vadd.f32 %v3600_v59, %v3279_v39  ;;  %6320 = vtanh.f32 %v3706_v52  ;;  %v3807_v12 = vsel %vm992_vm2, %v3767_v2, 0.0  ;;  %v3709_v29 = vadd.f32 %v7546_v35, %v3606_v63 }
 0xccb   : > { %v6309_v22 = vpop.eup %6308  ;;  %6322 = vtanh.f32 %v3705_v54  ;;  %v3801_v58 = vsel %vm992_vm2, %v3765_v34, 0.0 }
 0xccc   : > { %v3708_v57 = vadd.f32 %v7546_v35, %v3601_v4  ;;  %v6311_v6 = vpop.eup %6310  ;;  %v3769_v43 = vmul.f32 %v6309_v22, %v7563_v27 }
 0xccd   : > { %v3768_v53 = vmul.f32 %v6311_v6, %v7563_v27 }
 0xcce   : > { %6324 = vtanh.f32 %v3708_v57  ;;  %v3813_v8 = vsel %vm992_vm2, %v3769_v43, 0.0 }
 0xccf   : > { %v6313_v14 = vpop.eup %6312  ;;  %6326 = vtanh.f32 %v3707_v44  ;;  %v3810_v59 = vsel %vm992_vm2, %v3768_v53, 0.0 }
 0xcd0   : > { %v6315_v1 = vpop.eup %6314  ;;  %v3771_v36 = vmul.f32 %v6313_v14, %v7563_v27  ;;  %6328 = vtanh.f32 %v3709_v29  ;;  %v6144_v14 = vpop.f32.mrf.mxu0 }
 0xcd1   : > { %v3770_v62 = vmul.f32 %v6315_v1, %v7563_v27 }
 0xcd2   : > { %v3289_v29 = vpop.f32.mrf.mxu0 }
 0xcd3   : > { %v6317_v39 = vpop.eup %6316  ;;  %v3816_v19 = vsel %vm992_vm2, %v3770_v62, 0.0 }
 0xcd4   : > { %v6319_v20 = vpop.eup %6318  ;;  %v3773_v48 = vmul.f32 %v6317_v39, %v7563_v27 }
 0xcd5   : > { %3799 = vadd.xlane.f32.xlu0 %v3798_v46  ;;  %v3819_v46 = vsel %vm992_vm2, %v3771_v36, 0.0  ;;  %v3772_v45 = vmul.f32 %v6319_v20, %v7563_v27 }
 0xcd6   : > { %v3825_v54 = vsel %vm992_vm2, %v3773_v48, 0.0 }
 0xcd7   : > { %v6321_v52 = vpop.eup %6320  ;;  %v3822_v38 = vsel %vm992_vm2, %v3772_v45, 0.0 }
 0xcd8   : > { %v6323_v4 = vpop.eup %6322  ;;  %v3775_v47 = vmul.f32 %v6321_v52, %v7563_v27 }
 0xcd9   : > { %3796 = vadd.xlane.f32.xlu0 %v3795_v49  ;;  %v3774_v57 = vmul.f32 %v6323_v4, %v7563_v27 }
 0xcda   : > { %v3831_v2 = vsel %vm992_vm2, %v3775_v47, 0.0 }
 0xcdb   : > { %v6325_v33 = vpop.eup %6324  ;;  %v3828_v44 = vsel %vm992_vm2, %v3774_v57, 0.0 }
 0xcdc   : > { %3805 = vadd.xlane.f32.xlu1 %v3804_v0  ;;  %v6327_v49 = vpop.eup %6326  ;;  %v3777_v22 = vmul.f32 %v6325_v33, %v7563_v27 }
 0xcdd   : > { %3808 = vadd.xlane.f32.xlu0 %v3807_v12  ;;  %v3776_v63 = vmul.f32 %v6327_v49, %v7563_v27  ;;  %v6329_v0 = vpop.eup %6328 }
 0xcde   : > { %v3837_v34 = vsel %vm992_vm2, %v3777_v22, 0.0  ;;  %v3778_v12 = vmul.f32 %v6329_v0, %v7563_v27 }
 0xcdf   : > { %v3834_v6 = vsel %vm992_vm2, %v3776_v63, 0.0 }
 0xce0   : > { %3802 = vadd.xlane.f32.xlu1 %v3801_v58  ;;  %v3840_v43 = vsel %vm992_vm2, %v3778_v12, 0.0  ;;  %v6147_v58 = vpop.f32.mrf.mxu0 }
 0xce1   : > { %3814 = vadd.xlane.f32.xlu0 %v3813_v8 }
 0xce2   : > { %v3299_v53 = vpop.f32.mrf.mxu0 }
 0xce4   : > { %3811 = vadd.xlane.f32.xlu1 %v3810_v59  ;;  %v6150_v1 = vpop.f32.mrf.mxu0 }
 0xce5   : > { %3820 = vadd.xlane.f32.xlu0 %v3819_v46 }
 0xce6   : > { %v3309_v8 = vpop.f32.mrf.mxu0 }
 0xce8   : > { %3817 = vadd.xlane.f32.xlu1 %v3816_v19  ;;  %v6153_v36 = vpop.f32.mrf.mxu0 }
 0xce9   : > { %3826 = vadd.xlane.f32.xlu0 %v3825_v54 }
 0xcea   : > { %v3319_v39 = vpop.f32.mrf.mxu0 }
 0xcec   : > { %3823 = vadd.xlane.f32.xlu1 %v3822_v38  ;;  %v6156_v62 = vpop.f32.mrf.mxu0 }
 0xced   : > { %3832 = vadd.xlane.f32.xlu0 %v3831_v2 }
 0xcee   : > { %v3329_v19 = vpop.f32.mrf.mxu0 }
 0xcf0   : > { %3829 = vadd.xlane.f32.xlu1 %v3828_v44  ;;  %v6159_v49 = vpop.f32.mrf.mxu0 }
 0xcf1   : > { %3838 = vadd.xlane.f32.xlu0 %v3837_v34 }
 0xcf4   : > { %3835 = vadd.xlane.f32.xlu1 %v3834_v6  ;;  %v3339_v6 = vpop.f32.mrf.mxu0 }
 0xcf8   : > { %3841 = vadd.xlane.f32.xlu1 %v3840_v43 }
 0xd5d   : > { %v6196_v59 = vpop.f32.mrf.mxu1 }
 0xd5e   : > { %v3616_v20 = vadd.f32 %v6196_v59, %v6144_v14  ;;  %v6162_v59 = vpop.f32.mrf.mxu0 }
 0xd5f   : > { %v3610_v46 = vpop.f32.mrf.mxu1 }
 0xd60   : > { %v3711_v48 = vadd.f32 %v7546_v35, %v3616_v20  ;;  %v3611_v52 = vadd.f32 %v3610_v46, %v3289_v29 }
 0xd61   : > { %v6199_v4 = vpop.f32.mrf.mxu1 }
 0xd62   : > { %6330 = vtanh.f32 %v3711_v48  ;;  %v3710_v45 = vadd.f32 %v7546_v35, %v3611_v52  ;;  %v3626_v54 = vadd.f32 %v6199_v4, %v6147_v58 }
 0xd63   : > { %v3620_v47 = vpop.f32.mrf.mxu1 }
 0xd64   : > { %6332 = vtanh.f32 %v3710_v45  ;;  %v3713_v33 = vadd.f32 %v7546_v35, %v3626_v54  ;;  %v3621_v38 = vadd.f32 %v3620_v47, %v3299_v53  ;;  %v3349_v54 = vpop.f32.mrf.mxu0 }
 0xd65   : > { %v6202_v57 = vpop.f32.mrf.mxu1 }
 0xd66   : > { %6334 = vtanh.f32 %v3713_v33  ;;  %v3712_v2 = vadd.f32 %v7546_v35, %v3621_v38  ;;  %v3636_v22 = vadd.f32 %v6202_v57, %v6150_v1 }
 0xd67   : > { %v3630_v44 = vpop.f32.mrf.mxu1 }
 0xd68   : > { %6336 = vtanh.f32 %v3712_v2  ;;  %v3715_v63 = vadd.f32 %v7546_v35, %v3636_v22  ;;  %v3631_v0 = vadd.f32 %v3630_v44, %v3309_v8 }
 0xd69   : > { %v6205_v34 = vpop.f32.mrf.mxu1 }
 0xd6a   : > { %6338 = vtanh.f32 %v3715_v63  ;;  %v3714_v12 = vadd.f32 %v7546_v35, %v3631_v0  ;;  %v3646_v43 = vadd.f32 %v6205_v34, %v6153_v36  ;;  %v6165_v34 = vpop.f32.mrf.mxu0 }
 0xd6b   : > { %v3640_v14 = vpop.f32.mrf.mxu1 }
 0xd6c   : > { %6340 = vtanh.f32 %v3714_v12  ;;  %v3717_v29 = vadd.f32 %v7546_v35, %v3646_v43  ;;  %v3641_v58 = vadd.f32 %v3640_v14, %v3319_v39 }
 0xd6d   : > { %v6208_v53 = vpop.f32.mrf.mxu1 }
 0xd6e   : > { %6342 = vtanh.f32 %v3717_v29  ;;  %v3716_v1 = vadd.f32 %v7546_v35, %v3641_v58  ;;  %v3656_v20 = vadd.f32 %v6208_v53, %v6156_v62 }
 0xd6f   : > { %v6331_v46 = vpop.eup %6330  ;;  %v3650_v48 = vpop.f32.mrf.mxu1 }
 0xd70   : > { %6344 = vtanh.f32 %v3716_v1  ;;  %v3719_v8 = vadd.f32 %v7546_v35, %v3656_v20  ;;  %v3651_v52 = vadd.f32 %v3650_v48, %v3329_v19  ;;  %v3780_v4 = vmul.f32 %v6331_v46, %v7563_v27 }
 0xd71   : > { %v6333_v36 = vpop.eup %6332  ;;  %v6211_v45 = vpop.f32.mrf.mxu1 }
 0xd72   : > { %6346 = vtanh.f32 %v3719_v8  ;;  %v3718_v39 = vadd.f32 %v7546_v35, %v3651_v52  ;;  %v3666_v47 = vadd.f32 %v6211_v45, %v6159_v49  ;;  %v3846_v57 = vsel %vm992_vm2, %v3780_v4, 0.0  ;;  %v3359_v8 = vpop.f32.mrf.mxu0 }
 0xd73   : > { %v6335_v33 = vpop.eup %6334  ;;  %v3660_v38 = vpop.f32.mrf.mxu1  ;;  %v3779_v62 = vmul.f32 %v6333_v36, %v7563_v27  ;;  %3847 = vadd.xlane.f32.xlu1 %v3846_v57 }
 0xd74   : > { %6348 = vtanh.f32 %v3718_v39  ;;  %v3721_v2 = vadd.f32 %v7546_v35, %v3666_v47  ;;  %v3661_v22 = vadd.f32 %v3660_v38, %v3339_v6  ;;  %v3782_v19 = vmul.f32 %v6335_v33, %v7563_v27  ;;  %v7624_v6 = vpop.permute.xlu1 %4328 }
 0xd75   : > { %v6337_v44 = vpop.eup %6336  ;;  %v6214_v63 = vpop.f32.mrf.mxu1  ;;  %v3843_v0 = vsel %vm992_vm2, %v3779_v62, 0.0 }
 0xd76   : > { %6350 = vtanh.f32 %v3721_v2  ;;  %v3720_v49 = vadd.f32 %v7546_v35, %v3661_v22  ;;  %v3676_v12 = vadd.f32 %v6214_v63, %v6162_v59  ;;  %3844 = vadd.xlane.f32.xlu0 %v3843_v0  ;;  %v3852_v29 = vsel %vm992_vm2, %v3782_v19, 0.0  ;;  %v7635_v2 = vpop.permute.xlu0 %4330 }
 0xd77   : > { %v6339_v43 = vpop.eup %6338  ;;  %v3670_v14 = vpop.f32.mrf.mxu1  ;;  %v3781_v58 = vmul.f32 %v6337_v44, %v7563_v27  ;;  %3853 = vadd.xlane.f32.xlu1 %v3852_v29 }
 0xd78   : > { %6352 = vtanh.f32 %v3720_v49  ;;  %v3723_v53 = vadd.f32 %v7546_v35, %v3676_v12  ;;  %v3671_v1 = vadd.f32 %v3670_v14, %v3349_v54  ;;  %v3784_v20 = vmul.f32 %v6339_v43, %v7563_v27  ;;  %v7637_v22 = vpop.permute.xlu1 %4332 }
 0xd79   : > { %v6341_v46 = vpop.eup %6340  ;;  %v6217_v48 = vpop.f32.mrf.mxu1  ;;  %v3849_v59 = vsel %vm992_vm2, %v3781_v58, 0.0 }
 0xd7a   : > { %6354 = vtanh.f32 %v3723_v53  ;;  %v3722_v52 = vadd.f32 %v7546_v35, %v3671_v1  ;;  %v3686_v4 = vadd.f32 %v6217_v48, %v6165_v34  ;;  %3850 = vadd.xlane.f32.xlu0 %v3849_v59  ;;  %v3858_v39 = vsel %vm992_vm2, %v3784_v20, 0.0 }
 0xd7b   : > { %v6343_v36 = vpop.eup %6342  ;;  %v3680_v45 = vpop.f32.mrf.mxu1  ;;  %v3783_v47 = vmul.f32 %v6341_v46, %v7563_v27  ;;  %3859 = vadd.xlane.f32.xlu1 %v3858_v39 }
 0xd7c   : > { %6356 = vtanh.f32 %v3722_v52  ;;  %v3725_v54 = vadd.f32 %v7546_v35, %v3686_v4  ;;  %v3681_v33 = vadd.f32 %v3680_v45, %v3359_v8  ;;  %v3786_v38 = vmul.f32 %v6343_v36, %v7563_v27  ;;  %v7648_v58 = vpop.permute.xlu1 %4336 }
 0xd7d   : > { %v6345_v57 = vpop.eup %6344  ;;  %v3855_v62 = vsel %vm992_vm2, %v3783_v47, 0.0 }
 0xd7e   : > { %6358 = vtanh.f32 %v3725_v54  ;;  %v3724_v19 = vadd.f32 %v7546_v35, %v3681_v33  ;;  %3856 = vadd.xlane.f32.xlu0 %v3855_v62  ;;  %v3864_v44 = vsel %vm992_vm2, %v3786_v38, 0.0  ;;  %v3785_v0 = vmul.f32 %v6345_v57, %v7563_v27  ;;  %v7646_v35 = vpop.permute.xlu0 %4334 }
 0xd7f   : > { %v6347_v63 = vpop.eup %6346  ;;  %3865 = vadd.xlane.f32.xlu1 %v3864_v44 }
 0xd80   : > { %6360 = vtanh.f32 %v3724_v19  ;;  %v3788_v34 = vmul.f32 %v6347_v63, %v7563_v27  ;;  %v3861_v12 = vsel %vm992_vm2, %v3785_v0, 0.0  ;;  %v7658_v45 = vpop.permute.xlu1 %4340 }
 0xd81   : > { %v6349_v49 = vpop.eup %6348  ;;  %8199 = vst [vmem:[#allocation22_spill] sm:$0xff] %v7658_v45 }
 0xd82   : > { %3862 = vadd.xlane.f32.xlu0 %v3861_v12  ;;  %v3870_v43 = vsel %vm992_vm2, %v3788_v34, 0.0  ;;  %v3787_v14 = vmul.f32 %v6349_v49, %v7563_v27  ;;  %v7656_v36 = vpop.permute.xlu0 %4338 }
 0xd83   : > { %v6351_v29 = vpop.eup %6350  ;;  %3871 = vadd.xlane.f32.xlu1 %v3870_v43 }
 0xd84   : > { %v3867_v53 = vsel %vm992_vm2, %v3787_v14, 0.0  ;;  %v3790_v1 = vmul.f32 %v6351_v29, %v7563_v27  ;;  %v7668_v63 = vpop.permute.xlu1 %4344 }
 0xd85   : > { %v6353_v20 = vpop.eup %6352  ;;  %8201 = vst [vmem:[#allocation24_spill] sm:$0xff] %v7668_v63 }
 0xd86   : > { %3868 = vadd.xlane.f32.xlu0 %v3867_v53  ;;  %v3876_v46 = vsel %vm992_vm2, %v3790_v1, 0.0  ;;  %v3789_v48 = vmul.f32 %v6353_v20, %v7563_v27  ;;  %v7666_v44 = vpop.permute.xlu0 %4342  ;;  %v6568_v20 = vmov 0  }
 0xd87   : > { %v6355_v59 = vpop.eup %6354  ;;  %3877 = vadd.xlane.f32.xlu1 %v3876_v46  ;;  %8200 = vst [vmem:[#allocation23_spill] sm:$0xff] %v7666_v44  ;;  %6297 = vset.pattern.permute.xlu0 %v6568_v20 }
 0xd88   : > { %v3873_v8 = vsel %vm992_vm2, %v3789_v48, 0.0  ;;  %v3792_v52 = vmul.f32 %v6355_v59, %v7563_v27  ;;  %v7673_v49 = vpop.permute.xlu1 %4348  ;;  %6296 = vset.pattern.permute.xlu1 %v6568_v20 }
 0xd89   : > { %v6357_v4 = vpop.eup %6356  ;;  %8203 = vst [vmem:[#allocation26_spill] sm:$0xff] %v7673_v49 }
 0xd8a   : > { %3874 = vadd.xlane.f32.xlu0 %v3873_v8  ;;  %v3882_v39 = vsel %vm992_vm2, %v3792_v52, 0.0  ;;  %v3791_v47 = vmul.f32 %v6357_v4, %v7563_v27  ;;  %v7671_v34 = vpop.permute.xlu0 %4346 }
 0xd8b   : > { %v6359_v54 = vpop.eup %6358  ;;  %3883 = vadd.xlane.f32.xlu1 %v3882_v39  ;;  %8202 = vst [vmem:[#allocation25_spill] sm:$0xff] %v7671_v34 }
 0xd8c   : > { %v3879_v33 = vsel %vm992_vm2, %v3791_v47, 0.0  ;;  %v3794_v38 = vmul.f32 %v6359_v54, %v7563_v27  ;;  %v7677_v43 = vpop.permute.xlu1 %4352 }
 0xd8d   : > { %v6361_v57 = vpop.eup %6360  ;;  %8205 = vst [vmem:[#allocation28_spill] sm:$0xff] %v7677_v43 }
 0xd8e   : > { %3880 = vadd.xlane.f32.xlu0 %v3879_v33  ;;  %v3888_v62 = vsel %vm992_vm2, %v3794_v38, 0.0  ;;  %v3793_v19 = vmul.f32 %v6361_v57, %v7563_v27  ;;  %v7675_v12 = vpop.permute.xlu0 %4350 }
 0xd8f   : > { %3889 = vadd.xlane.f32.xlu1 %v3888_v62  ;;  %8204 = vst [vmem:[#allocation27_spill] sm:$0xff] %v7675_v12 }
 0xd90   : > { %v3885_v0 = vsel %vm992_vm2, %v3793_v19, 0.0  ;;  %v7681_v29 = vpop.permute.xlu1 %4356 }
 0xd91   : > { %8207 = vst [vmem:[#allocation30_spill] sm:$0xff] %v7681_v29 }
 0xd92   : > { %3886 = vadd.xlane.f32.xlu0 %v3885_v0  ;;  %v7679_v14 = vpop.permute.xlu0 %4354 }
 0xd93   : > { %8206 = vst [vmem:[#allocation29_spill] sm:$0xff] %v7679_v14 }
 0xd94   : > { %v7683_v27 = vpop.permute.xlu1 %4393 }
 0xd96   : > { %v7685_v53 = vpop.permute.xlu0 %4358 }
 0xd97   : > { %8208 = vst [vmem:[#allocation31_spill] sm:$0xff] %v7685_v53 }
 0xd98   : > { %v7687_v1 = vpop.permute.xlu1 %4405 }
 0xd99   : > { %8209 = vst [vmem:[#allocation32_spill] sm:$0xff] %v7687_v1 }
 0xd9a   : > { %v7689_v46 = vpop.permute.xlu0 %4395 }
 0xd9c   : > { %v7693_v59 = vpop.permute.xlu1 %4397 }
 0xd9e   : > { %v7691_v48 = vpop.permute.xlu0 %4407 }
 0xd9f   : > { %8210 = vst [vmem:[#allocation33_spill] sm:$0xff] %v7691_v48 }
 0xda0   : > { %v7695_v8 = vpop.permute.xlu1 %4409 }
 0xda1   : > { %8211 = vst [vmem:[#allocation34_spill] sm:$0xff] %v7695_v8 }
 0xda2   : > { %v7697_v52 = vpop.permute.xlu0 %4399 }
 0xda4   : > { %v7701_v39 = vpop.permute.xlu1 %4401 }
 0xda6   : > { %v7699_v4 = vpop.permute.xlu0 %4411 }
 0xda7   : > { %8212 = vst [vmem:[#allocation35_spill] sm:$0xff] %v7699_v4 }
 0xda8   : > { %v7703_v47 = vpop.permute.xlu1 %4413 }
 0xda9   : > { %8213 = vst [vmem:[#allocation36_spill] sm:$0xff] %v7703_v47 }
 0xdaa   : > { %v7705_v54 = vpop.permute.xlu0 %4403 }
 0xdac   : > { %v7709_v38 = vpop.permute.xlu1 %4417 }
 0xdad   : > { %8215 = vst [vmem:[#allocation38_spill] sm:$0xff] %v7709_v38 }
 0xdae   : > { %v7707_v33 = vpop.permute.xlu0 %4415 }
 0xdaf   : > { %8214 = vst [vmem:[#allocation37_spill] sm:$0xff] %v7707_v33 }
 0xdb0   : > { %v7713_v62 = vpop.permute.xlu1 %4421 }
 0xdb1   : > { %8217 = vst [vmem:[#allocation40_spill] sm:$0xff] %v7713_v62 }
 0xdb2   : > { %v7711_v57 = vpop.permute.xlu0 %4419 }
 0xdb3   : > { %8216 = vst [vmem:[#allocation39_spill] sm:$0xff] %v7711_v57  ;;  %v7740_v57 = vld [vmem:[%s8161_s2 + $0x1c0] ss:$0 sm:$0xff] }
 0xdb4   : > { %v3806_v0 = vpop.xlane.xlu1 %3805 }
 0xdb6   : > { %v7715_v19 = vpop.permute.xlu0 %4423 }
 0xdb7   : > { %8218 = vst [vmem:[#allocation41_spill] sm:$0xff] %v7715_v19 }
 0xdb8   : > { %v3803_v29 = vpop.xlane.xlu1 %3802 }
 0xdba   : > { %v3800_v20 = vpop.xlane.xlu0 %3799 }
 0xdbb   : > { %v3897_v63 = vadd.f32 %v7740_v57, %v3800_v20 }
 0xdbc   : > { %v3812_v56 = vpop.xlane.xlu1 %3811 }
 0xdbe   : > { %v3797_v43 = vpop.xlane.xlu0 %3796 }
 0xdbf   : > { %v3896_v23 = vadd.f32 %v7740_v57, %v3797_v43 }
 0xdc0   : > { %v7719_v47 = vpop.xlane.xlu1 %3817 }
 0xdc2   : > { %v7717_v30 = vpop.xlane.xlu0 %3808 }
 0xdc4   : > { %v7723_v53 = vpop.xlane.xlu1 %3823 }
 0xdc6   : > { %v7721_v49 = vpop.xlane.xlu0 %3814 }
 0xdc8   : > { %v7727_v51 = vpop.xlane.xlu1 %3829 }
 0xdca   : > { %v7725_v38 = vpop.xlane.xlu0 %3820 }
 0xdcc   : > { %v7731_v19 = vpop.xlane.xlu1 %3835 }
 0xdce   : > { %v7729_v62 = vpop.xlane.xlu0 %3826 }
 0xdd0   : > { %v7735_v60 = vpop.xlane.xlu1 %3841 }
 0xdd2   : > { %v7733_v26 = vpop.xlane.xlu0 %3832 }
 0xdd6   : > { %v7742_v14 = vpop.xlane.xlu0 %3838 }
 0xdfc   : > { %v3848_v32 = vpop.xlane.xlu1 %3847 }
 0xdfd   : > { %v3913_v8 = vadd.f32 %v7740_v57, %v3848_v32  ;;  %v3899_v32 = vadd.f32 %v7740_v57, %v3806_v0 }
 0xdff   : > { %v3845_v55 = vpop.xlane.xlu0 %3844  ;;  %v3929_v28 = vmax.f32 %v3897_v63, %v3913_v8 }
 0xe00   : > { %v3912_v40 = vadd.f32 %v7740_v57, %v3845_v55  ;;  %v3854_v24 = vpop.xlane.xlu1 %3853 }
 0xe01   : > { %v3945_v33 = vsub.f32 %v3897_v63, %v3929_v28  ;;  %v3993_v12 = vsub.f32 %v3913_v8, %v3929_v28  ;;  %v3915_v17 = vadd.f32 %v7740_v57, %v3854_v24  ;;  %v3898_v28 = vadd.f32 %v7740_v57, %v3803_v29 }
 0xe02   : > { %v3928_v50 = vmax.f32 %v3896_v23, %v3912_v40 }
 0xe03   : > { %v3962_v1 = vmul.f32 1.442695, %v3945_v33  ;;  %v4010_v45 = vmul.f32 1.442695, %v3993_v12  ;;  %v3851_v20 = vpop.xlane.xlu0 %3850  ;;  %v3931_v4 = vmax.f32 %v3899_v32, %v3915_v17 }
 0xe04   : > { %v3944_v61 = vsub.f32 %v3896_v23, %v3928_v50  ;;  %v3992_v48 = vsub.f32 %v3912_v40, %v3928_v50  ;;  %v3914_v43 = vadd.f32 %v7740_v57, %v3851_v20  ;;  %v3860_v8 = vpop.xlane.xlu1 %3859  ;;  %v3901_v50 = vadd.f32 %v7740_v57, %v3812_v56 }
 0xe05   : > { %6362 = vpow2.f32 %v3962_v1  ;;  %v3947_v63 = vsub.f32 %v3899_v32, %v3931_v4  ;;  %v3995_v23 = vsub.f32 %v3915_v17, %v3931_v4  ;;  %v3917_v24 = vadd.f32 %v7740_v57, %v3860_v8 }
 0xe06   : > { %6364 = vpow2.f32 %v4010_v45  ;;  %v3960_v44 = vmul.f32 1.442695, %v3944_v61  ;;  %v4008_v55 = vmul.f32 1.442695, %v3992_v48  ;;  %v3930_v12 = vmax.f32 %v3898_v28, %v3914_v43 }
 0xe07   : > { %v3966_v40 = vmul.f32 1.442695, %v3947_v63  ;;  %v4014_v1 = vmul.f32 1.442695, %v3995_v23  ;;  %v3933_v48 = vmax.f32 %v3901_v50, %v3917_v24  ;;  %v3857_v17 = vpop.xlane.xlu0 %3856 }
 0xe08   : > { %6366 = vpow2.f32 %v3960_v44  ;;  %v3946_v45 = vsub.f32 %v3898_v28, %v3930_v12  ;;  %v3994_v61 = vsub.f32 %v3914_v43, %v3930_v12  ;;  %v3866_v8 = vpop.xlane.xlu1 %3865  ;;  %v3916_v28 = vadd.f32 %v7740_v57, %v3857_v17 }
 0xe09   : > { %6368 = vpow2.f32 %v4008_v55  ;;  %v3949_v20 = vsub.f32 %v3901_v50, %v3933_v48  ;;  %v3997_v55 = vsub.f32 %v3917_v24, %v3933_v48  ;;  %v3919_v23 = vadd.f32 %v7740_v57, %v3866_v8 }
 0xe0a   : > { %6370 = vpow2.f32 %v3966_v40  ;;  %v3964_v29 = vmul.f32 1.442695, %v3946_v45  ;;  %v4012_v44 = vmul.f32 1.442695, %v3994_v61  ;;  %v3900_v12 = vadd.f32 %v7740_v57, %v7717_v30 }
 0xe0b   : > { %6372 = vpow2.f32 %v4014_v1  ;;  %v3970_v56 = vmul.f32 1.442695, %v3949_v20  ;;  %v4018_v43 = vmul.f32 1.442695, %v3997_v55  ;;  %v3903_v24 = vadd.f32 %v7740_v57, %v7719_v47 }
 0xe0c   : > { %6374 = vpow2.f32 %v3964_v29  ;;  %v3932_v50 = vmax.f32 %v3900_v12, %v3916_v28  ;;  %v3872_v20 = vpop.xlane.xlu1 %3871 }
 0xe0d   : > { %6376 = vpow2.f32 %v4012_v44  ;;  %v3935_v1 = vmax.f32 %v3903_v24, %v3919_v23 }
 0xe0e   : > { %v3948_v48 = vsub.f32 %v3900_v12, %v3932_v50  ;;  %v3996_v30 = vsub.f32 %v3916_v28, %v3932_v50  ;;  %v3905_v12 = vadd.f32 %v7740_v57, %v7723_v53 }
 0xe0f   : > { %v3951_v29 = vsub.f32 %v3903_v24, %v3935_v1 }
 0xe10   : > { %v3968_v47 = vmul.f32 1.442695, %v3948_v48  ;;  %v4016_v24 = vmul.f32 1.442695, %v3996_v30 }
 0xe12   : > { %v6363_v33 = vpop.eup %6362 }
 0xe13   : > { %v6365_v0 = vpop.eup %6364 }
 0xe14   : > { %v4041_v32 = vadd.f32 %v6365_v0, %v6363_v33 }
 0xe15   : > { %v6367_v4 = vpop.eup %6366 }
 0xe16   : > { %v6369_v63 = vpop.eup %6368  ;;  %6378 = vrcp.f32 %v4041_v32  ;;  %v3999_v32 = vsub.f32 %v3919_v23, %v3935_v1 }
 0xe17   : > { %v4040_v40 = vadd.f32 %v6369_v63, %v6367_v4  ;;  %6380 = vpow2.f32 %v3970_v56  ;;  %v7760_v45 = vpop.eup %6370  ;;  %v3974_v56 = vmul.f32 1.442695, %v3951_v29 }
 0xe18   : > { %6382 = vpow2.f32 %v4018_v43  ;;  %v6373_v61 = vpop.eup %6372  ;;  %v3921_v43 = vadd.f32 %v7740_v57, %v3872_v20  ;;  %v4022_v34 = vmul.f32 1.442695, %v3999_v32  ;;  %v3902_v20 = vadd.f32 %v7740_v57, %v7721_v49 }
 0xe19   : > { %6384 = vrcp.f32 %v4040_v40  ;;  %v4043_v44 = vadd.f32 %v6373_v61, %v7760_v45  ;;  %v7763_v55 = vpop.eup %6374 }
 0xe1a   : > { %v7765_v17 = vpop.eup %6376  ;;  %v3937_v50 = vmax.f32 %v3905_v12, %v3921_v43 }
 0xe1b   : > { %6386 = vrcp.f32 %v4043_v44  ;;  %v4042_v23 = vadd.f32 %v7765_v17, %v7763_v55 }
 0xe1c   : > { %6388 = vpow2.f32 %v3968_v47  ;;  %v3953_v29 = vsub.f32 %v3905_v12, %v3937_v50  ;;  %v4001_v32 = vsub.f32 %v3921_v43, %v3937_v50 }
 0xe1d   : > { %6390 = vpow2.f32 %v3974_v56 }
 0xe1e   : > { %6392 = vpow2.f32 %v4022_v34  ;;  %v3978_v47 = vmul.f32 1.442695, %v3953_v29 }
 0xe1f   : > { %6394 = vpow2.f32 %v4016_v24  ;;  %v3907_v24 = vadd.f32 %v7740_v57, %v7727_v51 }
 0xe20   : > { %6396 = vrcp.f32 %v4042_v23 }
 0xe23   : > { %v6379_v8 = vpop.eup %6378 }
 0xe24   : > { %v4059_v15 = vmul.f32 %v6379_v8, %v6363_v33  ;;  %v4089_v40 = vmul.f32 %v6379_v8, %v6365_v0  ;;  %v7772_v28 = vpop.eup %6380  ;;  %v3863_v33 = vpop.xlane.xlu0 %3862 }
 0xe25   : > { %v7774_v1 = vpop.eup %6382  ;;  %v3918_v48 = vadd.f32 %v7740_v57, %v3863_v33 }
 0xe26   : > { %4111 = vperm.xlu1 %6296, %v4059_v15   ;;  %4207 = vperm.xlu0 %6297, %v4089_v40   ;;  %v6385_v0 = vpop.eup %6384  ;;  %v4045_v44 = vadd.f32 %v7774_v1, %v7772_v28 }
 0xe27   : > { %v4088_v53 = vmul.f32 %v6385_v0, %v6369_v63  ;;  %v4057_v34 = vmul.f32 %v6385_v0, %v6367_v4  ;;  %v3934_v30 = vmax.f32 %v3902_v20, %v3918_v48  ;;  %v3878_v63 = vpop.xlane.xlu1 %3877 }
 0xe28   : > { %6398 = vrcp.f32 %v4045_v44  ;;  %v6387_v8 = vpop.eup %6386  ;;  %v3923_v12 = vadd.f32 %v7740_v57, %v3878_v63  ;;  %v3904_v63 = vadd.f32 %v7740_v57, %v7725_v38 }
 0xe29   : > { %v7784_v56 = vpop.eup %6388  ;;  %v3950_v43 = vsub.f32 %v3902_v20, %v3934_v30  ;;  %6400 = vpow2.f32 %v3978_v47  ;;  %v4091_v4 = vmul.f32 %v6387_v8, %v6373_v61  ;;  %v3998_v23 = vsub.f32 %v3918_v48, %v3934_v30  ;;  %v3869_v20 = vpop.xlane.xlu0 %3868 }
 0xe2a   : > { %4460 = vrot.lane.b32.xlu0 %v4059_v15, %s6569_s5  ;;  %4202 = vperm.xlu1 %6296, %v4088_v53   ;;  %v4026_v15 = vmul.f32 1.442695, %v4001_v32  ;;  %v7787_v49 = vpop.eup %6390  ;;  %v4063_v33 = vmul.f32 %v6387_v8, %v7760_v45  ;;  %v3939_v44 = vmax.f32 %v3907_v24, %v3923_v12  ;;  %v3920_v47 = vadd.f32 %v7740_v57, %v3869_v20 }
 0xe2b   : > { %v3972_v29 = vmul.f32 1.442695, %v3950_v43 }
 0xe2c   : > { %6402 = vpow2.f32 %v4026_v15  ;;  %v3955_v48 = vsub.f32 %v3907_v24, %v3939_v44  ;;  %v4003_v45 = vsub.f32 %v3923_v12, %v3939_v44 }
 0xe2d   : > { %6404 = vpow2.f32 %v3972_v29 }
 0xe2e   : > { %4525 = vrot.lane.b32.xlu0 %v4089_v40, %s6570_s6  ;;  %4458 = vrot.lane.b32.xlu1 %v4057_v34, %s6569_s5  ;;  %v7790_v40 = vpop.eup %6392  ;;  %v3982_v8 = vmul.f32 1.442695, %v3955_v48  ;;  %v4030_v12 = vmul.f32 1.442695, %v4003_v45 }
 0xe2f   : > { %v7794_v50 = vpop.eup %6394  ;;  %v4047_v32 = vadd.f32 %v7790_v40, %v7787_v49 }
 0xe30   : > { %v6397_v0 = vpop.eup %6396  ;;  %v4044_v61 = vadd.f32 %v7794_v50, %v7784_v56 }
 0xe31   : > { %v4061_v51 = vmul.f32 %v6397_v0, %v7763_v55  ;;  %6406 = vrcp.f32 %v4047_v32  ;;  %v4090_v15 = vmul.f32 %v6397_v0, %v7765_v17 }
 0xe32   : > { %4106 = vperm.xlu0 %6297, %v4057_v34   ;;  %4523 = vrot.lane.b32.xlu1 %v4088_v53, %s6570_s6  ;;  %v4020_v53 = vmul.f32 1.442695, %v3998_v23  ;;  %v3884_v34 = vpop.xlane.xlu1 %3883 }
 0xe33   : > { %v3925_v55 = vadd.f32 %v7740_v57, %v3884_v34 }
 0xe34   : > { %6408 = vpow2.f32 %v4020_v53 }
 0xe35   : > { %v6399_v30 = vpop.eup %6398  ;;  %6410 = vrcp.f32 %v4044_v61 }
 0xe36   : > { %4217 = vperm.xlu0 %6297, %v4091_v4   ;;  %4121 = vperm.xlu1 %6296, %v4063_v33   ;;  %v7809_v43 = vpop.eup %6400  ;;  %v4093_v24 = vmul.f32 %v6399_v30, %v7774_v1  ;;  %6412 = vpow2.f32 %v3982_v8  ;;  %v4067_v0 = vmul.f32 %v6399_v30, %v7772_v28  ;;  %v3890_v53 = vpop.xlane.xlu1 %3889 }
 0xe37   : > { %6414 = vpow2.f32 %v4030_v12  ;;  %v3927_v30 = vadd.f32 %v7740_v57, %v3890_v53 }
 0xe39   : > { %v7812_v23 = vpop.eup %6402 }
 0xe3a   : > { %4464 = vrot.lane.b32.xlu0 %v4063_v33, %s6569_s5  ;;  %4116 = vperm.xlu1 %6296, %v4061_v51   ;;  %v3936_v33 = vmax.f32 %v3904_v63, %v3920_v47  ;;  %v4049_v38 = vadd.f32 %v7812_v23, %v7809_v43  ;;  %v7821_v32 = vpop.eup %6404 }
 0xe3c   : > { %v3952_v29 = vsub.f32 %v3904_v63, %v3936_v33  ;;  %v4000_v44 = vsub.f32 %v3920_v47, %v3936_v33  ;;  %6416 = vrcp.f32 %v4049_v38 }
 0xe3e   : > { %4529 = vrot.lane.b32.xlu0 %v4091_v4, %s6570_s6  ;;  %4212 = vperm.xlu1 %6296, %v4090_v15   ;;  %v3909_v4 = vadd.f32 %v7740_v57, %v7731_v19  ;;  %v6407_v61 = vpop.eup %6406  ;;  %v3976_v20 = vmul.f32 1.442695, %v3952_v29  ;;  %v4024_v45 = vmul.f32 1.442695, %v4000_v44 }
 0xe3f   : > { %v4095_v63 = vmul.f32 %v6407_v61, %v7790_v40 }
 0xe40   : > { %v3941_v17 = vmax.f32 %v3909_v4, %v3925_v55  ;;  %6418 = vpow2.f32 %v3976_v20 }
 0xe41   : > { %v7824_v48 = vpop.eup %6408  ;;  %6420 = vpow2.f32 %v4024_v45 }
 0xe42   : > { %4227 = vperm.xlu0 %6297, %v4093_v24   ;;  %4462 = vrot.lane.b32.xlu1 %v4061_v51, %s6569_s5  ;;  %v3957_v1 = vsub.f32 %v3909_v4, %v3941_v17  ;;  %v4005_v19 = vsub.f32 %v3925_v55, %v3941_v17  ;;  %v3875_v51 = vpop.xlane.xlu0 %3874  ;;  %v6411_v28 = vpop.eup %6410  ;;  %v4046_v55 = vadd.f32 %v7824_v48, %v7821_v32 }
 0xe43   : > { %v3922_v8 = vadd.f32 %v7740_v57, %v3875_v51  ;;  %v4065_v12 = vmul.f32 %v6411_v28, %v7784_v56  ;;  %v6413_v33 = vpop.eup %6412  ;;  %v4092_v38 = vmul.f32 %v6411_v28, %v7794_v50 }
 0xe44   : > { %v3986_v34 = vmul.f32 1.442695, %v3957_v1  ;;  %v4034_v47 = vmul.f32 1.442695, %v4005_v19  ;;  %v7838_v40 = vpop.eup %6414 }
 0xe45   : > { %v4051_v56 = vadd.f32 %v7838_v40, %v6413_v33 }
 0xe46   : > { %4468 = vrot.lane.b32.xlu0 %v4067_v0, %s6569_s5  ;;  %4527 = vrot.lane.b32.xlu1 %v4090_v15, %s6570_s6  ;;  %v3911_v15 = vadd.f32 %v7740_v57, %v7735_v60  ;;  %6422 = vpow2.f32 %v3986_v34  ;;  %v4071_v60 = vmul.f32 %v6407_v61, %v7787_v49  ;;  %v3881_v19 = vpop.xlane.xlu0 %3880  ;;  %v3908_v34 = vadd.f32 %v7740_v57, %v7733_v26 }
 0xe47   : > { %6424 = vpow2.f32 %v4034_v47  ;;  %v3924_v20 = vadd.f32 %v7740_v57, %v3881_v19 }
 0xe48   : > { %v3943_v4 = vmax.f32 %v3911_v15, %v3927_v30  ;;  %6426 = vrcp.f32 %v4046_v55 }
 0xe49   : > { %6428 = vrcp.f32 %v4051_v56 }
 0xe4a   : > { %4533 = vrot.lane.b32.xlu0 %v4093_v24, %s6570_s6  ;;  %4131 = vperm.xlu1 %6296, %v4067_v0   ;;  %v3906_v24 = vadd.f32 %v7740_v57, %v7729_v62  ;;  %v3959_v0 = vsub.f32 %v3911_v15, %v3943_v4  ;;  %v4007_v29 = vsub.f32 %v3927_v30, %v3943_v4  ;;  %v6417_v62 = vpop.eup %6416 }
 0xe4b   : > { %v4075_v61 = vmul.f32 %v6417_v62, %v7809_v43  ;;  %v4097_v47 = vmul.f32 %v6417_v62, %v7812_v23  ;;  %v3940_v43 = vmax.f32 %v3908_v34, %v3924_v20 }
 0xe4c   : > { %v3938_v17 = vmax.f32 %v3906_v24, %v3922_v8  ;;  %v3990_v49 = vmul.f32 1.442695, %v3959_v0  ;;  %v4038_v53 = vmul.f32 1.442695, %v4007_v29 }
 0xe4d   : > { %v6419_v45 = vpop.eup %6418  ;;  %v4004_v26 = vsub.f32 %v3924_v20, %v3940_v43 }
 0xe4e   : > { %4237 = vperm.xlu0 %6297, %v4095_v63   ;;  %4126 = vperm.xlu1 %6296, %v4065_v12   ;;  %v3954_v44 = vsub.f32 %v3906_v24, %v3938_v17  ;;  %v4002_v1 = vsub.f32 %v3922_v8, %v3938_v17  ;;  %v7847_v28 = vpop.eup %6420  ;;  %6430 = vpow2.f32 %v3990_v49  ;;  %v3887_v24 = vpop.xlane.xlu0 %3886 }
 0xe4f   : > { %6432 = vpow2.f32 %v4038_v53  ;;  %v4048_v15 = vadd.f32 %v7847_v28, %v6419_v45  ;;  %v4032_v0 = vmul.f32 1.442695, %v4004_v26 }
 0xe50   : > { %v3980_v50 = vmul.f32 1.442695, %v3954_v44  ;;  %v4028_v51 = vmul.f32 1.442695, %v4002_v1 }
 0xe52   : > { %4472 = vrot.lane.b32.xlu0 %v4071_v60, %s6569_s5  ;;  %4222 = vperm.xlu1 %6296, %v4092_v38   ;;  %6434 = vpow2.f32 %v3980_v50 }
 0xe53   : > { %v6423_v30 = vpop.eup %6422  ;;  %6436 = vpow2.f32 %v4028_v51 }
 0xe54   : > { %6438 = vrcp.f32 %v4048_v15 }
 0xe56   : > { %4537 = vrot.lane.b32.xlu0 %v4095_v63, %s6570_s6  ;;  %4466 = vrot.lane.b32.xlu1 %v4065_v12, %s6569_s5  ;;  %v6425_v63 = vpop.eup %6424  ;;  %v3956_v12 = vsub.f32 %v3908_v34, %v3940_v43 }
 0xe57   : > { %v6427_v8 = vpop.eup %6426  ;;  %v4053_v55 = vadd.f32 %v6425_v63, %v6423_v30 }
 0xe58   : > { %v4069_v4 = vmul.f32 %v6427_v8, %v7821_v32  ;;  %v6429_v23 = vpop.eup %6428  ;;  %v3984_v17 = vmul.f32 1.442695, %v3956_v12  ;;  %v4094_v56 = vmul.f32 %v6427_v8, %v7824_v48 }
 0xe59   : > { %6440 = vrcp.f32 %v4053_v55  ;;  %v4079_v62 = vmul.f32 %v6429_v23, %v6413_v33  ;;  %v4099_v53 = vmul.f32 %v6429_v23, %v7838_v40 }
 0xe5a   : > { %4151 = vperm.xlu0 %6297, %v4075_v61   ;;  %4531 = vrot.lane.b32.xlu1 %v4092_v38, %s6570_s6  ;;  %v3926_v38 = vadd.f32 %v7740_v57, %v3887_v24  ;;  %6442 = vpow2.f32 %v3984_v17 }
 0xe5b   : > { %v6431_v29 = vpop.eup %6430  ;;  %6444 = vpow2.f32 %v4032_v0 }
 0xe5c   : > { %v6433_v44 = vpop.eup %6432 }
 0xe5d   : > { %v4055_v49 = vadd.f32 %v6433_v44, %v6431_v29 }
 0xe5e   : > { %4247 = vperm.xlu0 %6297, %v4097_v47   ;;  %4141 = vperm.xlu1 %6296, %v4071_v60   ;;  %v3910_v60 = vadd.f32 %v7740_v57, %v7742_v14 }
 0xe5f   : > { %v6435_v1 = vpop.eup %6434  ;;  %6446 = vrcp.f32 %v4055_v49 }
 0xe60   : > { %v3942_v32 = vmax.f32 %v3910_v60, %v3926_v38  ;;  %v6437_v19 = vpop.eup %6436 }
 0xe61   : > { %v4050_v48 = vadd.f32 %v6437_v19, %v6435_v1  ;;  %v6439_v14 = vpop.eup %6438 }
 0xe62   : > { %4476 = vrot.lane.b32.xlu0 %v4075_v61, %s6569_s5  ;;  %4136 = vperm.xlu1 %6296, %v4069_v4   ;;  %v3958_v61 = vsub.f32 %v3910_v60, %v3942_v32  ;;  %v4006_v50 = vsub.f32 %v3926_v38, %v3942_v32  ;;  %v4073_v51 = vmul.f32 %v6439_v14, %v6419_v45 }
 0xe63   : > { %6448 = vrcp.f32 %v4050_v48  ;;  %v4096_v40 = vmul.f32 %v6439_v14, %v7847_v28 }
 0xe64   : > { %v3988_v33 = vmul.f32 1.442695, %v3958_v61  ;;  %v4036_v20 = vmul.f32 1.442695, %v4006_v50 }
 0xe66   : > { %4541 = vrot.lane.b32.xlu0 %v4097_v47, %s6570_s6  ;;  %4232 = vperm.xlu1 %6296, %v4094_v56   ;;  %v6441_v57 = vpop.eup %6440  ;;  %6450 = vpow2.f32 %v3988_v33 }
 0xe67   : > { %v4083_v34 = vmul.f32 %v6441_v57, %v6423_v30  ;;  %v6443_v47 = vpop.eup %6442  ;;  %6452 = vpow2.f32 %v4036_v20  ;;  %v4101_v15 = vmul.f32 %v6441_v57, %v6425_v63 }
 0xe68   : > { %v6445_v43 = vpop.eup %6444 }
 0xe69   : > { %v4052_v8 = vadd.f32 %v6445_v43, %v6443_v47 }
 0xe6a   : > { %4161 = vperm.xlu0 %6297, %v4079_v62   ;;  %4470 = vrot.lane.b32.xlu1 %v4069_v4, %s6569_s5 }
 0xe6b   : > { %6454 = vrcp.f32 %v4052_v8 }
 0xe6c   : > { %v6447_v55 = vpop.eup %6446 }
 0xe6d   : > { %v4087_v30 = vmul.f32 %v6447_v55, %v6431_v29  ;;  %v4103_v28 = vmul.f32 %v6447_v55, %v6433_v44 }
 0xe6e   : > { %4257 = vperm.xlu0 %6297, %v4099_v53   ;;  %4535 = vrot.lane.b32.xlu1 %v4094_v56, %s6570_s6 }
 0xe70   : > { %v6449_v45 = vpop.eup %6448 }
 0xe71   : > { %v4077_v26 = vmul.f32 %v6449_v45, %v6435_v1  ;;  %v4098_v63 = vmul.f32 %v6449_v45, %v6437_v19 }
 0xe72   : > { %4480 = vrot.lane.b32.xlu0 %v4079_v62, %s6569_s5  ;;  %4146 = vperm.xlu1 %6296, %v4073_v51  }
 0xe73   : > { %v6451_v12 = vpop.eup %6450 }
 0xe74   : > { %v6453_v24 = vpop.eup %6452 }
 0xe75   : > { %v4054_v4 = vadd.f32 %v6453_v24, %v6451_v12 }
 0xe76   : > { %4171 = vperm.xlu0 %6297, %v4083_v34   ;;  %4242 = vperm.xlu1 %6296, %v4096_v40  }
 0xe77   : > { %6456 = vrcp.f32 %v4054_v4 }
 0xe78   : > { %v6455_v23 = vpop.eup %6454 }
 0xe79   : > { %v4081_v17 = vmul.f32 %v6455_v23, %v6443_v47  ;;  %v4100_v38 = vmul.f32 %v6455_v23, %v6445_v43 }
 0xe7a   : > { %4267 = vperm.xlu0 %6297, %v4101_v15   ;;  %4474 = vrot.lane.b32.xlu1 %v4073_v51, %s6569_s5 }
 0xe7e   : > { %4484 = vrot.lane.b32.xlu0 %v4083_v34, %s6569_s5  ;;  %4539 = vrot.lane.b32.xlu1 %v4096_v40, %s6570_s6 }
 0xe82   : > { %4181 = vperm.xlu0 %6297, %v4087_v30   ;;  %4156 = vperm.xlu1 %6296, %v4077_v26  }
 0xe84   : > { %v6457_v0 = vpop.eup %6456 }
 0xe85   : > { %v4085_v56 = vmul.f32 %v6457_v0, %v6451_v12  ;;  %v4102_v60 = vmul.f32 %v6457_v0, %v6453_v24  ;;  %v8219_v24 = vld [vmem:[#allocation5_spill] sm:$0xff] }
 0xe86   : > { %4277 = vperm.xlu0 %6297, %v4103_v28   ;;  %4252 = vperm.xlu1 %6296, %v4098_v63   ;;  %v8223_v0 = vld [vmem:[#allocation33_spill] sm:$0xff] }
 0xe8a   : > { %4488 = vrot.lane.b32.xlu0 %v4087_v30, %s6569_s5  ;;  %4478 = vrot.lane.b32.xlu1 %v4077_v26, %s6569_s5 }
 0xe8e   : > { %4545 = vrot.lane.b32.xlu0 %v4099_v53, %s6570_s6  ;;  %4166 = vperm.xlu1 %6296, %v4081_v17  }
 0xe92   : > { %4549 = vrot.lane.b32.xlu0 %v4101_v15, %s6570_s6  ;;  %4262 = vperm.xlu1 %6296, %v4100_v38  }
 0xe96   : > { %4553 = vrot.lane.b32.xlu0 %v4103_v28, %s6570_s6  ;;  %4482 = vrot.lane.b32.xlu1 %v4081_v17, %s6569_s5  ;;  %v8220_v17 = vld [vmem:[#allocation25_spill] sm:$0xff] }
 0xe9a   : > { %4176 = vperm.xlu1 %6296, %v4085_v56  }
 0xe9e   : > { %4272 = vperm.xlu1 %6296, %v4102_v60  }
 0xea1   : > { %v4112_v29 = vpop.permute.xlu1 %4111  ;;  %v4208_v62 = vpop.permute.xlu0 %4207 }
 0xea2   : > { %v4185_v44 = vmul.f32 %v4112_v29, %v7100_v3  ;;  %v4281_v32 = vmul.f32 %v4208_v62, %v7436_v10  ;;  %4543 = vrot.lane.b32.xlu1 %v4098_v63, %s6570_s6  ;;  %v8225_v62 = vld [vmem:[#allocation14_spill] sm:$0xff] }
 0xea4   : > { %v4297_v1 = vadd.f32 %v4281_v32, %v4185_v44 }
 0xea5   : > { %v4461_v19 = vpop.permute.xlu0 %4460  ;;  %v4203_v3 = vpop.permute.xlu1 %4202 }
 0xea6   : > { %4313 = vst.msk [vmem:[%s7881_s10 + $0x8] sm:$0xff] %vm1354_vm3, %v4297_v1  ;;  %4547 = vrot.lane.b32.xlu1 %v4100_v38, %s6570_s6  ;;  %v4280_v53 = vmul.f32 %v4203_v3, %v7442_v18  ;;  %v8226_v3 = vld [vmem:[#allocation22_spill] sm:$0xff] }
 0xea7   : > { %4378 = vst.msk [vmem:[%s7881_s10 + $0x8] sm:$0xff] %vm4376_vm4, %v7635_v2 }
 0xea8   : > { %4443 = vst.msk [vmem:[%s7881_s10 + $0x8] sm:$0xff] %vm4441_vm5, %v7689_v46 }
 0xea9   : > { %4508 = vst.msk [vmem:[%s7881_s10 + $0x8] sm:$0xff] %vm4506_vm6, %v4461_v19  ;;  %v4526_v10 = vpop.permute.xlu0 %4525  ;;  %v4459_v49 = vpop.permute.xlu1 %4458 }
 0xeaa   : > { %4573 = vst.msk [vmem:[%s7881_s10 + $0x8] sm:$0xff] %vm4571_vm7, %v4526_v10  ;;  %4486 = vrot.lane.b32.xlu1 %v4085_v56, %s6569_s5 }
 0xead   : > { %v4107_v2 = vpop.permute.xlu0 %4106  ;;  %v4524_v46 = vpop.permute.xlu1 %4523 }
 0xeae   : > { %v4184_v61 = vmul.f32 %v4107_v2, %v7102_v5  ;;  %4551 = vrot.lane.b32.xlu1 %v4102_v60, %s6570_s6  ;;  %v8224_v60 = vld [vmem:[#allocation6_spill] sm:$0xff]  ;;  %v8228_v2 = vld [vmem:[#allocation8_spill] sm:$0xff] }
 0xeb0   : > { %v4296_v48 = vadd.f32 %v4280_v53, %v4184_v61  ;;  %v8229_v61 = vld [vmem:[#allocation16_spill] sm:$0xff] }
 0xeb1   : > { %v4218_v50 = vpop.permute.xlu0 %4217  ;;  %v4122_v57 = vpop.permute.xlu1 %4121 }
 0xeb2   : > { %4312 = vst.msk [vmem:[%s7881_s10] sm:$0xff] %vm1354_vm3, %v4296_v48  ;;  %v4283_v14 = vmul.f32 %v4218_v50, %v7454_v25  ;;  %v4187_v5 = vmul.f32 %v4122_v57, %v7106_v7  ;;  %v8230_v57 = vld [vmem:[#allocation27_spill] sm:$0xff] }
 0xeb3   : > { %4377 = vst.msk [vmem:[%s7881_s10] sm:$0xff] %vm4376_vm4, %v7624_v6 }
 0xeb4   : > { %4442 = vst.msk [vmem:[%s7881_s10] sm:$0xff] %vm4441_vm5, %v7683_v27  ;;  %v4299_v33 = vadd.f32 %v4283_v14, %v4187_v5 }
 0xeb5   : > { %4507 = vst.msk [vmem:[%s7881_s10] sm:$0xff] %vm4506_vm6, %v4459_v49  ;;  %v4465_v18 = vpop.permute.xlu0 %4464  ;;  %v4117_v20 = vpop.permute.xlu1 %4116  ;;  %v8227_v49 = vld [vmem:[#allocation32_spill] sm:$0xff] }
 0xeb6   : > { %4572 = vst.msk [vmem:[%s7881_s10] sm:$0xff] %vm4571_vm7, %v4524_v46  ;;  %v4186_v6 = vmul.f32 %v4117_v20, %v7110_v9 }
 0xeb7   : > { %4315 = vst.msk [vmem:[%s7881_s10 + $0x18] sm:$0xff] %vm1354_vm3, %v4299_v33 }
 0xeb8   : > { %4380 = vst.msk [vmem:[%s7881_s10 + $0x18] sm:$0xff] %vm4376_vm4, %v7646_v35 }
 0xeb9   : > { %v4530_v25 = vpop.permute.xlu0 %4529  ;;  %4445 = vst.msk [vmem:[%s7881_s10 + $0x18] sm:$0xff] %vm4441_vm5, %v7697_v52  ;;  %v4213_v7 = vpop.permute.xlu1 %4212 }
 0xeba   : > { %4510 = vst.msk [vmem:[%s7881_s10 + $0x18] sm:$0xff] %vm4506_vm6, %v4465_v18  ;;  %v4282_v27 = vmul.f32 %v4213_v7, %v7459_v31  ;;  %v8231_v18 = vld [vmem:[#allocation37_spill] sm:$0xff] }
 0xebb   : > { %4575 = vst.msk [vmem:[%s7881_s10 + $0x18] sm:$0xff] %vm4571_vm7, %v4530_v25  ;;  %v8232_v25 = vld [vmem:[#allocation7_spill] sm:$0xff] }
 0xebc   : > { %v4298_v34 = vadd.f32 %v4282_v27, %v4186_v6  ;;  %v8233_v6 = vld [vmem:[#allocation15_spill] sm:$0xff] }
 0xebd   : > { %v4228_v51 = vpop.permute.xlu0 %4227  ;;  %v4463_v47 = vpop.permute.xlu1 %4462 }
 0xebe   : > { %4314 = vst.msk [vmem:[%s7881_s10 + $0x10] sm:$0xff] %vm1354_vm3, %v4298_v34  ;;  %v4285_v40 = vmul.f32 %v4228_v51, %v7468_v37 }
 0xebf   : > { %4379 = vst.msk [vmem:[%s7881_s10 + $0x10] sm:$0xff] %vm4376_vm4, %v7637_v22 }
 0xec0   : > { %4444 = vst.msk [vmem:[%s7881_s10 + $0x10] sm:$0xff] %vm4441_vm5, %v7693_v59 }
 0xec1   : > { %v4469_v35 = vpop.permute.xlu0 %4468  ;;  %4509 = vst.msk [vmem:[%s7881_s10 + $0x10] sm:$0xff] %vm4506_vm6, %v4463_v47  ;;  %v4528_v9 = vpop.permute.xlu1 %4527  ;;  %v8234_v47 = vld [vmem:[#allocation10_spill] sm:$0xff] }
 0xec2   : > { %4574 = vst.msk [vmem:[%s7881_s10 + $0x10] sm:$0xff] %vm4571_vm7, %v4528_v9  ;;  %v8235_v9 = vld [vmem:[#allocation18_spill] sm:$0xff] }
 0xec5   : > { %v4534_v31 = vpop.permute.xlu0 %4533  ;;  %v4132_v52 = vpop.permute.xlu1 %4131 }
 0xec6   : > { %v4189_v43 = vmul.f32 %v4132_v52, %v7114_v11 }
 0xec8   : > { %v4301_v15 = vadd.f32 %v4285_v40, %v4189_v43  ;;  %v8236_v43 = vld [vmem:[#allocation24_spill] sm:$0xff] }
 0xec9   : > { %v4238_v22 = vpop.permute.xlu0 %4237  ;;  %v4127_v8 = vpop.permute.xlu1 %4126 }
 0xeca   : > { %4317 = vst.msk [vmem:[%s7881_s10 + $0x28] sm:$0xff] %vm1354_vm3, %v4301_v15  ;;  %v4188_v37 = vmul.f32 %v4127_v8, %v7118_v13  ;;  %v8237_v15 = vld [vmem:[#allocation34_spill] sm:$0xff]  ;;  %v8238_v8 = vld [vmem:[#allocation29_spill] sm:$0xff] }
 0xecb   : > { %4382 = vst.msk [vmem:[%s7881_s10 + $0x28] sm:$0xff] %vm4376_vm4, %v7656_v36 }
 0xecc   : > { %4447 = vst.msk [vmem:[%s7881_s10 + $0x28] sm:$0xff] %vm4441_vm5, %v7705_v54 }
 0xecd   : > { %v4473_v59 = vpop.permute.xlu0 %4472  ;;  %4512 = vst.msk [vmem:[%s7881_s10 + $0x28] sm:$0xff] %vm4506_vm6, %v4469_v35  ;;  %v4223_v11 = vpop.permute.xlu1 %4222 }
 0xece   : > { %4577 = vst.msk [vmem:[%s7881_s10 + $0x28] sm:$0xff] %vm4571_vm7, %v4534_v31  ;;  %v4284_v55 = vmul.f32 %v4223_v11, %v7476_v42  ;;  %v8239_v11 = vld [vmem:[#allocation39_spill] sm:$0xff] }
 0xed0   : > { %v4300_v30 = vadd.f32 %v4284_v55, %v4188_v37 }
 0xed1   : > { %v4538_v45 = vpop.permute.xlu0 %4537  ;;  %v4467_v12 = vpop.permute.xlu1 %4466 }
 0xed2   : > { %4316 = vst.msk [vmem:[%s7881_s10 + $0x20] sm:$0xff] %vm1354_vm3, %v4300_v30  ;;  %v8240_v30 = vld [vmem:[#allocation12_spill] sm:$0xff] }
 0xed3   : > { %4381 = vst.msk [vmem:[%s7881_s10 + $0x20] sm:$0xff] %vm4376_vm4, %v7648_v58 }
 0xed4   : > { %4446 = vst.msk [vmem:[%s7881_s10 + $0x20] sm:$0xff] %vm4441_vm5, %v7701_v39  ;;  %v4287_v39 = vmul.f32 %v4238_v22, %v7439_v16  ;;  %v8222_v16 = vld [vmem:[#allocation23_spill] sm:$0xff] }
 0xed5   : > { %v4152_v36 = vpop.permute.xlu0 %4151  ;;  %4511 = vst.msk [vmem:[%s7881_s10 + $0x20] sm:$0xff] %vm4506_vm6, %v4467_v12  ;;  %v4532_v13 = vpop.permute.xlu1 %4531 }
 0xed6   : > { %4576 = vst.msk [vmem:[%s7881_s10 + $0x20] sm:$0xff] %vm4571_vm7, %v4532_v13  ;;  %v4193_v54 = vmul.f32 %v4152_v36, %v7130_v21  ;;  %v8241_v36 = vld [vmem:[#allocation20_spill] sm:$0xff] }
 0xed9   : > { %v4248_v42 = vpop.permute.xlu0 %4247  ;;  %v4142_v26 = vpop.permute.xlu1 %4141 }
 0xeda   : > { %v4289_v58 = vmul.f32 %v4248_v42, %v7473_v41  ;;  %v4191_v28 = vmul.f32 %v4142_v26, %v8219_v24  ;;  %v8221_v41 = vld [vmem:[#allocation35_spill] sm:$0xff]  ;;  %v8243_v26 = vld [vmem:[#allocation17_spill] sm:$0xff] }
 0xedc   : > { %v4305_v4 = vadd.f32 %v4289_v58, %v4193_v54  ;;  %v4303_v23 = vadd.f32 %v4287_v39, %v4191_v28  ;;  %v8242_v54 = vld [vmem:[#allocation9_spill] sm:$0xff] }
 0xedd   : > { %v4477_v63 = vpop.permute.xlu0 %4476  ;;  %v4137_v21 = vpop.permute.xlu1 %4136 }
 0xede   : > { %4321 = vst.msk [vmem:[%s7881_s10 + $0x48] sm:$0xff] %vm1354_vm3, %v4305_v4  ;;  %4319 = vst.msk [vmem:[%s7881_s10 + $0x38] sm:$0xff] %vm1354_vm3, %v4303_v23  ;;  %v4190_v29 = vmul.f32 %v4137_v21, %v8224_v60  ;;  %v8246_v21 = vld [vmem:[#allocation26_spill] sm:$0xff]  ;;  %v8248_v60 = vld [vmem:[#allocation11_spill] sm:$0xff] }
 0xedf   : > { %4386 = vst.msk [vmem:[%s7881_s10 + $0x48] sm:$0xff] %vm4376_vm4, %v8220_v17  ;;  %4384 = vst.msk [vmem:[%s7881_s10 + $0x38] sm:$0xff] %vm4376_vm4, %v8222_v16  ;;  %v8245_v17 = vld [vmem:[#allocation41_spill] sm:$0xff]  ;;  %v8247_v16 = vld [vmem:[#allocation36_spill] sm:$0xff] }
 0xee0   : > { %4451 = vst.msk [vmem:[%s7881_s10 + $0x48] sm:$0xff] %vm4441_vm5, %v8221_v41  ;;  %4449 = vst.msk [vmem:[%s7881_s10 + $0x38] sm:$0xff] %vm4441_vm5, %v8223_v0 }
 0xee1   : > { %4516 = vst.msk [vmem:[%s7881_s10 + $0x48] sm:$0xff] %vm4506_vm6, %v4477_v63  ;;  %v4542_v38 = vpop.permute.xlu0 %4541  ;;  %4514 = vst.msk [vmem:[%s7881_s10 + $0x38] sm:$0xff] %vm4506_vm6, %v4473_v59  ;;  %v4233_v56 = vpop.permute.xlu1 %4232  ;;  %v8244_v63 = vld [vmem:[#allocation31_spill] sm:$0xff] }
 0xee2   : > { %4581 = vst.msk [vmem:[%s7881_s10 + $0x48] sm:$0xff] %vm4571_vm7, %v4542_v38  ;;  %4579 = vst.msk [vmem:[%s7881_s10 + $0x38] sm:$0xff] %vm4571_vm7, %v4538_v45  ;;  %v4286_v44 = vmul.f32 %v4233_v56, %v8225_v62  ;;  %v8249_v62 = vld [vmem:[#allocation19_spill] sm:$0xff] }
 0xee4   : > { %v4302_v1 = vadd.f32 %v4286_v44, %v4190_v29 }
 0xee5   : > { %v4162_v32 = vpop.permute.xlu0 %4161  ;;  %v4471_v19 = vpop.permute.xlu1 %4470 }
 0xee6   : > { %4318 = vst.msk [vmem:[%s7881_s10 + $0x30] sm:$0xff] %vm1354_vm3, %v4302_v1  ;;  %v4195_v53 = vmul.f32 %v4162_v32, %v8228_v2 }
 0xee7   : > { %4383 = vst.msk [vmem:[%s7881_s10 + $0x30] sm:$0xff] %vm4376_vm4, %v8226_v3  ;;  %v8250_v3 = vld [vmem:[#allocation28_spill] sm:$0xff] }
 0xee8   : > { %4448 = vst.msk [vmem:[%s7881_s10 + $0x30] sm:$0xff] %vm4441_vm5, %v8227_v49 }
 0xee9   : > { %v4258_v10 = vpop.permute.xlu0 %4257  ;;  %4513 = vst.msk [vmem:[%s7881_s10 + $0x30] sm:$0xff] %vm4506_vm6, %v4471_v19  ;;  %v4536_v48 = vpop.permute.xlu1 %4535 }
 0xeea   : > { %v4291_v46 = vmul.f32 %v4258_v10, %v8229_v61  ;;  %4578 = vst.msk [vmem:[%s7881_s10 + $0x30] sm:$0xff] %vm4571_vm7, %v4536_v48  ;;  %v8251_v10 = vld [vmem:[#allocation38_spill] sm:$0xff] }
 0xeec   : > { %v4307_v50 = vadd.f32 %v4291_v46, %v4195_v53  ;;  %v8252_v53 = vld [vmem:[#allocation13_spill] sm:$0xff] }
 0xeed   : > { %v4481_v14 = vpop.permute.xlu0 %4480  ;;  %v4147_v5 = vpop.permute.xlu1 %4146  ;;  %v8253_v46 = vld [vmem:[#allocation21_spill] sm:$0xff] }
 0xeee   : > { %4323 = vst.msk [vmem:[%s7881_s10 + $0x58] sm:$0xff] %vm1354_vm3, %v4307_v50  ;;  %v4192_v7 = vmul.f32 %v4147_v5, %v8232_v25  ;;  %v8255_v5 = vld [vmem:[#allocation40_spill] sm:$0xff] }
 0xeef   : > { %4388 = vst.msk [vmem:[%s7881_s10 + $0x58] sm:$0xff] %vm4376_vm4, %v8230_v57  ;;  %v8254_v57 = vld [vmem:[#allocation30_spill] sm:$0xff] }
 0xef0   : > { %4453 = vst.msk [vmem:[%s7881_s10 + $0x58] sm:$0xff] %vm4441_vm5, %v8231_v18 }
 0xef1   : > { %4518 = vst.msk [vmem:[%s7881_s10 + $0x58] sm:$0xff] %vm4506_vm6, %v4481_v14  ;;  %v4172_v33 = vpop.permute.xlu0 %4171  ;;  %v4243_v20 = vpop.permute.xlu1 %4242 }
 0xef2   : > { %v4288_v27 = vmul.f32 %v4243_v20, %v8233_v6  ;;  %v4197_v35 = vmul.f32 %v4172_v33, %v8234_v47 }
 0xef4   : > { %v4304_v34 = vadd.f32 %v4288_v27, %v4192_v7 }
 0xef5   : > { %v4268_v51 = vpop.permute.xlu0 %4267  ;;  %v4475_v52 = vpop.permute.xlu1 %4474 }
 0xef6   : > { %v4293_v31 = vmul.f32 %v4268_v51, %v8235_v9  ;;  %4320 = vst.msk [vmem:[%s7881_s10 + $0x40] sm:$0xff] %vm1354_vm3, %v4304_v34 }
 0xef7   : > { %4385 = vst.msk [vmem:[%s7881_s10 + $0x40] sm:$0xff] %vm4376_vm4, %v8236_v43 }
 0xef8   : > { %v4309_v40 = vadd.f32 %v4293_v31, %v4197_v35  ;;  %4450 = vst.msk [vmem:[%s7881_s10 + $0x40] sm:$0xff] %vm4441_vm5, %v8237_v15 }
 0xef9   : > { %v4485_v22 = vpop.permute.xlu0 %4484  ;;  %4515 = vst.msk [vmem:[%s7881_s10 + $0x40] sm:$0xff] %vm4506_vm6, %v4475_v52  ;;  %v4540_v59 = vpop.permute.xlu1 %4539 }
 0xefa   : > { %4325 = vst.msk [vmem:[%s7881_s10 + $0x68] sm:$0xff] %vm1354_vm3, %v4309_v40 }
 0xefb   : > { %4390 = vst.msk [vmem:[%s7881_s10 + $0x68] sm:$0xff] %vm4376_vm4, %v8238_v8 }
 0xefc   : > { %4455 = vst.msk [vmem:[%s7881_s10 + $0x68] sm:$0xff] %vm4441_vm5, %v8239_v11 }
 0xefd   : > { %4580 = vst.msk [vmem:[%s7881_s10 + $0x40] sm:$0xff] %vm4571_vm7, %v4540_v59  ;;  %v4182_v37 = vpop.permute.xlu0 %4181  ;;  %v4157_v55 = vpop.permute.xlu1 %4156 }
 0xefe   : > { %4520 = vst.msk [vmem:[%s7881_s10 + $0x68] sm:$0xff] %vm4506_vm6, %v4485_v22  ;;  %v4199_v12 = vmul.f32 %v4182_v37, %v8240_v30  ;;  %v4194_v58 = vmul.f32 %v4157_v55, %v8242_v54 }
 0xf01   : > { %v4278_v45 = vpop.permute.xlu0 %4277  ;;  %v4253_v42 = vpop.permute.xlu1 %4252 }
 0xf02   : > { %v4295_v13 = vmul.f32 %v4278_v45, %v8241_v36  ;;  %v4290_v39 = vmul.f32 %v4253_v42, %v8243_v26 }
 0xf04   : > { %v4311_v24 = vadd.f32 %v4295_v13, %v4199_v12  ;;  %v4306_v4 = vadd.f32 %v4290_v39, %v4194_v58 }
 0xf05   : > { %v4489_v28 = vpop.permute.xlu0 %4488  ;;  %v4479_v23 = vpop.permute.xlu1 %4478 }
 0xf06   : > { %4327 = vst.msk [vmem:[%s7881_s10 + $0x78] sm:$0xff] %vm1354_vm3, %v4311_v24  ;;  %4322 = vst.msk [vmem:[%s7881_s10 + $0x50] sm:$0xff] %vm1354_vm3, %v4306_v4 }
 0xf07   : > { %4392 = vst.msk [vmem:[%s7881_s10 + $0x78] sm:$0xff] %vm4376_vm4, %v8244_v63  ;;  %4387 = vst.msk [vmem:[%s7881_s10 + $0x50] sm:$0xff] %vm4376_vm4, %v8246_v21 }
 0xf08   : > { %4457 = vst.msk [vmem:[%s7881_s10 + $0x78] sm:$0xff] %vm4441_vm5, %v8245_v17  ;;  %4452 = vst.msk [vmem:[%s7881_s10 + $0x50] sm:$0xff] %vm4441_vm5, %v8247_v16 }
 0xf09   : > { %4522 = vst.msk [vmem:[%s7881_s10 + $0x78] sm:$0xff] %vm4506_vm6, %v4489_v28  ;;  %v4546_v41 = vpop.permute.xlu0 %4545  ;;  %4517 = vst.msk [vmem:[%s7881_s10 + $0x50] sm:$0xff] %vm4506_vm6, %v4479_v23  ;;  %v4167_v38 = vpop.permute.xlu1 %4166 }
 0xf0a   : > { %4583 = vst.msk [vmem:[%s7881_s10 + $0x58] sm:$0xff] %vm4571_vm7, %v4546_v41  ;;  %v4196_v29 = vmul.f32 %v4167_v38, %v8248_v60 }
 0xf0d   : > { %v4550_v0 = vpop.permute.xlu0 %4549  ;;  %v4263_v56 = vpop.permute.xlu1 %4262 }
 0xf0e   : > { %4585 = vst.msk [vmem:[%s7881_s10 + $0x68] sm:$0xff] %vm4571_vm7, %v4550_v0  ;;  %v4292_v44 = vmul.f32 %v4263_v56, %v8249_v62 }
 0xf10   : > { %v4308_v1 = vadd.f32 %v4292_v44, %v4196_v29 }
 0xf11   : > { %v4554_v32 = vpop.permute.xlu0 %4553  ;;  %v4483_v19 = vpop.permute.xlu1 %4482 }
 0xf12   : > { %4587 = vst.msk [vmem:[%s7881_s10 + $0x78] sm:$0xff] %vm4571_vm7, %v4554_v32 }
 0xf13   : > { %4324 = vst.msk [vmem:[%s7881_s10 + $0x60] sm:$0xff] %vm1354_vm3, %v4308_v1 }
 0xf14   : > { %4389 = vst.msk [vmem:[%s7881_s10 + $0x60] sm:$0xff] %vm4376_vm4, %v8250_v3 }
 0xf15   : > { %4454 = vst.msk [vmem:[%s7881_s10 + $0x60] sm:$0xff] %vm4441_vm5, %v8251_v10  ;;  %v4177_v49 = vpop.permute.xlu1 %4176 }
 0xf16   : > { %4519 = vst.msk [vmem:[%s7881_s10 + $0x60] sm:$0xff] %vm4506_vm6, %v4483_v19  ;;  %v4198_v61 = vmul.f32 %v4177_v49, %v8252_v53 }
 0xf19   : > { %v4273_v2 = vpop.permute.xlu1 %4272 }
 0xf1a   : > { %v4294_v48 = vmul.f32 %v4273_v2, %v8253_v46 }
 0xf1c   : > { %v4310_v50 = vadd.f32 %v4294_v48, %v4198_v61 }
 0xf1d   : > { %v4544_v14 = vpop.permute.xlu1 %4543 }
 0xf1e   : > { %4326 = vst.msk [vmem:[%s7881_s10 + $0x70] sm:$0xff] %vm1354_vm3, %v4310_v50 }
 0xf1f   : > { %4582 = vst.msk [vmem:[%s7881_s10 + $0x50] sm:$0xff] %vm4571_vm7, %v4544_v14 }
 0xf20   : > { %4391 = vst.msk [vmem:[%s7881_s10 + $0x70] sm:$0xff] %vm4376_vm4, %v8254_v57 }
 0xf21   : > { %4456 = vst.msk [vmem:[%s7881_s10 + $0x70] sm:$0xff] %vm4441_vm5, %v8255_v5  ;;  %v4548_v18 = vpop.permute.xlu1 %4547 }
 0xf22   : > { %4584 = vst.msk [vmem:[%s7881_s10 + $0x60] sm:$0xff] %vm4571_vm7, %v4548_v18 }
 0xf25   : > { %v4487_v33 = vpop.permute.xlu1 %4486 }
 0xf26   : > { %4521 = vst.msk [vmem:[%s7881_s10 + $0x70] sm:$0xff] %vm4506_vm6, %v4487_v33 }
 0xf29   : > { %v4552_v20 = vpop.permute.xlu1 %4551 }
 0xf2a   : > { %4586 = vst.msk [vmem:[%s7881_s10 + $0x70] sm:$0xff] %vm4571_vm7, %v4552_v20 }
 0xf2b   : > { %6517 = shalt.err (!%p6514_p3)
}
 0xf2c   : > { %s6518_s28 = scalar_lea.hbm %s8111_s17, 2048  ;;  %s6522_s4 = scalar_lea.hbm %s8162_s3, 8192 }
 0xf2d   : > { %p6519_p4 = scmp.ne.s32.totalorder %s8111_s17, %s6518_s28  ;;  %p6523_p9 = scmp.lt.s32.totalorder %s8111_s17, %s8162_s3 }
 0xf2e   : > { %p6524_p10 = scmp.lt.s32.totalorder %s6522_s4, %s6518_s28 }
 0xf2f   : > { %p6520_p7 = pnand %p6519_p4, %p6632_p5 }
 0xf30   : > { %p6525_p11 = por %p6524_p10, %p6523_p9 }
 0xf31   : > { %p6521_p8 = pneg %p6520_p7 }
 0xf33   : > { %p6526_p12 = pnand %p6525_p11, %p6521_p8 }
 0xf35   : > { %6529 = shalt.err (!%p6526_p12)
}
 0xf36   : > { %s6572_s7 = smov 128   ;;  %s6573_s8 = smov 8  }
 0xf37   : > { %6250 = dma.vmem_to_hbm [thread:$0]  (%p6632_p5), %s8113_s19, 2048, %s8111_s17, %s8119_s25, %s6572_s7, %s6572_s7, %s6573_s8  }
 0xf38 PF: > { %p6256_p13 = scmp.ge.s32.totalorder %s6564_s15, 2  ;;  %s4617_s10 = sand.u32 1, %s6552_s12  }
 0xf39   : > { %s4618_s11 = scalar_lea.sflag [#allocation3], %s4617_s10 }
 0xf3a   : > { %p6253_p0 = pnand %p6256_p13, %p6636_p6 }
 0xf3c   : > { %p6254_p1 = pneg %p6253_p0 }
 0xf3e   : > { %6547 = dma.done.wait (%p6254_p1), %s4618_s11, 2048  }
 0xf3f   : > { %6549 = vsyncadd (%p6254_p1), %s4618_s11, 4294965248  ;;  %p13_p2 = scmp.ge.s32.totalorder %s6619_s18, 6   ;;  %s8256_s12 = smov %s6556_s13 }
 0xf40   : > { %s8257_s13 = smov %s6560_s14  ;;  %s8258_s14 = smov %s6630_s21 }
 0xf41   : > { %s8259_s15 = smov %s6619_s18  ;;  %15 = sbr.rel (!%p13_p2) target bundleno = 3 (0x3), region = 70 }
 0xf46   :  { %4623 = vsyncpa [#allocation3], 1 }
 0xf47   :  { %4625 = vsyncpa [#allocation3 + $0x1], 1 }

</bundles_post_ra>
